<compile_context>
chip_gen: v7x
topology: tpu7x:2x2x1
jax: 0.10.0
libtpu: 0.0.40
codegen_flags: <defaults>
</compile_context>

<pallas_src>
import functools
import math

import jax
import jax.numpy as jnp
from jax import lax
from jax.experimental import pallas as pl
from jax.experimental.pallas import tpu as pltpu


_COMPUTE_DTYPE = jnp.bfloat16
_VMEM_LIMIT = 64 * 1024 * 1024


def _round_up(a, b):
    return ((a + b - 1) // b) * b


# ---------------------------------------------------------------------------
# Capability probe: in-kernel lane-dense repack (tm, N<128) -> (tm*N/128, 128)
# ---------------------------------------------------------------------------
@functools.lru_cache(maxsize=None)
def _lane_pack_ok(n):
    """True iff Mosaic can fold an (r, n) f32 tile into (r*n//128, 128)."""
    if n >= 128 or 128 % n != 0:
        return False

    def _k(x_ref, o_ref):
        o_ref[...] = x_ref[...].reshape(o_ref.shape)

    try:
        x = jnp.arange(128 * n, dtype=jnp.float32).reshape(128, n)
        y = pl.pallas_call(
            _k, out_shape=jax.ShapeDtypeStruct((n, 128), jnp.float32))(x)
        return bool(jnp.array_equal(y.reshape(128, n), x))
    except Exception:  # lowering not supported -> fall back to masked stores
        return False


# ---------------------------------------------------------------------------
# Fused GEMM kernel:  y = act((X @ W_scaled) + shift [+ residual])
# (BN scale is pre-folded into W at prep time; used for 1x1 convs + 7x7 stem)
# ---------------------------------------------------------------------------
def _make_gemm_kernel(relu, has_residual):
    def kernel(*refs):
        if has_residual:
            x_ref, w_ref, t_ref, r_ref, o_ref = refs
        else:
            x_ref, w_ref, t_ref, o_ref = refs
            r_ref = None
        y = jnp.dot(x_ref[...], w_ref[...], preferred_element_type=jnp.float32)
        y = y + t_ref[...]
        if has_residual:
            y = y + r_ref[...].astype(jnp.float32)
        if relu:
            y = jnp.maximum(y, 0.0)
        # Lane-dense store: o_ref may be the (rows, 128) packed view.
        o_ref[...] = y.reshape(o_ref.shape).astype(o_ref.dtype)
    return kernel


def _gemm_bias_act_pallas(x2d, w2d, shift, residual=None, relu=True,
                          out_dtype=_COMPUTE_DTYPE):
    M, K = x2d.shape
    N = w2d.shape[1]

    # M tile: big tiles for the HBM-bound early stages; keep >=2 grid steps on
    # mid-size stages so the "parallel" axis can shard over both TCs (v7x).
    if M >= 256:
        tm = min(2048 if M >= 8192 else 1024, _round_up(M, 128))
        while tm > 128 and pl.cdiv(M, tm) < 2:
            tm //= 2
    else:
        tm = M
    grid_m = pl.cdiv(M, tm)

    # Lane-dense store for narrow (<128) output channels.
    lane_pack = (N < 128 and 128 % N == 0 and (M * N) % 128 == 0
                 and tm % 8 == 0 and (tm * N) % 128 == 0
                 and ((tm * N // 128) % 8 == 0 or tm == M)
                 and _lane_pack_ok(N))

    in_specs = [pl.BlockSpec((tm, K), lambda i: (i, 0)),
                pl.BlockSpec((K, N), lambda i: (0, 0)),
                pl.BlockSpec((1, N), lambda i: (0, 0))]
    args = [x2d, w2d, shift.reshape(1, N).astype(jnp.float32)]
    if residual is not None:
        in_specs.append(pl.BlockSpec((tm, N), lambda i: (i, 0)))
        args.append(residual)

    if lane_pack:
        out_shape = jax.ShapeDtypeStruct((M * N // 128, 128), out_dtype)
        out_spec = pl.BlockSpec((tm * N // 128, 128), lambda i: (i, 0))
    else:
        out_shape = jax.ShapeDtypeStruct((M, N), out_dtype)
        out_spec = pl.BlockSpec((tm, N), lambda i: (i, 0))

    y = pl.pallas_call(
        _make_gemm_kernel(relu, residual is not None),
        out_shape=out_shape,
        grid=(grid_m,),
        in_specs=in_specs,
        out_specs=out_spec,
        compiler_params=pltpu.CompilerParams(
            dimension_semantics=("parallel",),
            vmem_limit_bytes=_VMEM_LIMIT),
    )(*args)
    return y.reshape(M, N)


def _gemm_bias_act_jnp(x2d, w2d, shift, residual=None, relu=True,
                       out_dtype=_COMPUTE_DTYPE):
    y = jnp.dot(x2d, w2d, preferred_element_type=jnp.float32)
    y = y + shift.reshape(1, -1).astype(jnp.float32)
    if residual is not None:
        y = y + residual.astype(jnp.float32)
    if relu:
        y = jnp.maximum(y, 0.0)
    return y.astype(out_dtype)


# ---------------------------------------------------------------------------
# 3x3 conv as an in-kernel tap accumulation over phase-decomposed input
# (no im2col patches in HBM).  y = relu( sum_t X_tap @ W_tap + shift )
# ---------------------------------------------------------------------------
def _make_tapconv_kernel(taps, Ho, Wo_pad):
    def kernel(x_ref, w_ref, t_ref, o_ref):
        cin = x_ref.shape[-1]
        cout = w_ref.shape[-1]
        acc = jnp.zeros((Ho * Wo_pad, cout), jnp.float32)
        for t, (p, oy, ox) in enumerate(taps):
            xt = x_ref[0, p, oy:oy + Ho, ox:ox + Wo_pad, :].reshape(
                Ho * Wo_pad, cin)
            acc = acc + jnp.dot(xt, w_ref[t],
                                preferred_element_type=jnp.float32)
        y = jnp.maximum(acc + t_ref[...], 0.0)
        o_ref[...] = y.reshape(o_ref.shape).astype(o_ref.dtype)
    return kernel


def _tapconv_pallas(ph, w_taps, shift, taps, Ho, Wo, Wo_pad,
                    out_dtype=_COMPUTE_DTYPE):
    B, P, Hp, Wp, Cin = ph.shape
    T, _, Cout = w_taps.shape
    M1 = Ho * Wo_pad
    lane_pack = (Cout < 128 and 128 % Cout == 0 and (M1 * Cout) % 128 == 0
                 and _lane_pack_ok(Cout))
    if lane_pack:
        out_shape = jax.ShapeDtypeStruct((B, M1 * Cout // 128, 128), out_dtype)
        out_spec = pl.BlockSpec((1, M1 * Cout // 128, 128),
                                lambda b: (b, 0, 0))
    else:
        out_shape = jax.ShapeDtypeStruct((B, M1, Cout), out_dtype)
        out_spec = pl.BlockSpec((1, M1, Cout), lambda b: (b, 0, 0))

    y = pl.pallas_call(
        _make_tapconv_kernel(taps, Ho, Wo_pad),
        out_shape=out_shape,
        grid=(B,),
        in_specs=[
            pl.BlockSpec((1, P, Hp, Wp, Cin), lambda b: (b, 0, 0, 0, 0)),
            pl.BlockSpec((T, Cin, Cout), lambda b: (0, 0, 0)),
            pl.BlockSpec((1, Cout), lambda b: (0, 0)),
        ],
        out_specs=out_spec,
        compiler_params=pltpu.CompilerParams(
            dimension_semantics=("parallel",),
            vmem_limit_bytes=_VMEM_LIMIT),
    )(ph, w_taps, shift.reshape(1, Cout).astype(jnp.float32))
    return y.reshape(B, Ho, Wo_pad, Cout)[:, :, :Wo, :]


def _tapconv_jnp(ph, w_taps, shift, taps, Ho, Wo, Wo_pad,
                 out_dtype=_COMPUTE_DTYPE):
    B, P, Hp, Wp, Cin = ph.shape
    Cout = w_taps.shape[-1]
    acc = jnp.zeros((B, Ho * Wo_pad, Cout), jnp.float32)
    for t, (p, oy, ox) in enumerate(taps):
        xt = ph[:, p, oy:oy + Ho, ox:ox + Wo_pad, :].reshape(B, -1, Cin)
        acc = acc + jnp.dot(xt, w_taps[t], preferred_element_type=jnp.float32)
    y = jnp.maximum(acc + shift.reshape(1, 1, Cout).astype(jnp.float32), 0.0)
    return y.astype(out_dtype).reshape(B, Ho, Wo_pad, Cout)[:, :, :Wo, :]


# ---------------------------------------------------------------------------
# MaxPool 3x3 / stride 2 / pad 1 — same phase trick, read input once
# ---------------------------------------------------------------------------
def _make_maxpool_kernel(taps, Ho, Wo_pad):
    def kernel(x_ref, o_ref):
        p0, oy0, ox0 = taps[0]
        r = x_ref[0, p0, oy0:oy0 + Ho, ox0:ox0 + Wo_pad, :]
        for p, oy, ox in taps[1:]:
            r = jnp.maximum(r, x_ref[0, p, oy:oy + Ho, ox:ox + Wo_pad, :])
        o_ref[...] = r.reshape(o_ref.shape).astype(o_ref.dtype)
    return kernel


def _maxpool_pallas(ph, taps, Ho, Wo, Wo_pad):
    B, P, Hp, Wp, C = ph.shape
    M1 = Ho * Wo_pad
    # TODO(synk): lane-dense (rows,128) packing of the (M1, 64) output slab.
    y = pl.pallas_call(
        _make_maxpool_kernel(taps, Ho, Wo_pad),
        out_shape=jax.ShapeDtypeStruct((B, M1, C), ph.dtype),
        grid=(B,),
        in_specs=[pl.BlockSpec((1, P, Hp, Wp, C), lambda b: (b, 0, 0, 0, 0))],
        out_specs=pl.BlockSpec((1, M1, C), lambda b: (b, 0, 0)),
        compiler_params=pltpu.CompilerParams(
            dimension_semantics=("parallel",),
            vmem_limit_bytes=_VMEM_LIMIT),
    )(ph)
    return y.reshape(B, Ho, Wo_pad, C)[:, :, :Wo, :]


def _maxpool_jnp(ph, taps, Ho, Wo, Wo_pad):
    r = None
    for p, oy, ox in taps:
        t = ph[:, p, oy:oy + Ho, ox:ox + Wo_pad, :]
        r = t if r is None else jnp.maximum(r, t)
    return r[:, :, :Wo, :]


# ---------------------------------------------------------------------------
# Head: AvgPool2d(7) + fc1 + fc2 fused
# ---------------------------------------------------------------------------
def _head_kernel(x_ref, w1_ref, b1_ref, w2_ref, b2_ref, o1_ref, o2_ref):
    pooled = jnp.mean(x_ref[...].astype(jnp.float32), axis=1)        # (B, C)
    o1_ref[...] = (jnp.dot(pooled, w1_ref[...],
                           preferred_element_type=jnp.float32) + b1_ref[...])
    o2_ref[...] = (jnp.dot(pooled, w2_ref[...],
                           preferred_element_type=jnp.float32) + b2_ref[...])


def _head_pallas(feat, fc1_w, fc1_b, fc2_w, fc2_b):
    B, H, W, C = feat.shape
    NC = fc1_w.shape[0]
    x = feat.reshape(B, H * W, C)
    out_shape = (jax.ShapeDtypeStruct((B, NC), jnp.float32),
                 jax.ShapeDtypeStruct((B, NC), jnp.float32))
    return pl.pallas_call(_head_kernel, out_shape=out_shape)(
        x, fc1_w.T, fc1_b.reshape(1, NC), fc2_w.T, fc2_b.reshape(1, NC))


def _head_jnp(feat, fc1_w, fc1_b, fc2_w, fc2_b):
    B, H, W, C = feat.shape
    pooled = jnp.mean(feat.reshape(B, H * W, C).astype(jnp.float32), axis=1)
    return pooled @ fc1_w.T + fc1_b, pooled @ fc2_w.T + fc2_b


# ---------------------------------------------------------------------------
# Wrapper-side layout plumbing (no FLOPs here)
# ---------------------------------------------------------------------------
def _build_phases(x, k, stride, pad, pad_value):
    """Decompose a (B,H,W,C) tensor into stride-phases of its padded version
    so a k x k / stride-s window op becomes k*k taps, each a *contiguous
    static slice* of one phase image (~1x input bytes, no strided in-kernel
    reads).  Returns (phases (B,s*s,Hp,Wp,C), taps [(phase, oy, ox)] in
    (dy, dx) order, Ho, Wo, Wo_pad)."""
    B, H, W, C = x.shape
    Ho = (H + 2 * pad - k) // stride + 1
    Wo = (W + 2 * pad - k) // stride + 1
    # Pad output width to a multiple of 16 so the in-kernel (Ho,Wo_pad,C) ->
    # (Ho*Wo_pad,C) fold is a free retile for bf16; extras sliced off outside.
    Wo_pad = _round_up(Wo, 16)
    off = (k - 1) // stride
    Hp, Wp = Ho + off, Wo_pad + off
    xp = jnp.pad(
        x,
        ((0, 0), (pad, stride * Hp - H - pad), (pad, stride * Wp - W - pad),
         (0, 0)),
        constant_values=pad_value)
    phases = [xp[:, ry::stride, rx::stride, :][:, :Hp, :Wp, :]
              for ry in range(stride) for rx in range(stride)]
    ph = jnp.stack(phases, axis=1)
    taps = [((dy % stride) * stride + (dx % stride), dy // stride, dx // stride)
            for dy in range(k) for dx in range(k)]
    return ph, taps, Ho, Wo, Wo_pad


def _im2col(x, k, stride, pad):
    """(B,H,W,C) -> (B,Ho,Wo,k*k*C), (dy,dx,c) tap order.  Only used for the
    7x7 stem (Cin=3), where a per-tap formulation would leave the MXU K
    dimension ~98% idle."""
    B, H, W, C = x.shape
    if pad > 0:
        x = jnp.pad(x, ((0, 0), (pad, pad), (pad, pad), (0, 0)))
    Ho = (H + 2 * pad - k) // stride + 1
    Wo = (W + 2 * pad - k) // stride + 1
    taps = [x[:, dy:dy + stride * (Ho - 1) + 1:stride,
                dx:dx + stride * (Wo - 1) + 1:stride, :]
            for dy in range(k) for dx in range(k)]
    return taps[0] if len(taps) == 1 else jnp.concatenate(taps, axis=-1)


def _conv_gemm(x, conv, gemm, relu, residual=None):
    """1x1 conv (any stride) or the 7x7 stem, as a fused GEMM."""
    k, s = conv['k'], conv['stride']
    T, Cin, Cout = conv['w'].shape
    if k == 1:
        xs = x if s == 1 else x[:, ::s, ::s, :]
        B, Ho, Wo, _ = xs.shape
        x2d = xs.reshape(-1, Cin)
    else:
        patches = _im2col(x, k, s, conv['pad'])
        B, Ho, Wo, K = patches.shape
        x2d = patches.reshape(-1, K)
    w2d = conv['w'].reshape(T * Cin, Cout)
    r2d = None if residual is None else residual.reshape(-1, Cout)
    y = gemm(x2d, w2d, conv['shift'], residual=r2d, relu=relu)
    return y.reshape(B, Ho, Wo, Cout)


def _conv_tap(x, conv, tapconv):
    """3x3 conv + folded BN + ReLU, no im2col patches in HBM."""
    ph, taps, Ho, Wo, Wo_pad = _build_phases(
        x, conv['k'], conv['stride'], conv['pad'], pad_value=0.0)
    return tapconv(ph, conv['w'], conv['shift'], taps, Ho, Wo, Wo_pad)


def _maxpool_3x3_s2_p1(x, maxpool):
    neg = float(jnp.finfo(x.dtype).min)
    ph, taps, Ho, Wo, Wo_pad = _build_phases(x, 3, 2, 1, pad_value=neg)
    return maxpool(ph, taps, Ho, Wo, Wo_pad)


def _bottleneck(x, blk, gemm, tapconv):
    a = _conv_gemm(x, blk['c1'], gemm, relu=True)                 # 1x1
    a = _conv_tap(a, blk['c2'], tapconv)                          # 3x3 (stride)
    if blk['cd'] is not None:
        res = _conv_gemm(x, blk['cd'], gemm, relu=False)          # 1x1 ds
    else:
        res = x
    # conv_a3 + bn_a3 + residual add + final ReLU fused into one kernel call.
    return _conv_gemm(a, blk['c3'], gemm, relu=True, residual=res)


def resnet224_forward(x_nchw, prep, use_pallas=True):
    gemm = _gemm_bias_act_pallas if use_pallas else _gemm_bias_act_jnp
    tapconv = _tapconv_pallas if use_pallas else _tapconv_jnp
    maxpool = _maxpool_pallas if use_pallas else _maxpool_jnp
    head = _head_pallas if use_pallas else _head_jnp

    x = jnp.transpose(x_nchw, (0, 2, 3, 1)).astype(_COMPUTE_DTYPE)   # NHWC
    x = _conv_gemm(x, prep['stem'], gemm, relu=True)                 # 7x7/s2
    x = _maxpool_3x3_s2_p1(x, maxpool)
    for layer in prep['layers']:
        for blk in layer:
            x = _bottleneck(x, blk, gemm, tapconv)
    return head(x, prep['fc1_w'], prep['fc1_b'],
                prep['fc2_w'], prep['fc2_b'])


# ---------------------------------------------------------------------------
# One-time parameter preparation (hoisted out of the forward path):
# fold BN scale into the conv weights, transpose to (tap, Cin, Cout), cast bf16
# ---------------------------------------------------------------------------
def prepare_params(params, dtype=_COMPUTE_DTYPE, eps=1e-5):
    def fold(bn):
        gamma, beta, mean, var = bn
        s = gamma / jnp.sqrt(var + eps)
        return s, (beta - mean * s).astype(jnp.float32)

    def prep_conv(w_oihw, bn, stride, pad):
        cout, cin, kh, kw = w_oihw.shape
        s, t = fold(bn)
        w = w_oihw * s[:, None, None, None]                 # fold BN scale
        w_taps = jnp.transpose(w, (2, 3, 1, 0)).reshape(kh * kw, cin, cout)
        return {'w': w_taps.astype(dtype), 'shift': t, 'k': kh,
                'stride': stride, 'pad': pad}

    prep = {'stem': prep_conv(params['stem_w'], params['stem_bn'], 2, 3)}
    layers = []
    for layer in params['layers']:
        blocks = []
        for blk in layer:
            blocks.append({
                'c1': prep_conv(blk['w1'], blk['bn1'], 1, 0),
                'c2': prep_conv(blk['w2'], blk['bn2'], blk['stride'], 1),
                'c3': prep_conv(blk['w3'], blk['bn3'], 1, 0),
                'cd': (prep_conv(blk['wd'], blk['bnd'], blk['stride'], 0)
                       if blk['wd'] is not None else None),
            })
        layers.append(blocks)
    prep['layers'] = layers
    prep['fc1_w'] = params['fc1_w']
    prep['fc1_b'] = params['fc1_b']
    prep['fc2_w'] = params['fc2_w']
    prep['fc2_b'] = params['fc2_b']
    return prep


# ---------------------------------------------------------------------------
# Independent structural reference (f32, XLA conv / reduce_window)
# ---------------------------------------------------------------------------
def _ref_conv(x, w_oihw, stride, pad):
    return lax.conv_general_dilated(
        x, jnp.transpose(w_oihw, (2, 3, 1, 0)),
        window_strides=(stride, stride),
        padding=((pad, pad), (pad, pad)),
        dimension_numbers=('NHWC', 'HWIO', 'NHWC'))


def _ref_bn(x, bn, eps=1e-5):
    gamma, beta, mean, var = bn
    return gamma * (x - mean) / jnp.sqrt(var + eps) + beta


def reference_forward(x_nchw, params):
    relu = lambda v: jnp.maximum(v, 0.0)
    x = jnp.transpose(x_nchw, (0, 2, 3, 1)).astype(jnp.float32)
    x = relu(_ref_bn(_ref_conv(x, params['stem_w'], 2, 3), params['stem_bn']))
    x = lax.reduce_window(x, -jnp.inf, lax.max, (1, 3, 3, 1), (1, 2, 2, 1),
                          ((0, 0), (1, 1), (1, 1), (0, 0)))
    for layer in params['layers']:
        for blk in layer:
            a = relu(_ref_bn(_ref_conv(x, blk['w1'], 1, 0), blk['bn1']))
            a = relu(_ref_bn(_ref_conv(a, blk['w2'], blk['stride'], 1),
                             blk['bn2']))
            a = _ref_bn(_ref_conv(a, blk['w3'], 1, 0), blk['bn3'])
            if blk['wd'] is not None:
                res = _ref_bn(_ref_conv(x, blk['wd'], blk['stride'], 0),
                              blk['bnd'])
            else:
                res = x
            x = relu(a + res)
    pooled = jnp.mean(x, axis=(1, 2))
    return (pooled @ params['fc1_w'].T + params['fc1_b'],
            pooled @ params['fc2_w'].T + params['fc2_b'])


# ---------------------------------------------------------------------------
# Deterministic parameter construction (torch-like init, inference BN stats)
# ---------------------------------------------------------------------------
def make_params(key, channels=8, layers=(1, 1, 1, 1), num_classes=10):
    keys = iter(jax.random.split(key, 256))

    def conv_w(cout, cin, kh, kw):
        n = kh * kw * cout
        return (jax.random.normal(next(keys), (cout, cin, kh, kw), jnp.float32)
                * math.sqrt(2.0 / n))

    def bn_p(c):
        return (1.0 + 0.1 * jax.random.normal(next(keys), (c,), jnp.float32),
                0.1 * jax.random.normal(next(keys), (c,), jnp.float32),
                0.1 * jax.random.normal(next(keys), (c,), jnp.float32),
                jax.random.uniform(next(keys), (c,), jnp.float32, 0.5, 1.5))

    params = {'stem_w': conv_w(64, 3, 7, 7), 'stem_bn': bn_p(64)}
    inplanes = 64
    all_layers = []
    for li, n_blocks in enumerate(layers):
        planes = channels * (2 ** li)
        outc = 4 * planes                  # BottleneckBlock.out_channels(., 1)
        stride = 1 if li == 0 else 2
        blocks = []
        for bi in range(n_blocks):
            s = stride if bi == 0 else 1
            need_ds = (bi == 0) and (s != 1 or inplanes != outc)
            blocks.append({
                'w1': conv_w(planes, inplanes, 1, 1), 'bn1': bn_p(planes),
                'w2': conv_w(planes, planes, 3, 3), 'bn2': bn_p(planes),
                'w3': conv_w(outc, planes, 1, 1), 'bn3': bn_p(outc),
                'stride': s,
                'wd': conv_w(outc, inplanes, 1, 1) if need_ds else None,
                'bnd': bn_p(outc) if need_ds else None,
            })
            inplanes = outc
        all_layers.append(blocks)
    params['layers'] = all_layers

    bound = 1.0 / math.sqrt(inplanes)
    params['fc1_w'] = jax.random.uniform(next(keys), (num_classes, inplanes),
                                         jnp.float32, -bound, bound)
    params['fc1_b'] = jax.random.uniform(next(keys), (num_classes,),
                                         jnp.float32, -bound, bound)
    params['fc2_w'] = jax.random.uniform(next(keys), (num_classes, inplanes),
                                         jnp.float32, -bound, bound)
    params['fc2_b'] = jax.random.uniform(next(keys), (num_classes,),
                                         jnp.float32, -bound, bound)
    return params


def _max_rel_err(a, b):
    scale = jnp.maximum(jnp.max(jnp.abs(b)), 1.0)
    return float(jnp.max(jnp.abs(a.astype(jnp.float32) - b)) / scale)


if __name__ == "__main__":
    key = jax.random.PRNGKey(0)
    k_params, k_x = jax.random.split(key)

    # Small ResNet224x224: BottleneckBlock, layers=[1,1,1,1], channels=8,
    # groups=1, num_classes=10, downsample='basic'.  Spatial size must be 224
    # (AvgPool2d(7) after four stride-2 stages), so keep 224 but use a small
    # batch and narrow channels.
    params = make_params(k_params, channels=8, layers=(1, 1, 1, 1),
                         num_classes=10)
    x = jax.random.normal(k_x, (2, 3, 224, 224), jnp.float32)

    prep = prepare_params(params)
    out1, out2 = resnet224_forward(x, prep, use_pallas=True)
    out1, out2 = jax.block_until_ready((out1, out2))
    assert out1.shape == (2, 10) and out2.shape == (2, 10)

    # Check 1: same-math pure-JAX path (identical bf16 phase/tap/GEMM
    # decomposition) — only Mosaic-vs-XLA matmul details differ.
    ref1, ref2 = resnet224_forward(x, prep, use_pallas=False)
    assert _max_rel_err(out1, ref1) < 8e-2, _max_rel_err(out1, ref1)
    assert _max_rel_err(out2, ref2) < 8e-2, _max_rel_err(out2, ref2)

    # Check 2: independent f32 structural reference (XLA conv/reduce_window) —
    # guards against wrong strides / padding / tap ordering / BN folding.
    # Looser tolerance since the Pallas path carries bf16 activations.
    c1, c2 = reference_forward(x, params)
    assert _max_rel_err(out1, c1) < 2e-1, _max_rel_err(out1, c1)
    assert _max_rel_err(out2, c2) < 2e-1, _max_rel_err(out2, c2)

    print("KERNEL_OK")
</pallas_src>

<mosaic_0001>
module attributes {stable_mosaic.version = 11 : i64} {
  func.func @_k(%arg0: memref<128x64xf32, #tpu.memory_space<vmem>>, %arg1: memref<64x128xf32, #tpu.memory_space<vmem>>) attributes {dimension_semantics = [], scalar_prefetch = 0 : i64, scratch_operands = 0 : i64, tpu.core_type = #tpu.core_type<tc>} {
    %c0 = arith.constant 0 : index
    %c0_0 = arith.constant 0 : index
    %0 = vector.load %arg0[%c0, %c0_0] : memref<128x64xf32, #tpu.memory_space<vmem>>, vector<128x64xf32>
    %1 = vector.shape_cast %0 : vector<128x64xf32> to vector<64x128xf32>
    %c0_1 = arith.constant 0 : index
    %c0_2 = arith.constant 0 : index
    %2 = vector.load %arg1[%c0_1, %c0_2] : memref<64x128xf32, #tpu.memory_space<vmem>>, vector<64x128xf32>
    tpu.vector_store %arg1[%c0_1, %c0_2], %1 {strides = array<i32>} : memref<64x128xf32, #tpu.memory_space<vmem>>, vector<64x128xf32>,
    return
  }
}

module attributes {stable_mosaic.version = 11 : i64} {
  func.func @kernel(%arg0: i32, %arg1: memref<2048x147xbf16, #tpu.memory_space<vmem>>, %arg2: memref<147x64xbf16, #tpu.memory_space<vmem>>, %arg3: memref<1x64xf32, #tpu.memory_space<vmem>>, %arg4: memref<2048x64xbf16, #tpu.memory_space<vmem>>) attributes {dimension_semantics = [#tpu.dimension_semantics<parallel>], iteration_bounds = array<i64: 13>, scalar_prefetch = 0 : i64, scratch_operands = 0 : i64, tpu.core_type = #tpu.core_type<tc>, window_params = [{transform_indices = @transform_0, window_bounds = array<i64: 2048, 147>}, {pipeline_mode = #tpu.pipeline_mode<synchronous>, transform_indices = @transform_1, window_bounds = array<i64: 147, 64>}, {pipeline_mode = #tpu.pipeline_mode<synchronous>, transform_indices = @transform_2, window_bounds = array<i64: 1, 64>}, {transform_indices = @transform_3, window_bounds = array<i64: 2048, 64>}]} {
    %c0 = arith.constant 0 : index
    %c0_0 = arith.constant 0 : index
    %0 = vector.load %arg1[%c0, %c0_0] : memref<2048x147xbf16, #tpu.memory_space<vmem>>, vector<2048x147xbf16>
    %c0_1 = arith.constant 0 : index
    %c0_2 = arith.constant 0 : index
    %1 = vector.load %arg2[%c0_1, %c0_2] : memref<147x64xbf16, #tpu.memory_space<vmem>>, vector<147x64xbf16>
    %cst = arith.constant dense<0.000000e+00> : vector<2048x64xf32>
    %2 = tpu.matmul %0, %1, %cst {dimension_numbers = #tpu.dot_dimension_numbers<[1], [0], [0], [1], [0, 0, 1, 1], [], []>} : vector<2048x147xbf16>, vector<147x64xbf16>, vector<2048x64xf32> -> vector<2048x64xf32>
    %c0_3 = arith.constant 0 : index
    %c0_4 = arith.constant 0 : index
    %3 = vector.load %arg3[%c0_3, %c0_4] : memref<1x64xf32, #tpu.memory_space<vmem>>, vector<1x64xf32>
    %4 = vector.broadcast %3 : vector<1x64xf32> to vector<2048x64xf32>
    %5 = arith.addf %2, %4 : vector<2048x64xf32>
    %cst_5 = arith.constant 0.000000e+00 : f32
    %6 = vector.broadcast %cst_5 : f32 to vector<2048x64xf32>
    %7 = arith.maximumf %5, %6 : vector<2048x64xf32>
    %8 = arith.truncf %7 : vector<2048x64xf32> to vector<2048x64xbf16>
    %c0_6 = arith.constant 0 : index
    %c0_7 = arith.constant 0 : index
    %9 = vector.load %arg4[%c0_6, %c0_7] : memref<2048x64xbf16, #tpu.memory_space<vmem>>, vector<2048x64xbf16>
    tpu.vector_store %arg4[%c0_6, %c0_7], %8 {strides = array<i32>} : memref<2048x64xbf16, #tpu.memory_space<vmem>>, vector<2048x64xbf16>,
    return
  }
  func.func @transform_0(%arg0: i32) -> (i32, i32) {
    %c0_i32 = arith.constant 0 : i32
    %c0_i32_0 = arith.constant 0 : i32
    return %arg0, %c0_i32 : i32, i32
  }
  func.func @transform_1(%arg0: i32) -> (i32, i32) {
    %c0_i32 = arith.constant 0 : i32
    %c0_i32_0 = arith.constant 0 : i32
    %c0_i32_1 = arith.constant 0 : i32
    return %c0_i32, %c0_i32_0 : i32, i32
  }
  func.func @transform_2(%arg0: i32) -> (i32, i32) {
    %c0_i32 = arith.constant 0 : i32
    %c0_i32_0 = arith.constant 0 : i32
    %c0_i32_1 = arith.constant 0 : i32
    return %c0_i32, %c0_i32_0 : i32, i32
  }
  func.func @transform_3(%arg0: i32) -> (i32, i32) {
    %c0_i32 = arith.constant 0 : i32
    %c0_i32_0 = arith.constant 0 : i32
    return %arg0, %c0_i32 : i32, i32
  }
}

</mosaic_0001>

<bundles_post_ra>
// kernel: tpu_custom_call.1
= control target key start
LH: loop header
LB: loop body
LE: loop exit
PB: predicated region body
PF: predicated region fallthrough
CT: control target
= control target key end

     0   :  { %8 = vsyncpa [#allocation3], 0  ;;  %s7846_s0 = inlined_call_operand.hbm [shape: bf16[25088,147], index: 0, kind: input, shape index: {}]   ;;  %s7847_s1 = inlined_call_operand.hbm [shape: bf16[147,64], index: 1, kind: input, shape index: {}]   ;;  %s7848_s2 = inlined_call_operand.hbm [shape: f32[1,64], index: 2, kind: input, shape index: {}]   ;;  %s7849_s3 = inlined_call_operand.hbm [shape: bf16[25088,64], index: 3, kind: output, shape index: {}]  }
   0x1   :  { %10 = vsyncpa [#allocation3 + $0x1], 0 }
   0x2   :  { %11 = vsyncpa [#allocation6], 0 }
   0x3   :  { %12 = vsyncpa [#allocation4], 0 }
   0x4   :  { %14 = vsyncpa [#allocation4 + $0x1], 0  ;;  %s6437_s12 = smov 0   ;;  %s6439_s13 = smov 0  }
   0x5   :  { %s6441_s14 = smov 0   ;;  %s6443_s15 = smov 0  }
   0x6 LB: > { %s6458_s16 = sadd.s32 4294967295, %s6403_s15   ;;  %s4825_s17 = sadd.s32 4294967294, %s6403_s15   ;;  %s6403_s15 = sphi %s6443_s15, %s7869_s15   ;;  %s6399_s14 = sphi %s6441_s14, %s7868_s14   ;;  %s6395_s13 = sphi %s6439_s13, %s7867_s13   ;;  %s6391_s12 = sphi %s6437_s12, %s7866_s12  }
   0x7   : > { %s6462_s18 = sadd.s32 1, %s6403_s15   ;;  %s27_s19 = sadd.s32 1, %s6399_s14 }
   0x8   : > { %s24_s20 = ssub.s32 %s6403_s15, %s6462_s18  ;;  %p34_p0 = scmp.ne.s32.totalorder %s6399_s14, %s6395_s13 }
   0x9   : > { %p25_p1 = scmp.eq.s32.totalorder %s24_s20, 0  ;;  %p35_p2 = scmp.eq.s32.totalorder %s6403_s15, 0 }
   0xa   : > { %p40_p3 = scmp.ne.s32.totalorder %s6395_s13, %s6391_s12  ;;  %p7850_p4 = scmp.eq.s32.totalorder %s6458_s16, 0 }
   0xb   : > { %s6474_s21 = scalar_select %p25_p1, %s6399_s14, %s27_s19  }
   0xc   : > { %p6476_p5 = por %p35_p2, %p34_p0  ;;  %p6482_p6 = por %p7850_p4, %p40_p3 }
   0xd   : > { %p106_p7 = scmp.eq.s32.totalorder %s6458_s16, 12  ;;  %p112_p8 = scmp.eq.s32.totalorder %s4825_s17, 12 }
   0xe   : > { %s7853_s22 = scalar_select %p6476_p5, 1, 0 }
   0xf   : > { %s7854_s23 = scalar_select %p6482_p6, 1, 0 }
  0x10   : > { %p4826_p9 = scmp.ge.s32.totalorder %s6403_s15, 1  ;;  %p119_p10 = scmp.lt.s32.totalorder %s6403_s15, 14 }
  0x11   : > { %p6489_p11 = por %p106_p7, %p34_p0  ;;  %p6493_p12 = por %p112_p8, %p40_p3 }
  0x12   : > { %p6497_p13 = pnand %p4826_p9, %p119_p10  ;;  %s6405_s27 = smov [#allocation5]  }
  0x13   : > { %s7855_s24 = scalar_select %p6489_p11, 1, 0 }
  0x14   : > { %s7856_s25 = scalar_select %p6493_p12, 1, 0 }
  0x15   : > { %s7857_s26 = scalar_select %p6497_p13, 1, 0 }
  0x16   : > { %p5794_p1 = pneg %p6497_p13  ;;  %s131_s28 = sshll.u32 %s6405_s27, 4  ;;  %s132_s28 = int_to_ptr.vmem [resolvable:$true] %s131_s28 }
  0x17   : > { %s6406_s30 = smov [#allocation7]   ;;  %s6249_s7 = scalar_lea.hbm %s7847_s1, 1216 }
  0x18   : > { %p6505_p2 = pnand %p5794_p1, %p7850_p4  ;;  %s145_s4 = sshll.u32 %s6406_s30, 4  ;;  %s6509_s4 = int_to_ptr.vmem [resolvable:$true] %s145_s4 }
  0x19   : > { %p6250_p0 = scmp.ne.s32.totalorder %s7847_s1, %s6249_s7  ;;  %p6256_p9 = scmp.lt.u32.totalorder %s6249_s7, %s7847_s1 }
  0x1a   : > { %p6251_p3 = pneg %p6505_p2 }
  0x1c   : > { %p6252_p7 = pnand %p6251_p3, %p6250_p0 }
  0x1e   : > { %p6253_p8 = pneg %p6252_p7 }
  0x20   : > { %p6258_p10 = pnand %p6256_p9, %p6253_p8 }
  0x22   : > { %6261 = shalt.err (!%p6258_p10)
}
  0x23   : > { %s6262_s17 = scalar_lea.vmem %s132_s28, 1216  ;;  %p6270_p11 = scmp.lt.s32.totalorder %s132_s28, %s132_s28 }
  0x24   : > { %p6263_p1 = scmp.ne.s32.totalorder %s132_s28, %s6262_s17  ;;  %p6271_p6 = scmp.lt.s32.totalorder %s6262_s17, %s6262_s17 }
  0x26   : > { %p6265_p4 = pnand %p6263_p1, %p6251_p3  ;;  %p6272_p13 = por %p6271_p6, %p6270_p11 }
  0x28   : > { %p6266_p12 = pneg %p6265_p4 }
  0x2a   : > { %p6273_p5 = pnand %p6272_p13, %p6266_p12 }
  0x2c   : > { %6276 = shalt.err (!%p6273_p5)
}
  0x2d   : > { %s6407_s19 = smov 64   ;;  %s6408_s20 = smov 4  }
  0x2e   : > { %5797 = dma.hbm_to_vmem [thread:$0]  (!%p6505_p2), %s7847_s1, 1216, %s132_s28, [#allocation6], %s6407_s19, %s6407_s19, %s6408_s20  }
  0x2f   : > { %s6277_s7 = scalar_lea.hbm %s7848_s2, 16 }
  0x30   : > { %p6278_p4 = scmp.ne.s32.totalorder %s7848_s2, %s6277_s7  ;;  %p6284_p11 = scmp.lt.u32.totalorder %s6277_s7, %s7848_s2 }
  0x32   : > { %p6280_p5 = pnand %p6278_p4, %p6251_p3 }
  0x34   : > { %p6281_p6 = pneg %p6280_p5 }
  0x36   : > { %p6286_p12 = pnand %p6284_p11, %p6281_p6 }
  0x38   : > { %6289 = shalt.err (!%p6286_p12)
}
  0x39   : > { %s6290_s28 = scalar_lea.vmem %s6509_s4, 16  ;;  %s6297_s17 = scalar_lea.vmem %s6509_s4, 32 }
  0x3a   : > { %p6291_p13 = scmp.ne.s32.totalorder %s6509_s4, %s6290_s28  ;;  %p6298_p8 = scmp.lt.s32.totalorder %s6509_s4, %s6509_s4 }
  0x3b   : > { %p6299_p9 = scmp.lt.s32.totalorder %s6297_s17, %s6290_s28 }
  0x3c   : > { %p6293_p0 = pnand %p6291_p13, %p6251_p3 }
  0x3d   : > { %p6300_p10 = por %p6299_p9, %p6298_p8 }
  0x3e   : > { %p6294_p7 = pneg %p6293_p0 }
  0x40   : > { %p6301_p1 = pnand %p6300_p10, %p6294_p7 }
  0x42   : > { %6304 = shalt.err (!%p6301_p1)
}
  0x43   : > { %5800 = dma.hbm_to_vmem [thread:$0]  (!%p6505_p2), %s7848_s2, 16, %s6509_s4, [#allocation6]  }
  0x44   : > { %p4829_p4 = scmp.ge.s32.totalorder %s6403_s15, 13 }
  0x45   : > { %p7859_p3 = scmp.ne.s32.totalorder (!%p4829_p4), %s7853_s22, 0 }
  0x46   : > { %152 = sbr.rel (%p4829_p4) target bundleno = 112 (0x70), region = 24 }
  0x4d   : > { %155 = sbr.rel (!%p7859_p3) target bundleno = 112 (0x70), region = 28  ;;  %s156_s27 = sand.u32 (%p7859_p3), 1, %s6399_s14  }
  0x4e   : > { %s4831_s30 = sshll.u32 (%p7859_p3), %s6403_s15, 8  ;;  %s4830_s5 = sshll.u32 (%p7859_p3), %s156_s27, 11 }
  0x4f   : > { %s162_s6 = ssub.s32 (%p7859_p3), 3136, %s4831_s30  ;;  %s6567_s8 = scalar_lea.sflag (%p7859_p3), [#allocation3], %s156_s27 }
  0x50   : > { %p163_p5 = scmp.lt.s32.totalorder (%p7859_p3), %s162_s6, 256  ;;  %s160_s4 = scalar_lea.vmem (%p7859_p3), [#allocation2], %s4830_s5 }
  0x54   : > { %s7871_s6 = smov (!%p163_p5, %s162_s6), 256 }
  0x55   : > { %s6564_s29 = sshll.u32 %s7871_s6, 7 }
  0x56   : > { %s168_s7 = ssub.s32 32768, %s6564_s29 }
  0x57   : > { %169 = vsyncadd %s6567_s8, %s168_s7  ;;  %p4834_p2 = scmp.ne.s32.totalorder %s6564_s29, 0  ;;  %s5506_s22 = sshll.u32 %s6403_s15, 15 }
  0x58   : > { %s6575_s11 = scalar_lea.hbm %s7846_s0, %s5506_s22  ;;  %s175_s28 = sshll.u32 %s160_s4, 4  ;;  %s6577_s28 = int_to_ptr.vmem [resolvable:$true] %s175_s28 }
  0x59   : > { %s6305_s17 = scalar_lea.hbm %s6575_s11, %s6564_s29  ;;  %s6309_s27 = scalar_lea.hbm %s7846_s0, 401408 }
  0x5a   : > { %p6306_p6 = scmp.ne.s32.totalorder %s6575_s11, %s6305_s17  ;;  %p6310_p13 = scmp.lt.u32.totalorder %s6575_s11, %s7846_s0 }
  0x5b   : > { %p6311_p0 = scmp.lt.u32.totalorder %s6309_s27, %s6305_s17  ;;  %p6313_p8 = scmp.lt.u32.totalorder %s6305_s17, %s6575_s11 }
  0x5c   : > { %p6307_p11 = pnand %p6306_p6, %p4834_p2 }
  0x5d   : > { %p6312_p7 = por %p6311_p0, %p6310_p13 }
  0x5e   : > { %p6308_p12 = pneg %p6307_p11 }
  0x5f   : > { %p6314_p9 = por %p6313_p8, %p6312_p7 }
  0x61   : > { %p6315_p10 = pnand %p6314_p9, %p6308_p12 }
  0x63   : > { %6318 = shalt.err (!%p6315_p10)
}
  0x64   : > { %s6319_s6 = scalar_lea.vmem %s6577_s28, %s6564_s29  ;;  %s6409_s7 = smov [#allocation2]  }
  0x65   : > { %p6320_p1 = scmp.ne.s32.totalorder %s6577_s28, %s6319_s6  ;;  %s6323_s4 = sshll.u32 %s6409_s7, 4  ;;  %s6324_s4 = int_to_ptr.vmem [resolvable:$false] %s6323_s4 }
  0x66   : > { %s6325_s22 = scalar_lea.vmem %s6324_s4, 65536  ;;  %p6326_p5 = scmp.lt.s32.totalorder %s6577_s28, %s6324_s4 }
  0x67   : > { %p6321_p4 = pnand %p6320_p1, %p4834_p2  ;;  %p6327_p6 = scmp.lt.s32.totalorder %s6325_s22, %s6319_s6 }
  0x69   : > { %p6322_p3 = pneg %p6321_p4  ;;  %p6328_p11 = por %p6327_p6, %p6326_p5 }
  0x6b   : > { %p6329_p13 = pnand %p6328_p11, %p6322_p3 }
  0x6d   : > { %6332 = shalt.err (!%p6329_p13)
}
  0x6e   : > { %s6410_s9 = smov 128   ;;  %s6411_s10 = smov 8  }
  0x6f   : > { %181 = dma.hbm_to_vmem [thread:$0]  (%p4834_p2), %s6575_s11, %s6564_s29, %s6577_s28, %s6567_s8, %s6410_s9, %s6410_s9, %s6411_s10  }
  0x70 PF: > { %p7860_p12 = scmp.ne.s32.totalorder %s7857_s26, 0 }
  0x71   : > { %s6607_s17 = sand.u32 (!%p7860_p12), 1, %s6395_s13   ;;  %p7861_p0 = scmp.ne.s32.totalorder (!%p7860_p12), %s7854_s23, 0 }
  0x72   : > { %187 = sbr.rel (%p7860_p12) target bundleno = 919 (0x397), region = 32  ;;  %s4840_s19 = sshll.u32 (!%p7860_p12), %s6607_s17, 11 }
  0x73   : > { %s190_s20 = scalar_lea.sflag (!%p7860_p12), [#allocation3], %s6607_s17  ;;  %s6611_s27 = scalar_lea.vmem (!%p7860_p12), [#allocation2], %s4840_s19 }
  0x79   : > { %6378 = dma.done.wait (%p7861_p0), %s190_s20, 32768  }
  0x7a   : > { %6380 = vsyncadd (%p7861_p0), %s190_s20, 4294934528  ;;  %p7862_p2 = scmp.eq.s32.totalorder %s6458_s16, 0 }
  0x7c   : > { %6382 = dma.done.wait (%p7862_p2), [#allocation6], 1232   ;;  %p7863_p7 = pmov %p7862_p2 }
  0x7d   : > { %v6412_v0 = vmov 0   ;;  %v5852_v1 = vld [vmem:[#allocation5] sm:$0xff]   ;;  %v5853_v2 = vld [vmem:[#allocation5 + $0x8] sm:$0xff]   ;;  %v5854_v3 = vld [vmem:[#allocation5 + $0x10] sm:$0xff]   ;;  %vm1727_vm0 = vcmask 154624   ;;  %vm2112_vm1 = vcmask 1040384  }
  0x7e   : > { %6384 = vsyncadd (%p7863_p7), [#allocation6], 4294966064  ;;  %2119 = vmatprep.subr.bf16.mxu0 %v6412_v0  ;;  %5764 = vmatprep.subr.bf16.mxu1 %v6412_v0  ;;  %v5855_v4 = vld [vmem:[#allocation5 + $0x18] sm:$0xff]   ;;  %v5864_v5 = vld [vmem:[%s6611_s27 + $0x4] ss:$8 sps:$4 sm:$0xff]   ;;  %vm2113_vm2 = vcmask 1041408  }
  0x7f   : > { %2120 = vmatpush1.bf16.msra.mxu0 %v5852_v1  ;;  %5774 = vmatpush1.bf16.msra.mxu1 %v5852_v1  ;;  %v5867_v6 = vld [vmem:[%s6611_s27 + $0x404] ss:$8 sps:$4 sm:$0xff]   ;;  %v5858_v9 = vld [vmem:[#allocation5 + $0x30] sm:$0xff]   ;;  %v5859_v10 = vld [vmem:[#allocation5 + $0x38] sm:$0xff]   ;;  %v6413_v11 = vmov 65535   ;;  %s4843_s23 = sshll.u32 %s6607_s17, 10 }
  0x80   : > { %2121 = vmatprep.subr.bf16.mxu0 %v6412_v0  ;;  %5765 = vmatprep.subr.bf16.mxu1 %v6412_v0  ;;  %v5856_v7 = vld [vmem:[#allocation5 + $0x20] sm:$0xff]   ;;  %v5857_v8 = vld [vmem:[#allocation5 + $0x28] sm:$0xff]   ;;  %v2114_v12 = vsel %vm2112_vm1, 4294967295, %v6413_v11  ;;  %v5868_v19 = vld [vmem:[%s6611_s27 + $0x14] ss:$8 sps:$4 sm:$0xff]   ;;  %vm4456_vm3 = vcmask 519168  }
  0x81   : > { %5111 = vmatprep.mubr.msk.bf16.mxu0 %vm1727_vm0, %v5864_v5  ;;  %5175 = vmatprep.mubr.msk.bf16.mxu1 %vm1727_vm0, %v5867_v6  ;;  %v5860_v13 = vld [vmem:[#allocation5 + $0x40] sm:$0xff]   ;;  %v5861_v14 = vld [vmem:[#allocation5 + $0x48] ss:$0 sps:$4 sm:$0x33]   ;;  %v2115_v15 = vsel %vm2113_vm2, %v2114_v12, 0  ;;  %s6800_s26 = scalar_lea.vmem [#allocation8], %s4843_s23 }
  0x82   : > { %v2117_v16 = vand.u32 %v5861_v14, %v2115_v15  ;;  %v5862_v17 = vld [vmem:[%s6611_s27] ss:$8 sps:$4 sm:$0xff]   ;;  %v5870_v20 = vld [vmem:[%s6611_s27 + $0x414] ss:$8 sps:$4 sm:$0xff]   ;;  %v5872_v21 = vld [vmem:[%s6611_s27 + $0x10] ss:$8 sps:$4 sm:$0xff]  }
  0x83   : > { %2122 = vmatpush1.bf16.msra.mxu0 %v5853_v2  ;;  %5775 = vmatpush1.bf16.msra.mxu1 %v5853_v2  ;;  %v5865_v18 = vld [vmem:[%s6611_s27 + $0x400] ss:$8 sps:$4 sm:$0xff]   ;;  %v5873_v22 = vld [vmem:[%s6611_s27 + $0x410] ss:$8 sps:$4 sm:$0xff]   ;;  %v5874_v23 = vld [vmem:[%s6611_s27 + $0x24] ss:$8 sps:$4 sm:$0xff]  }
  0x84   : > { %2123 = vmatprep.subr.bf16.mxu0 %v6412_v0  ;;  %5766 = vmatprep.subr.bf16.mxu1 %v6412_v0  ;;  %v5876_v24 = vld [vmem:[%s6611_s27 + $0x424] ss:$8 sps:$4 sm:$0xff]   ;;  %v5878_v25 = vld [vmem:[%s6611_s27 + $0x20] ss:$8 sps:$4 sm:$0xff]   ;;  %v5880_v27 = vld [vmem:[%s6611_s27 + $0x34] ss:$8 sps:$4 sm:$0xff]  }
  0x85   : > { %v5879_v26 = vld [vmem:[%s6611_s27 + $0x420] ss:$8 sps:$4 sm:$0xff]   ;;  %v5882_v28 = vld [vmem:[%s6611_s27 + $0x434] ss:$8 sps:$4 sm:$0xff]   ;;  %v5884_v29 = vld [vmem:[%s6611_s27 + $0x30] ss:$8 sps:$4 sm:$0xff]  }
  0x86   : > { %v5885_v30 = vld [vmem:[%s6611_s27 + $0x430] ss:$8 sps:$4 sm:$0xff]   ;;  %v5886_v31 = vld [vmem:[%s6611_s27 + $0x44] ss:$8 sps:$4 sm:$0xff]   ;;  %v5890_v33 = vld [vmem:[%s6611_s27 + $0x40] ss:$8 sps:$4 sm:$0xff]  }
  0x87   : > { %2124 = vmatpush1.bf16.msra.mxu0 %v5854_v3  ;;  %5776 = vmatpush1.bf16.msra.mxu1 %v5854_v3  ;;  %v5888_v32 = vld [vmem:[%s6611_s27 + $0x444] ss:$8 sps:$4 sm:$0xff]   ;;  %v5891_v34 = vld [vmem:[%s6611_s27 + $0x440] ss:$8 sps:$4 sm:$0xff]   ;;  %v5892_v35 = vld [vmem:[%s6611_s27 + $0x54] ss:$8 sps:$4 sm:$0xff]  }
  0x88   : > { %2125 = vmatprep.subr.bf16.mxu0 %v6412_v0  ;;  %5767 = vmatprep.subr.bf16.mxu1 %v6412_v0  ;;  %v5894_v36 = vld [vmem:[%s6611_s27 + $0x454] ss:$8 sps:$4 sm:$0xff]   ;;  %v5896_v37 = vld [vmem:[%s6611_s27 + $0x50] ss:$8 sps:$4 sm:$0xff]   ;;  %v5898_v39 = vld [vmem:[%s6611_s27 + $0x64] ss:$8 sps:$4 sm:$0xff]  }
  0x89   : > { %v5897_v38 = vld [vmem:[%s6611_s27 + $0x450] ss:$8 sps:$4 sm:$0xff]   ;;  %v5900_v40 = vld [vmem:[%s6611_s27 + $0x464] ss:$8 sps:$4 sm:$0xff]   ;;  %v5902_v41 = vld [vmem:[%s6611_s27 + $0x60] ss:$8 sps:$4 sm:$0xff]  }
  0x8a   : > { %v5903_v42 = vld [vmem:[%s6611_s27 + $0x460] ss:$8 sps:$4 sm:$0xff]   ;;  %v5904_v43 = vld [vmem:[%s6611_s27 + $0x74] ss:$8 sps:$4 sm:$0xff]   ;;  %v5908_v45 = vld [vmem:[%s6611_s27 + $0x70] ss:$8 sps:$4 sm:$0xff]  }
  0x8b   : > { %2126 = vmatpush1.bf16.msra.mxu0 %v5855_v4  ;;  %5777 = vmatpush1.bf16.msra.mxu1 %v5855_v4  ;;  %v5906_v44 = vld [vmem:[%s6611_s27 + $0x474] ss:$8 sps:$4 sm:$0xff]   ;;  %v5909_v46 = vld [vmem:[%s6611_s27 + $0x470] ss:$8 sps:$4 sm:$0xff]   ;;  %v5910_v47 = vld [vmem:[%s6611_s27 + $0x84] ss:$8 sps:$4 sm:$0xff]  }
  0x8c   : > { %2127 = vmatprep.subr.bf16.mxu0 %v6412_v0  ;;  %5768 = vmatprep.subr.bf16.mxu1 %v6412_v0  ;;  %v5912_v48 = vld [vmem:[%s6611_s27 + $0x484] ss:$8 sps:$4 sm:$0xff]   ;;  %v5914_v49 = vld [vmem:[%s6611_s27 + $0x80] ss:$8 sps:$4 sm:$0xff]   ;;  %v5916_v51 = vld [vmem:[%s6611_s27 + $0x94] ss:$8 sps:$4 sm:$0xff]  }
  0x8d   : > { %v5915_v50 = vld [vmem:[%s6611_s27 + $0x480] ss:$8 sps:$4 sm:$0xff]   ;;  %v5918_v52 = vld [vmem:[%s6611_s27 + $0x494] ss:$8 sps:$4 sm:$0xff]   ;;  %v5920_v53 = vld [vmem:[%s6611_s27 + $0x90] ss:$8 sps:$4 sm:$0xff]  }
  0x8e   : > { %v5921_v54 = vld [vmem:[%s6611_s27 + $0x490] ss:$8 sps:$4 sm:$0xff]   ;;  %v5922_v55 = vld [vmem:[%s6611_s27 + $0xa4] ss:$8 sps:$4 sm:$0xff]   ;;  %v5926_v57 = vld [vmem:[%s6611_s27 + $0xa0] ss:$8 sps:$4 sm:$0xff]  }
  0x8f   : > { %2128 = vmatpush1.bf16.msra.mxu0 %v5856_v7  ;;  %5778 = vmatpush1.bf16.msra.mxu1 %v5856_v7  ;;  %v5924_v56 = vld [vmem:[%s6611_s27 + $0x4a4] ss:$8 sps:$4 sm:$0xff]   ;;  %v5927_v58 = vld [vmem:[%s6611_s27 + $0x4a0] ss:$8 sps:$4 sm:$0xff]   ;;  %v5928_v59 = vld [vmem:[%s6611_s27 + $0xb4] ss:$8 sps:$4 sm:$0xff]  }
  0x90   : > { %2129 = vmatprep.subr.bf16.mxu0 %v6412_v0  ;;  %5769 = vmatprep.subr.bf16.mxu1 %v6412_v0  ;;  %v5930_v60 = vld [vmem:[%s6611_s27 + $0x4b4] ss:$8 sps:$4 sm:$0xff]   ;;  %v5932_v61 = vld [vmem:[%s6611_s27 + $0xb0] ss:$8 sps:$4 sm:$0xff]   ;;  %v5934_v63 = vld [vmem:[%s6611_s27 + $0xc4] ss:$8 sps:$4 sm:$0xff]  }
  0x91   : > { %v5933_v62 = vld [vmem:[%s6611_s27 + $0x4b0] ss:$8 sps:$4 sm:$0xff]   ;;  %v5938_v1 = vld [vmem:[%s6611_s27 + $0xc0] ss:$8 sps:$4 sm:$0xff]   ;;  %v5940_v3 = vld [vmem:[%s6611_s27 + $0xd4] ss:$8 sps:$4 sm:$0xff]  }
  0x92   : > { %v5939_v2 = vld [vmem:[%s6611_s27 + $0x4c0] ss:$8 sps:$4 sm:$0xff]   ;;  %v5942_v4 = vld [vmem:[%s6611_s27 + $0x4d4] ss:$8 sps:$4 sm:$0xff]   ;;  %v5944_v5 = vld [vmem:[%s6611_s27 + $0xd0] ss:$8 sps:$4 sm:$0xff]  }
  0x93   : > { %2130 = vmatpush1.bf16.msra.mxu0 %v5857_v8  ;;  %5779 = vmatpush1.bf16.msra.mxu1 %v5857_v8  ;;  %v5945_v6 = vld [vmem:[%s6611_s27 + $0x4d0] ss:$8 sps:$4 sm:$0xff]   ;;  %v5946_v7 = vld [vmem:[%s6611_s27 + $0xe4] ss:$8 sps:$4 sm:$0xff]   ;;  %v5952_v11 = vld [vmem:[%s6611_s27 + $0xf4] ss:$8 sps:$4 sm:$0xff]  }
  0x94   : > { %2131 = vmatprep.subr.bf16.mxu0 %v6412_v0  ;;  %5770 = vmatprep.subr.bf16.mxu1 %v6412_v0  ;;  %v5948_v8 = vld [vmem:[%s6611_s27 + $0x4e4] ss:$8 sps:$4 sm:$0xff]   ;;  %v5954_v12 = vld [vmem:[%s6611_s27 + $0x4f4] ss:$8 sps:$4 sm:$0xff]   ;;  %v5957_v14 = vld [vmem:[%s6611_s27 + $0x4f0] ss:$8 sps:$4 sm:$0xff]  }
  0x95   : > { %v5958_v15 = vld [vmem:[%s6611_s27 + $0x104] ss:$8 sps:$4 sm:$0xff]   ;;  %s4714_s29 = scalar_lea.sflag [#allocation4], %s6607_s17  ;;  %p7864_p8 = scmp.ne.s32.totalorder %s7855_s24, 0 }
  0x96   : > { %s5496_s8 = sshll.u32 (%p7864_p8), %s6458_s16, 8 }
  0x97   : > { %2132 = vmatpush1.bf16.msra.mxu0 %v5858_v9  ;;  %5780 = vmatpush1.bf16.msra.mxu1 %v5858_v9  ;;  %v5950_v9 = vld [vmem:[%s6611_s27 + $0xe0] ss:$8 sps:$4 sm:$0xff]   ;;  %s4722_s11 = ssub.s32 (%p7864_p8), 3136, %s5496_s8 }
  0x98   : > { %2133 = vmatprep.subr.bf16.mxu0 %v6412_v0  ;;  %5771 = vmatprep.subr.bf16.mxu1 %v6412_v0  ;;  %p4723_p9 = scmp.lt.s32.totalorder (%p7864_p8), %s4722_s11, 256 }
  0x9b   : > { %2134 = vmatpush1.bf16.msra.mxu0 %v5859_v10  ;;  %5781 = vmatpush1.bf16.msra.mxu1 %v5859_v10  ;;  %v5951_v10 = vld [vmem:[%s6611_s27 + $0x4e0] ss:$8 sps:$4 sm:$0xff]  }
  0x9c   : > { %2135 = vmatprep.subr.bf16.mxu0 %v6412_v0  ;;  %5772 = vmatprep.subr.bf16.mxu1 %v6412_v0 }
  0x9f   : > { %2136 = vmatpush1.bf16.msra.mxu0 %v5860_v13  ;;  %5782 = vmatpush1.bf16.msra.mxu1 %v5860_v13  ;;  %v5956_v13 = vld [vmem:[%s6611_s27 + $0xf0] ss:$8 sps:$4 sm:$0xff]  }
  0xa0   : > { %2137 = vmatprep.subr.bf16.mxu0 %v6412_v0  ;;  %5773 = vmatprep.subr.bf16.mxu1 %v6412_v0  ;;  %v5936_v0 = vld [vmem:[%s6611_s27 + $0x4c4] ss:$8 sps:$4 sm:$0xff]  }
  0xa3   : > { %2138 = vmatpush1.bf16.msra.mxu0 %v2117_v16  ;;  %5783 = vmatpush1.bf16.msra.mxu1 %v2117_v16  ;;  %v5960_v16 = vld [vmem:[%s6611_s27 + $0x504] ss:$8 sps:$4 sm:$0xff]  }
  0xa6   : > { %2152 = vmatmul.mubr.bf16.vlgmr.msra.gmra.mrb[0].mxu0 %v5862_v17  ;;  %2664 = vmatmul.mubr.bf16.vlgmr.msra.gmra.mrb[0].mxu1 %v5865_v18  ;;  %v5962_v17 = vld [vmem:[%s6611_s27 + $0x100] ss:$8 sps:$4 sm:$0xff]  }
  0xa7   : > { %5112 = vmatprep.mubr.msk.bf16.mxu0 %vm1727_vm0, %v5868_v19  ;;  %5176 = vmatprep.mubr.msk.bf16.mxu1 %vm1727_vm0, %v5870_v20  ;;  %v5963_v18 = vld [vmem:[%s6611_s27 + $0x500] ss:$8 sps:$4 sm:$0xff]   ;;  %v5964_v19 = vld [vmem:[%s6611_s27 + $0x114] ss:$8 sps:$4 sm:$0xff]  }
  0xa8   : > { %v5966_v20 = vld [vmem:[%s6611_s27 + $0x514] ss:$8 sps:$4 sm:$0xff]  }
  0xae   : > { %2160 = vmatmul.mubr.bf16.gmra.mrb[4].mxu0 %v5872_v21  ;;  %2672 = vmatmul.mubr.bf16.gmra.mrb[4].mxu1 %v5873_v22  ;;  %v5968_v21 = vld [vmem:[%s6611_s27 + $0x110] ss:$8 sps:$4 sm:$0xff]  }
  0xaf   : > { %5113 = vmatprep.mubr.msk.bf16.mxu0 %vm1727_vm0, %v5874_v23  ;;  %5177 = vmatprep.mubr.msk.bf16.mxu1 %vm1727_vm0, %v5876_v24  ;;  %v5969_v22 = vld [vmem:[%s6611_s27 + $0x510] ss:$8 sps:$4 sm:$0xff]   ;;  %v5970_v23 = vld [vmem:[%s6611_s27 + $0x124] ss:$8 sps:$4 sm:$0xff]  }
  0xb0   : > { %v5972_v24 = vld [vmem:[%s6611_s27 + $0x524] ss:$8 sps:$4 sm:$0xff]  }
  0xb6   : > { %2168 = vmatmul.mubr.bf16.gmra.mrb[8].mxu0 %v5878_v25  ;;  %2680 = vmatmul.mubr.bf16.gmra.mrb[8].mxu1 %v5879_v26  ;;  %v5974_v25 = vld [vmem:[%s6611_s27 + $0x120] ss:$8 sps:$4 sm:$0xff]  }
  0xb7   : > { %5114 = vmatprep.mubr.msk.bf16.mxu0 %vm1727_vm0, %v5880_v27  ;;  %5178 = vmatprep.mubr.msk.bf16.mxu1 %vm1727_vm0, %v5882_v28  ;;  %v5975_v26 = vld [vmem:[%s6611_s27 + $0x520] ss:$8 sps:$4 sm:$0xff]   ;;  %v5976_v27 = vld [vmem:[%s6611_s27 + $0x134] ss:$8 sps:$4 sm:$0xff]  }
  0xb8   : > { %v5978_v28 = vld [vmem:[%s6611_s27 + $0x534] ss:$8 sps:$4 sm:$0xff]  }
  0xbe   : > { %2176 = vmatmul.mubr.bf16.gmra.mrb[12].mxu0 %v5884_v29  ;;  %2688 = vmatmul.mubr.bf16.gmra.mrb[12].mxu1 %v5885_v30  ;;  %v5980_v29 = vld [vmem:[%s6611_s27 + $0x130] ss:$8 sps:$4 sm:$0xff]  }
  0xbf   : > { %5115 = vmatprep.mubr.msk.bf16.mxu0 %vm1727_vm0, %v5886_v31  ;;  %5179 = vmatprep.mubr.msk.bf16.mxu1 %vm1727_vm0, %v5888_v32  ;;  %v5981_v30 = vld [vmem:[%s6611_s27 + $0x530] ss:$8 sps:$4 sm:$0xff]   ;;  %v5982_v31 = vld [vmem:[%s6611_s27 + $0x144] ss:$8 sps:$4 sm:$0xff]  }
  0xc0   : > { %v5984_v32 = vld [vmem:[%s6611_s27 + $0x544] ss:$8 sps:$4 sm:$0xff]  }
  0xc6   : > { %2184 = vmatmul.mubr.bf16.gmra.mrb[16].mxu0 %v5890_v33  ;;  %2696 = vmatmul.mubr.bf16.gmra.mrb[16].mxu1 %v5891_v34  ;;  %v5986_v33 = vld [vmem:[%s6611_s27 + $0x140] ss:$8 sps:$4 sm:$0xff]  }
  0xc7   : > { %5116 = vmatprep.mubr.msk.bf16.mxu0 %vm1727_vm0, %v5892_v35  ;;  %5180 = vmatprep.mubr.msk.bf16.mxu1 %vm1727_vm0, %v5894_v36  ;;  %v5987_v34 = vld [vmem:[%s6611_s27 + $0x540] ss:$8 sps:$4 sm:$0xff]   ;;  %v5988_v35 = vld [vmem:[%s6611_s27 + $0x154] ss:$8 sps:$4 sm:$0xff]  }
  0xc8   : > { %v5990_v36 = vld [vmem:[%s6611_s27 + $0x554] ss:$8 sps:$4 sm:$0xff]  }
  0xce   : > { %2192 = vmatmul.mubr.bf16.gmra.mrb[20].mxu0 %v5896_v37  ;;  %2704 = vmatmul.mubr.bf16.gmra.mrb[20].mxu1 %v5897_v38  ;;  %v5992_v37 = vld [vmem:[%s6611_s27 + $0x150] ss:$8 sps:$4 sm:$0xff]  }
  0xcf   : > { %5117 = vmatprep.mubr.msk.bf16.mxu0 %vm1727_vm0, %v5898_v39  ;;  %5181 = vmatprep.mubr.msk.bf16.mxu1 %vm1727_vm0, %v5900_v40  ;;  %v5993_v38 = vld [vmem:[%s6611_s27 + $0x550] ss:$8 sps:$4 sm:$0xff]   ;;  %v5994_v39 = vld [vmem:[%s6611_s27 + $0x164] ss:$8 sps:$4 sm:$0xff]  }
  0xd0   : > { %v5996_v40 = vld [vmem:[%s6611_s27 + $0x564] ss:$8 sps:$4 sm:$0xff]  }
  0xd6   : > { %2200 = vmatmul.mubr.bf16.gmra.mrb[24].mxu0 %v5902_v41  ;;  %2712 = vmatmul.mubr.bf16.gmra.mrb[24].mxu1 %v5903_v42  ;;  %v5998_v41 = vld [vmem:[%s6611_s27 + $0x160] ss:$8 sps:$4 sm:$0xff]  }
  0xd7   : > { %5118 = vmatprep.mubr.msk.bf16.mxu0 %vm1727_vm0, %v5904_v43  ;;  %5182 = vmatprep.mubr.msk.bf16.mxu1 %vm1727_vm0, %v5906_v44  ;;  %v5999_v42 = vld [vmem:[%s6611_s27 + $0x560] ss:$8 sps:$4 sm:$0xff]   ;;  %v6000_v43 = vld [vmem:[%s6611_s27 + $0x174] ss:$8 sps:$4 sm:$0xff]  }
  0xd8   : > { %v6002_v44 = vld [vmem:[%s6611_s27 + $0x574] ss:$8 sps:$4 sm:$0xff]  }
  0xde   : > { %2208 = vmatmul.mubr.bf16.gmra.mrb[28].mxu0 %v5908_v45  ;;  %2720 = vmatmul.mubr.bf16.gmra.mrb[28].mxu1 %v5909_v46  ;;  %v6004_v45 = vld [vmem:[%s6611_s27 + $0x170] ss:$8 sps:$4 sm:$0xff]  }
  0xdf   : > { %5119 = vmatprep.mubr.msk.bf16.mxu0 %vm1727_vm0, %v5910_v47  ;;  %5183 = vmatprep.mubr.msk.bf16.mxu1 %vm1727_vm0, %v5912_v48  ;;  %v6005_v46 = vld [vmem:[%s6611_s27 + $0x570] ss:$8 sps:$4 sm:$0xff]   ;;  %v6006_v47 = vld [vmem:[%s6611_s27 + $0x184] ss:$8 sps:$4 sm:$0xff]  }
  0xe0   : > { %v6008_v48 = vld [vmem:[%s6611_s27 + $0x584] ss:$8 sps:$4 sm:$0xff]  }
  0xe6   : > { %2216 = vmatmul.mubr.bf16.gmra.mrb[32].mxu0 %v5914_v49  ;;  %2728 = vmatmul.mubr.bf16.gmra.mrb[32].mxu1 %v5915_v50  ;;  %v6010_v49 = vld [vmem:[%s6611_s27 + $0x180] ss:$8 sps:$4 sm:$0xff]  }
  0xe7   : > { %5120 = vmatprep.mubr.msk.bf16.mxu0 %vm1727_vm0, %v5916_v51  ;;  %5184 = vmatprep.mubr.msk.bf16.mxu1 %vm1727_vm0, %v5918_v52  ;;  %v6011_v50 = vld [vmem:[%s6611_s27 + $0x580] ss:$8 sps:$4 sm:$0xff]   ;;  %v6012_v51 = vld [vmem:[%s6611_s27 + $0x194] ss:$8 sps:$4 sm:$0xff]  }
  0xe8   : > { %v6014_v52 = vld [vmem:[%s6611_s27 + $0x594] ss:$8 sps:$4 sm:$0xff]  }
  0xee   : > { %2224 = vmatmul.mubr.bf16.gmra.mrb[36].mxu0 %v5920_v53  ;;  %2736 = vmatmul.mubr.bf16.gmra.mrb[36].mxu1 %v5921_v54  ;;  %v6016_v53 = vld [vmem:[%s6611_s27 + $0x190] ss:$8 sps:$4 sm:$0xff]  }
  0xef   : > { %5121 = vmatprep.mubr.msk.bf16.mxu0 %vm1727_vm0, %v5922_v55  ;;  %5185 = vmatprep.mubr.msk.bf16.mxu1 %vm1727_vm0, %v5924_v56  ;;  %v6017_v54 = vld [vmem:[%s6611_s27 + $0x590] ss:$8 sps:$4 sm:$0xff]   ;;  %v6018_v55 = vld [vmem:[%s6611_s27 + $0x1a4] ss:$8 sps:$4 sm:$0xff]  }
  0xf0   : > { %v6020_v56 = vld [vmem:[%s6611_s27 + $0x5a4] ss:$8 sps:$4 sm:$0xff]  }
  0xf6   : > { %2232 = vmatmul.mubr.bf16.gmra.mrb[40].mxu0 %v5926_v57  ;;  %2744 = vmatmul.mubr.bf16.gmra.mrb[40].mxu1 %v5927_v58  ;;  %v6022_v57 = vld [vmem:[%s6611_s27 + $0x1a0] ss:$8 sps:$4 sm:$0xff]  }
  0xf7   : > { %5122 = vmatprep.mubr.msk.bf16.mxu0 %vm1727_vm0, %v5928_v59  ;;  %5186 = vmatprep.mubr.msk.bf16.mxu1 %vm1727_vm0, %v5930_v60  ;;  %v6023_v58 = vld [vmem:[%s6611_s27 + $0x5a0] ss:$8 sps:$4 sm:$0xff]   ;;  %v6024_v59 = vld [vmem:[%s6611_s27 + $0x1b4] ss:$8 sps:$4 sm:$0xff]  }
  0xf8   : > { %v6026_v60 = vld [vmem:[%s6611_s27 + $0x5b4] ss:$8 sps:$4 sm:$0xff]  }
  0xfe   : > { %2240 = vmatmul.mubr.bf16.gmra.mrb[44].mxu0 %v5932_v61  ;;  %2752 = vmatmul.mubr.bf16.gmra.mrb[44].mxu1 %v5933_v62  ;;  %v6785_v61 = vld [vmem:[#allocation7] ss:$0 sm:$0xff] }
  0xff   : > { %5123 = vmatprep.mubr.msk.bf16.mxu0 %vm1727_vm0, %v5934_v63  ;;  %5187 = vmatprep.mubr.msk.bf16.mxu1 %vm1727_vm0, %v5936_v0 }
 0x106   : > { %2248 = vmatmul.mubr.bf16.gmra.mrb[48].mxu0 %v5938_v1  ;;  %2760 = vmatmul.mubr.bf16.gmra.mrb[48].mxu1 %v5939_v2 }
 0x107   : > { %5124 = vmatprep.mubr.msk.bf16.mxu0 %vm1727_vm0, %v5940_v3  ;;  %5188 = vmatprep.mubr.msk.bf16.mxu1 %vm1727_vm0, %v5942_v4  ;;  %v6028_v4 = vld [vmem:[%s6611_s27 + $0x1b0] ss:$8 sps:$4 sm:$0xff]  }
 0x10e   : > { %2256 = vmatmul.mubr.bf16.gmra.mrb[52].mxu0 %v5944_v5  ;;  %2768 = vmatmul.mubr.bf16.gmra.mrb[52].mxu1 %v5945_v6  ;;  %v6029_v5 = vld [vmem:[%s6611_s27 + $0x5b0] ss:$8 sps:$4 sm:$0xff]  }
 0x10f   : > { %5125 = vmatprep.mubr.msk.bf16.mxu0 %vm1727_vm0, %v5946_v7  ;;  %5189 = vmatprep.mubr.msk.bf16.mxu1 %vm1727_vm0, %v5948_v8  ;;  %v6030_v8 = vld [vmem:[%s6611_s27 + $0x1c4] ss:$8 sps:$4 sm:$0xff]  }
 0x116   : > { %2264 = vmatmul.mubr.bf16.gmra.mrb[56].mxu0 %v5950_v9  ;;  %2776 = vmatmul.mubr.bf16.gmra.mrb[56].mxu1 %v5951_v10  ;;  %v6032_v9 = vld [vmem:[%s6611_s27 + $0x5c4] ss:$8 sps:$4 sm:$0xff]  }
 0x117   : > { %5126 = vmatprep.mubr.msk.bf16.mxu0 %vm1727_vm0, %v5952_v11  ;;  %5190 = vmatprep.mubr.msk.bf16.mxu1 %vm1727_vm0, %v5954_v12 }
 0x11e   : > { %2272 = vmatmul.mubr.bf16.gmra.mrb[60].mxu0 %v5956_v13  ;;  %2784 = vmatmul.mubr.bf16.gmra.mrb[60].mxu1 %v5957_v14 }
 0x11f   : > { %5127 = vmatprep.mubr.msk.bf16.mxu0 %vm1727_vm0, %v5958_v15  ;;  %5191 = vmatprep.mubr.msk.bf16.mxu1 %vm1727_vm0, %v5960_v16 }
 0x126   : > { %2280 = vmatmul.mubr.bf16.gmra.mrb[64].mxu0 %v5962_v17  ;;  %2792 = vmatmul.mubr.bf16.gmra.mrb[64].mxu1 %v5963_v18 }
 0x127   : > { %5128 = vmatprep.mubr.msk.bf16.mxu0 %vm1727_vm0, %v5964_v19  ;;  %5192 = vmatprep.mubr.msk.bf16.mxu1 %vm1727_vm0, %v5966_v20 }
 0x12e   : > { %2288 = vmatmul.mubr.bf16.gmra.mrb[68].mxu0 %v5968_v21  ;;  %2800 = vmatmul.mubr.bf16.gmra.mrb[68].mxu1 %v5969_v22 }
 0x12f   : > { %5129 = vmatprep.mubr.msk.bf16.mxu0 %vm1727_vm0, %v5970_v23  ;;  %5193 = vmatprep.mubr.msk.bf16.mxu1 %vm1727_vm0, %v5972_v24 }
 0x136   : > { %2296 = vmatmul.mubr.bf16.gmra.mrb[72].mxu0 %v5974_v25  ;;  %2808 = vmatmul.mubr.bf16.gmra.mrb[72].mxu1 %v5975_v26 }
 0x137   : > { %5130 = vmatprep.mubr.msk.bf16.mxu0 %vm1727_vm0, %v5976_v27  ;;  %5194 = vmatprep.mubr.msk.bf16.mxu1 %vm1727_vm0, %v5978_v28  ;;  %v6034_v28 = vld [vmem:[%s6611_s27 + $0x1c0] ss:$8 sps:$4 sm:$0xff]  }
 0x13e   : > { %2304 = vmatmul.mubr.bf16.gmra.mrb[76].mxu0 %v5980_v29  ;;  %2816 = vmatmul.mubr.bf16.gmra.mrb[76].mxu1 %v5981_v30  ;;  %v6035_v29 = vld [vmem:[%s6611_s27 + $0x5c0] ss:$8 sps:$4 sm:$0xff]  }
 0x13f   : > { %5131 = vmatprep.mubr.msk.bf16.mxu0 %vm1727_vm0, %v5982_v31  ;;  %5195 = vmatprep.mubr.msk.bf16.mxu1 %vm1727_vm0, %v5984_v32  ;;  %v6036_v32 = vld [vmem:[%s6611_s27 + $0x1d4] ss:$8 sps:$4 sm:$0xff]  }
 0x146   : > { %2312 = vmatmul.mubr.bf16.gmra.mrb[80].mxu0 %v5986_v33  ;;  %2824 = vmatmul.mubr.bf16.gmra.mrb[80].mxu1 %v5987_v34  ;;  %v6038_v33 = vld [vmem:[%s6611_s27 + $0x5d4] ss:$8 sps:$4 sm:$0xff]  }
 0x147   : > { %5132 = vmatprep.mubr.msk.bf16.mxu0 %vm1727_vm0, %v5988_v35  ;;  %5196 = vmatprep.mubr.msk.bf16.mxu1 %vm1727_vm0, %v5990_v36 }
 0x14e   : > { %2320 = vmatmul.mubr.bf16.gmra.mrb[84].mxu0 %v5992_v37  ;;  %2832 = vmatmul.mubr.bf16.gmra.mrb[84].mxu1 %v5993_v38 }
 0x14f   : > { %5133 = vmatprep.mubr.msk.bf16.mxu0 %vm1727_vm0, %v5994_v39  ;;  %5197 = vmatprep.mubr.msk.bf16.mxu1 %vm1727_vm0, %v5996_v40 }
 0x156   : > { %2328 = vmatmul.mubr.bf16.gmra.mrb[88].mxu0 %v5998_v41  ;;  %2840 = vmatmul.mubr.bf16.gmra.mrb[88].mxu1 %v5999_v42 }
 0x157   : > { %5134 = vmatprep.mubr.msk.bf16.mxu0 %vm1727_vm0, %v6000_v43  ;;  %5198 = vmatprep.mubr.msk.bf16.mxu1 %vm1727_vm0, %v6002_v44 }
 0x15e   : > { %2336 = vmatmul.mubr.bf16.gmra.mrb[92].mxu0 %v6004_v45  ;;  %2848 = vmatmul.mubr.bf16.gmra.mrb[92].mxu1 %v6005_v46 }
 0x15f   : > { %5135 = vmatprep.mubr.msk.bf16.mxu0 %vm1727_vm0, %v6006_v47  ;;  %5199 = vmatprep.mubr.msk.bf16.mxu1 %vm1727_vm0, %v6008_v48 }
 0x166   : > { %2344 = vmatmul.mubr.bf16.gmra.mrb[96].mxu0 %v6010_v49  ;;  %2856 = vmatmul.mubr.bf16.gmra.mrb[96].mxu1 %v6011_v50 }
 0x167   : > { %5136 = vmatprep.mubr.msk.bf16.mxu0 %vm1727_vm0, %v6012_v51  ;;  %5200 = vmatprep.mubr.msk.bf16.mxu1 %vm1727_vm0, %v6014_v52  ;;  %v6040_v52 = vld [vmem:[%s6611_s27 + $0x1d0] ss:$8 sps:$4 sm:$0xff]  }
 0x16e   : > { %2352 = vmatmul.mubr.bf16.gmra.mrb[100].mxu0 %v6016_v53  ;;  %2864 = vmatmul.mubr.bf16.gmra.mrb[100].mxu1 %v6017_v54  ;;  %v6041_v53 = vld [vmem:[%s6611_s27 + $0x5d0] ss:$8 sps:$4 sm:$0xff]  }
 0x16f   : > { %5137 = vmatprep.mubr.msk.bf16.mxu0 %vm1727_vm0, %v6018_v55  ;;  %5201 = vmatprep.mubr.msk.bf16.mxu1 %vm1727_vm0, %v6020_v56  ;;  %v6042_v56 = vld [vmem:[%s6611_s27 + $0x1e4] ss:$8 sps:$4 sm:$0xff]  }
 0x176   : > { %2360 = vmatmul.mubr.bf16.gmra.mrb[104].mxu0 %v6022_v57  ;;  %2872 = vmatmul.mubr.bf16.gmra.mrb[104].mxu1 %v6023_v58  ;;  %v6044_v57 = vld [vmem:[%s6611_s27 + $0x5e4] ss:$8 sps:$4 sm:$0xff]  }
 0x177   : > { %5138 = vmatprep.mubr.msk.bf16.mxu0 %vm1727_vm0, %v6024_v59  ;;  %5202 = vmatprep.mubr.msk.bf16.mxu1 %vm1727_vm0, %v6026_v60 }
 0x179   : > { %v2153_v62 = vpop.f32.mrb[0].mxu0  ;;  %v2665_v63 = vpop.f32.mrb[0].mxu1 }
 0x17a   : > { %v2154_v0 = vadd.f32 %v6785_v61, %v2153_v62  ;;  %v2666_v1 = vadd.f32 %v6785_v61, %v2665_v63  ;;  %v2155_v2 = vpop.f32.mrb[1].mxu0  ;;  %v2667_v3 = vpop.f32.mrb[1].mxu1 }
 0x17b   : > { %v2156_v6 = vpop.f32.mrb[2].mxu0  ;;  %v2668_v7 = vpop.f32.mrb[2].mxu1 }
 0x17c   : > { %v3176_v10 = vmax.f32 %v2154_v0, 0.0  ;;  %v3304_v11 = vmax.f32 %v2666_v1, 0.0  ;;  %v2157_v12 = vadd.f32 %v6785_v61, %v2156_v6  ;;  %v2669_v13 = vadd.f32 %v6785_v61, %v2668_v7  ;;  %v2158_v14 = vpop.f32.mrb[3].mxu0  ;;  %v2670_v15 = vpop.f32.mrb[3].mxu1 }
 0x17d   : > { %v6047_v14 = vld [vmem:[%s6611_s27 + $0x5e0] ss:$8 sps:$4 sm:$0xff]  }
 0x17e   : > { %v5507_v16 = vpack.c.bf16 %v3176_v10, %v3176_v10  ;;  %v5635_v17 = vpack.c.bf16 %v3304_v11, %v3304_v11  ;;  %v3177_v18 = vmax.f32 %v2157_v12, 0.0  ;;  %v3305_v19 = vmax.f32 %v2669_v13, 0.0  ;;  %2368 = vmatmul.mubr.bf16.gmra.mrb[108].mxu0 %v6028_v4  ;;  %2880 = vmatmul.mubr.bf16.gmra.mrb[108].mxu1 %v6029_v5  ;;  %v6046_v13 = vld [vmem:[%s6611_s27 + $0x1e0] ss:$8 sps:$4 sm:$0xff]  }
 0x17f   : > { %5139 = vmatprep.mubr.msk.bf16.mxu0 %vm1727_vm0, %v6030_v8  ;;  %5203 = vmatprep.mubr.msk.bf16.mxu1 %vm1727_vm0, %v6032_v9 }
 0x180   : > { %4457 = vst.msk [vmem:[%s6800_s26] sm:$0xf] %vm4456_vm3, %v5507_v16  ;;  %4585 = vst.msk [vmem:[%s6800_s26 + $0x200] sm:$0xf] %vm4456_vm3, %v5635_v17  ;;  %v5508_v20 = vpack.c.bf16 %v3177_v18, %v3177_v18  ;;  %v5636_v21 = vpack.c.bf16 %v3305_v19, %v3305_v19  ;;  %v6048_v17 = vld [vmem:[%s6611_s27 + $0x1f4] ss:$8 sps:$4 sm:$0xff]  }
 0x181   : > { %v2161_v22 = vpop.f32.mrb[4].mxu0  ;;  %v2673_v23 = vpop.f32.mrb[4].mxu1  ;;  %v6050_v18 = vld [vmem:[%s6611_s27 + $0x5f4] ss:$8 sps:$4 sm:$0xff]  }
 0x182   : > { %4458 = vst.msk [vmem:[%s6800_s26 + $0x4] sm:$0xf] %vm4456_vm3, %v5508_v20  ;;  %4586 = vst.msk [vmem:[%s6800_s26 + $0x204] sm:$0xf] %vm4456_vm3, %v5636_v21  ;;  %v2162_v24 = vadd.f32 %v6785_v61, %v2161_v22  ;;  %v2674_v25 = vadd.f32 %v6785_v61, %v2673_v23  ;;  %v2163_v26 = vpop.f32.mrb[5].mxu0  ;;  %v2675_v27 = vpop.f32.mrb[5].mxu1 }
 0x183   : > { %v2164_v30 = vpop.f32.mrb[6].mxu0  ;;  %v2676_v31 = vpop.f32.mrb[6].mxu1 }
 0x184   : > { %v3178_v34 = vmax.f32 %v2162_v24, 0.0  ;;  %v3306_v35 = vmax.f32 %v2674_v25, 0.0  ;;  %v2165_v36 = vadd.f32 %v6785_v61, %v2164_v30  ;;  %v2677_v37 = vadd.f32 %v6785_v61, %v2676_v31  ;;  %v2166_v38 = vpop.f32.mrb[7].mxu0  ;;  %v2678_v39 = vpop.f32.mrb[7].mxu1 }
 0x185   : > { %v6053_v38 = vld [vmem:[%s6611_s27 + $0x5f0] ss:$8 sps:$4 sm:$0xff]  }
 0x186   : > { %v5509_v40 = vpack.c.bf16 %v3178_v34, %v3178_v34  ;;  %v5637_v41 = vpack.c.bf16 %v3306_v35, %v3306_v35  ;;  %v3179_v42 = vmax.f32 %v2165_v36, 0.0  ;;  %v3307_v43 = vmax.f32 %v2677_v37, 0.0  ;;  %2376 = vmatmul.mubr.bf16.gmra.mrb[112].mxu0 %v6034_v28  ;;  %2888 = vmatmul.mubr.bf16.gmra.mrb[112].mxu1 %v6035_v29  ;;  %v6052_v37 = vld [vmem:[%s6611_s27 + $0x1f0] ss:$8 sps:$4 sm:$0xff]  }
 0x187   : > { %5140 = vmatprep.mubr.msk.bf16.mxu0 %vm1727_vm0, %v6036_v32  ;;  %5204 = vmatprep.mubr.msk.bf16.mxu1 %vm1727_vm0, %v6038_v33 }
 0x188   : > { %4459 = vst.msk [vmem:[%s6800_s26 + $0x8] sm:$0xf] %vm4456_vm3, %v5509_v40  ;;  %4587 = vst.msk [vmem:[%s6800_s26 + $0x208] sm:$0xf] %vm4456_vm3, %v5637_v41  ;;  %v5510_v44 = vpack.c.bf16 %v3179_v42, %v3179_v42  ;;  %v5638_v45 = vpack.c.bf16 %v3307_v43, %v3307_v43  ;;  %v6054_v41 = vld [vmem:[%s6611_s27 + $0x204] ss:$8 sps:$4 sm:$0xff]  }
 0x189   : > { %v2169_v46 = vpop.f32.mrb[8].mxu0  ;;  %v2681_v47 = vpop.f32.mrb[8].mxu1  ;;  %v6056_v42 = vld [vmem:[%s6611_s27 + $0x604] ss:$8 sps:$4 sm:$0xff]  }
 0x18a   : > { %4460 = vst.msk [vmem:[%s6800_s26 + $0xc] sm:$0xf] %vm4456_vm3, %v5510_v44  ;;  %4588 = vst.msk [vmem:[%s6800_s26 + $0x20c] sm:$0xf] %vm4456_vm3, %v5638_v45  ;;  %v2170_v48 = vadd.f32 %v6785_v61, %v2169_v46  ;;  %v2682_v49 = vadd.f32 %v6785_v61, %v2681_v47  ;;  %v2171_v50 = vpop.f32.mrb[9].mxu0  ;;  %v2683_v51 = vpop.f32.mrb[9].mxu1 }
 0x18b   : > { %v2172_v54 = vpop.f32.mrb[10].mxu0  ;;  %v2684_v55 = vpop.f32.mrb[10].mxu1 }
 0x18c   : > { %v3180_v58 = vmax.f32 %v2170_v48, 0.0  ;;  %v3308_v59 = vmax.f32 %v2682_v49, 0.0  ;;  %v2173_v60 = vadd.f32 %v6785_v61, %v2172_v54  ;;  %v2685_v62 = vadd.f32 %v6785_v61, %v2684_v55  ;;  %v2174_v63 = vpop.f32.mrb[11].mxu0  ;;  %v2686_v0 = vpop.f32.mrb[11].mxu1 }
 0x18d   : > { %v6059_v63 = vld [vmem:[%s6611_s27 + $0x600] ss:$8 sps:$4 sm:$0xff]  }
 0x18e   : > { %v5511_v1 = vpack.c.bf16 %v3180_v58, %v3180_v58  ;;  %v5639_v2 = vpack.c.bf16 %v3308_v59, %v3308_v59  ;;  %v3181_v3 = vmax.f32 %v2173_v60, 0.0  ;;  %v3309_v4 = vmax.f32 %v2685_v62, 0.0  ;;  %2384 = vmatmul.mubr.bf16.gmra.mrb[116].mxu0 %v6040_v52  ;;  %2896 = vmatmul.mubr.bf16.gmra.mrb[116].mxu1 %v6041_v53  ;;  %v6058_v62 = vld [vmem:[%s6611_s27 + $0x200] ss:$8 sps:$4 sm:$0xff]  }
 0x18f   : > { %5141 = vmatprep.mubr.msk.bf16.mxu0 %vm1727_vm0, %v6042_v56  ;;  %5205 = vmatprep.mubr.msk.bf16.mxu1 %vm1727_vm0, %v6044_v57 }
 0x190   : > { %4461 = vst.msk [vmem:[%s6800_s26 + $0x10] sm:$0xf] %vm4456_vm3, %v5511_v1  ;;  %4589 = vst.msk [vmem:[%s6800_s26 + $0x210] sm:$0xf] %vm4456_vm3, %v5639_v2  ;;  %v5512_v5 = vpack.c.bf16 %v3181_v3, %v3181_v3  ;;  %v5640_v6 = vpack.c.bf16 %v3309_v4, %v3309_v4  ;;  %v6060_v2 = vld [vmem:[%s6611_s27 + $0x214] ss:$8 sps:$4 sm:$0xff]  }
 0x191   : > { %v2177_v7 = vpop.f32.mrb[12].mxu0  ;;  %v2689_v8 = vpop.f32.mrb[12].mxu1  ;;  %v6062_v3 = vld [vmem:[%s6611_s27 + $0x614] ss:$8 sps:$4 sm:$0xff]  }
 0x192   : > { %4462 = vst.msk [vmem:[%s6800_s26 + $0x14] sm:$0xf] %vm4456_vm3, %v5512_v5  ;;  %4590 = vst.msk [vmem:[%s6800_s26 + $0x214] sm:$0xf] %vm4456_vm3, %v5640_v6  ;;  %v2178_v9 = vadd.f32 %v6785_v61, %v2177_v7  ;;  %v2690_v10 = vadd.f32 %v6785_v61, %v2689_v8  ;;  %v2179_v11 = vpop.f32.mrb[13].mxu0  ;;  %v2691_v12 = vpop.f32.mrb[13].mxu1 }
 0x193   : > { %v2180_v15 = vpop.f32.mrb[14].mxu0  ;;  %v2692_v16 = vpop.f32.mrb[14].mxu1 }
 0x194   : > { %v3182_v19 = vmax.f32 %v2178_v9, 0.0  ;;  %v3310_v20 = vmax.f32 %v2690_v10, 0.0  ;;  %v2181_v21 = vadd.f32 %v6785_v61, %v2180_v15  ;;  %v2693_v22 = vadd.f32 %v6785_v61, %v2692_v16  ;;  %v2182_v23 = vpop.f32.mrb[15].mxu0  ;;  %v2694_v24 = vpop.f32.mrb[15].mxu1 }
 0x195   : > { %v6065_v23 = vld [vmem:[%s6611_s27 + $0x610] ss:$8 sps:$4 sm:$0xff]  }
 0x196   : > { %v5513_v25 = vpack.c.bf16 %v3182_v19, %v3182_v19  ;;  %v5641_v26 = vpack.c.bf16 %v3310_v20, %v3310_v20  ;;  %v3183_v27 = vmax.f32 %v2181_v21, 0.0  ;;  %v3311_v28 = vmax.f32 %v2693_v22, 0.0  ;;  %2392 = vmatmul.mubr.bf16.gmra.mrb[120].mxu0 %v6046_v13  ;;  %2904 = vmatmul.mubr.bf16.gmra.mrb[120].mxu1 %v6047_v14  ;;  %v6064_v22 = vld [vmem:[%s6611_s27 + $0x210] ss:$8 sps:$4 sm:$0xff]  }
 0x197   : > { %5142 = vmatprep.mubr.msk.bf16.mxu0 %vm1727_vm0, %v6048_v17  ;;  %5206 = vmatprep.mubr.msk.bf16.mxu1 %vm1727_vm0, %v6050_v18 }
 0x198   : > { %4463 = vst.msk [vmem:[%s6800_s26 + $0x18] sm:$0xf] %vm4456_vm3, %v5513_v25  ;;  %4591 = vst.msk [vmem:[%s6800_s26 + $0x218] sm:$0xf] %vm4456_vm3, %v5641_v26  ;;  %v5514_v29 = vpack.c.bf16 %v3183_v27, %v3183_v27  ;;  %v5642_v30 = vpack.c.bf16 %v3311_v28, %v3311_v28  ;;  %v6066_v26 = vld [vmem:[%s6611_s27 + $0x224] ss:$8 sps:$4 sm:$0xff]  }
 0x199   : > { %v2185_v31 = vpop.f32.mrb[16].mxu0  ;;  %v2697_v32 = vpop.f32.mrb[16].mxu1  ;;  %v6068_v27 = vld [vmem:[%s6611_s27 + $0x624] ss:$8 sps:$4 sm:$0xff]  }
 0x19a   : > { %4464 = vst.msk [vmem:[%s6800_s26 + $0x1c] sm:$0xf] %vm4456_vm3, %v5514_v29  ;;  %4592 = vst.msk [vmem:[%s6800_s26 + $0x21c] sm:$0xf] %vm4456_vm3, %v5642_v30  ;;  %v2186_v33 = vadd.f32 %v6785_v61, %v2185_v31  ;;  %v2698_v34 = vadd.f32 %v6785_v61, %v2697_v32  ;;  %v2187_v35 = vpop.f32.mrb[17].mxu0  ;;  %v2699_v36 = vpop.f32.mrb[17].mxu1 }
 0x19b   : > { %v2188_v39 = vpop.f32.mrb[18].mxu0  ;;  %v2700_v40 = vpop.f32.mrb[18].mxu1 }
 0x19c   : > { %v3184_v43 = vmax.f32 %v2186_v33, 0.0  ;;  %v3312_v44 = vmax.f32 %v2698_v34, 0.0  ;;  %v2189_v45 = vadd.f32 %v6785_v61, %v2188_v39  ;;  %v2701_v46 = vadd.f32 %v6785_v61, %v2700_v40  ;;  %v2190_v47 = vpop.f32.mrb[19].mxu0  ;;  %v2702_v48 = vpop.f32.mrb[19].mxu1 }
 0x19d   : > { %v6071_v47 = vld [vmem:[%s6611_s27 + $0x620] ss:$8 sps:$4 sm:$0xff]  }
 0x19e   : > { %v5515_v49 = vpack.c.bf16 %v3184_v43, %v3184_v43  ;;  %v5643_v50 = vpack.c.bf16 %v3312_v44, %v3312_v44  ;;  %v3185_v51 = vmax.f32 %v2189_v45, 0.0  ;;  %v3313_v52 = vmax.f32 %v2701_v46, 0.0  ;;  %2400 = vmatmul.mubr.bf16.gmra.mrb[124].mxu0 %v6052_v37  ;;  %2912 = vmatmul.mubr.bf16.gmra.mrb[124].mxu1 %v6053_v38  ;;  %v6070_v46 = vld [vmem:[%s6611_s27 + $0x220] ss:$8 sps:$4 sm:$0xff]  }
 0x19f   : > { %5143 = vmatprep.mubr.msk.bf16.mxu0 %vm1727_vm0, %v6054_v41  ;;  %5207 = vmatprep.mubr.msk.bf16.mxu1 %vm1727_vm0, %v6056_v42 }
 0x1a0   : > { %4465 = vst.msk [vmem:[%s6800_s26 + $0x20] sm:$0xf] %vm4456_vm3, %v5515_v49  ;;  %4593 = vst.msk [vmem:[%s6800_s26 + $0x220] sm:$0xf] %vm4456_vm3, %v5643_v50  ;;  %v5516_v53 = vpack.c.bf16 %v3185_v51, %v3185_v51  ;;  %v5644_v54 = vpack.c.bf16 %v3313_v52, %v3313_v52  ;;  %v6072_v50 = vld [vmem:[%s6611_s27 + $0x234] ss:$8 sps:$4 sm:$0xff]  }
 0x1a1   : > { %v2193_v55 = vpop.f32.mrb[20].mxu0  ;;  %v2705_v56 = vpop.f32.mrb[20].mxu1  ;;  %v6074_v51 = vld [vmem:[%s6611_s27 + $0x634] ss:$8 sps:$4 sm:$0xff]  }
 0x1a2   : > { %4466 = vst.msk [vmem:[%s6800_s26 + $0x24] sm:$0xf] %vm4456_vm3, %v5516_v53  ;;  %4594 = vst.msk [vmem:[%s6800_s26 + $0x224] sm:$0xf] %vm4456_vm3, %v5644_v54  ;;  %v2194_v57 = vadd.f32 %v6785_v61, %v2193_v55  ;;  %v2706_v58 = vadd.f32 %v6785_v61, %v2705_v56  ;;  %v2195_v59 = vpop.f32.mrb[21].mxu0  ;;  %v2707_v60 = vpop.f32.mrb[21].mxu1 }
 0x1a3   : > { %v2196_v0 = vpop.f32.mrb[22].mxu0  ;;  %v2708_v1 = vpop.f32.mrb[22].mxu1 }
 0x1a4   : > { %v3186_v4 = vmax.f32 %v2194_v57, 0.0  ;;  %v3314_v5 = vmax.f32 %v2706_v58, 0.0  ;;  %v2197_v6 = vadd.f32 %v6785_v61, %v2196_v0  ;;  %v2709_v7 = vadd.f32 %v6785_v61, %v2708_v1  ;;  %v2198_v8 = vpop.f32.mrb[23].mxu0  ;;  %v2710_v9 = vpop.f32.mrb[23].mxu1 }
 0x1a5   : > { %v6077_v8 = vld [vmem:[%s6611_s27 + $0x630] ss:$8 sps:$4 sm:$0xff]  }
 0x1a6   : > { %v5517_v10 = vpack.c.bf16 %v3186_v4, %v3186_v4  ;;  %v5645_v11 = vpack.c.bf16 %v3314_v5, %v3314_v5  ;;  %v3187_v12 = vmax.f32 %v2197_v6, 0.0  ;;  %v3315_v13 = vmax.f32 %v2709_v7, 0.0  ;;  %2408 = vmatmul.mubr.bf16.gmra.mrb[128].mxu0 %v6058_v62  ;;  %2920 = vmatmul.mubr.bf16.gmra.mrb[128].mxu1 %v6059_v63  ;;  %v6076_v7 = vld [vmem:[%s6611_s27 + $0x230] ss:$8 sps:$4 sm:$0xff]  }
 0x1a7   : > { %5144 = vmatprep.mubr.msk.bf16.mxu0 %vm1727_vm0, %v6060_v2  ;;  %5208 = vmatprep.mubr.msk.bf16.mxu1 %vm1727_vm0, %v6062_v3 }
 0x1a8   : > { %4467 = vst.msk [vmem:[%s6800_s26 + $0x28] sm:$0xf] %vm4456_vm3, %v5517_v10  ;;  %4595 = vst.msk [vmem:[%s6800_s26 + $0x228] sm:$0xf] %vm4456_vm3, %v5645_v11  ;;  %v5518_v14 = vpack.c.bf16 %v3187_v12, %v3187_v12  ;;  %v5646_v15 = vpack.c.bf16 %v3315_v13, %v3315_v13  ;;  %v6078_v11 = vld [vmem:[%s6611_s27 + $0x244] ss:$8 sps:$4 sm:$0xff]  }
 0x1a9   : > { %v2201_v16 = vpop.f32.mrb[24].mxu0  ;;  %v2713_v17 = vpop.f32.mrb[24].mxu1  ;;  %v6080_v12 = vld [vmem:[%s6611_s27 + $0x644] ss:$8 sps:$4 sm:$0xff]  }
 0x1aa   : > { %4468 = vst.msk [vmem:[%s6800_s26 + $0x2c] sm:$0xf] %vm4456_vm3, %v5518_v14  ;;  %4596 = vst.msk [vmem:[%s6800_s26 + $0x22c] sm:$0xf] %vm4456_vm3, %v5646_v15  ;;  %v2202_v18 = vadd.f32 %v6785_v61, %v2201_v16  ;;  %v2714_v19 = vadd.f32 %v6785_v61, %v2713_v17  ;;  %v2203_v20 = vpop.f32.mrb[25].mxu0  ;;  %v2715_v21 = vpop.f32.mrb[25].mxu1 }
 0x1ab   : > { %v2204_v24 = vpop.f32.mrb[26].mxu0  ;;  %v2716_v25 = vpop.f32.mrb[26].mxu1 }
 0x1ac   : > { %v3188_v28 = vmax.f32 %v2202_v18, 0.0  ;;  %v3316_v29 = vmax.f32 %v2714_v19, 0.0  ;;  %v2205_v30 = vadd.f32 %v6785_v61, %v2204_v24  ;;  %v2717_v31 = vadd.f32 %v6785_v61, %v2716_v25  ;;  %v2206_v32 = vpop.f32.mrb[27].mxu0  ;;  %v2718_v33 = vpop.f32.mrb[27].mxu1 }
 0x1ad   : > { %v6083_v32 = vld [vmem:[%s6611_s27 + $0x640] ss:$8 sps:$4 sm:$0xff]  }
 0x1ae   : > { %v5519_v34 = vpack.c.bf16 %v3188_v28, %v3188_v28  ;;  %v5647_v35 = vpack.c.bf16 %v3316_v29, %v3316_v29  ;;  %v3189_v36 = vmax.f32 %v2205_v30, 0.0  ;;  %v3317_v37 = vmax.f32 %v2717_v31, 0.0  ;;  %2416 = vmatmul.mubr.bf16.gmra.mrb[132].mxu0 %v6064_v22  ;;  %2928 = vmatmul.mubr.bf16.gmra.mrb[132].mxu1 %v6065_v23  ;;  %v6082_v31 = vld [vmem:[%s6611_s27 + $0x240] ss:$8 sps:$4 sm:$0xff]  }
 0x1af   : > { %5145 = vmatprep.mubr.msk.bf16.mxu0 %vm1727_vm0, %v6066_v26  ;;  %5209 = vmatprep.mubr.msk.bf16.mxu1 %vm1727_vm0, %v6068_v27 }
 0x1b0   : > { %4469 = vst.msk [vmem:[%s6800_s26 + $0x30] sm:$0xf] %vm4456_vm3, %v5519_v34  ;;  %4597 = vst.msk [vmem:[%s6800_s26 + $0x230] sm:$0xf] %vm4456_vm3, %v5647_v35  ;;  %v5520_v38 = vpack.c.bf16 %v3189_v36, %v3189_v36  ;;  %v5648_v39 = vpack.c.bf16 %v3317_v37, %v3317_v37  ;;  %v6084_v35 = vld [vmem:[%s6611_s27 + $0x254] ss:$8 sps:$4 sm:$0xff]  }
 0x1b1   : > { %v2209_v40 = vpop.f32.mrb[28].mxu0  ;;  %v2721_v41 = vpop.f32.mrb[28].mxu1  ;;  %v6086_v36 = vld [vmem:[%s6611_s27 + $0x654] ss:$8 sps:$4 sm:$0xff]  }
 0x1b2   : > { %4470 = vst.msk [vmem:[%s6800_s26 + $0x34] sm:$0xf] %vm4456_vm3, %v5520_v38  ;;  %4598 = vst.msk [vmem:[%s6800_s26 + $0x234] sm:$0xf] %vm4456_vm3, %v5648_v39  ;;  %v2210_v42 = vadd.f32 %v6785_v61, %v2209_v40  ;;  %v2722_v43 = vadd.f32 %v6785_v61, %v2721_v41  ;;  %v2211_v44 = vpop.f32.mrb[29].mxu0  ;;  %v2723_v45 = vpop.f32.mrb[29].mxu1 }
 0x1b3   : > { %v2212_v48 = vpop.f32.mrb[30].mxu0  ;;  %v2724_v49 = vpop.f32.mrb[30].mxu1 }
 0x1b4   : > { %v3190_v52 = vmax.f32 %v2210_v42, 0.0  ;;  %v3318_v53 = vmax.f32 %v2722_v43, 0.0  ;;  %v2213_v54 = vadd.f32 %v6785_v61, %v2212_v48  ;;  %v2725_v55 = vadd.f32 %v6785_v61, %v2724_v49  ;;  %v2214_v56 = vpop.f32.mrb[31].mxu0  ;;  %v2726_v57 = vpop.f32.mrb[31].mxu1 }
 0x1b5   : > { %v6089_v56 = vld [vmem:[%s6611_s27 + $0x650] ss:$8 sps:$4 sm:$0xff]  }
 0x1b6   : > { %v5521_v58 = vpack.c.bf16 %v3190_v52, %v3190_v52  ;;  %v5649_v59 = vpack.c.bf16 %v3318_v53, %v3318_v53  ;;  %v3191_v60 = vmax.f32 %v2213_v54, 0.0  ;;  %v3319_v62 = vmax.f32 %v2725_v55, 0.0  ;;  %2424 = vmatmul.mubr.bf16.gmra.mrb[136].mxu0 %v6070_v46  ;;  %2936 = vmatmul.mubr.bf16.gmra.mrb[136].mxu1 %v6071_v47  ;;  %v6088_v55 = vld [vmem:[%s6611_s27 + $0x250] ss:$8 sps:$4 sm:$0xff]  }
 0x1b7   : > { %5146 = vmatprep.mubr.msk.bf16.mxu0 %vm1727_vm0, %v6072_v50  ;;  %5210 = vmatprep.mubr.msk.bf16.mxu1 %vm1727_vm0, %v6074_v51 }
 0x1b8   : > { %4471 = vst.msk [vmem:[%s6800_s26 + $0x38] sm:$0xf] %vm4456_vm3, %v5521_v58  ;;  %4599 = vst.msk [vmem:[%s6800_s26 + $0x238] sm:$0xf] %vm4456_vm3, %v5649_v59  ;;  %v5522_v63 = vpack.c.bf16 %v3191_v60, %v3191_v60  ;;  %v5650_v0 = vpack.c.bf16 %v3319_v62, %v3319_v62  ;;  %v6090_v59 = vld [vmem:[%s6611_s27 + $0x264] ss:$8 sps:$4 sm:$0xff]  }
 0x1b9   : > { %v2217_v1 = vpop.f32.mrb[32].mxu0  ;;  %v2729_v2 = vpop.f32.mrb[32].mxu1  ;;  %v6092_v60 = vld [vmem:[%s6611_s27 + $0x664] ss:$8 sps:$4 sm:$0xff]  }
 0x1ba   : > { %4472 = vst.msk [vmem:[%s6800_s26 + $0x3c] sm:$0xf] %vm4456_vm3, %v5522_v63  ;;  %4600 = vst.msk [vmem:[%s6800_s26 + $0x23c] sm:$0xf] %vm4456_vm3, %v5650_v0  ;;  %v2218_v3 = vadd.f32 %v6785_v61, %v2217_v1  ;;  %v2730_v4 = vadd.f32 %v6785_v61, %v2729_v2  ;;  %v2219_v5 = vpop.f32.mrb[33].mxu0  ;;  %v2731_v6 = vpop.f32.mrb[33].mxu1 }
 0x1bb   : > { %v2220_v9 = vpop.f32.mrb[34].mxu0  ;;  %v2732_v10 = vpop.f32.mrb[34].mxu1 }
 0x1bc   : > { %v3192_v13 = vmax.f32 %v2218_v3, 0.0  ;;  %v3320_v14 = vmax.f32 %v2730_v4, 0.0  ;;  %v2221_v15 = vadd.f32 %v6785_v61, %v2220_v9  ;;  %v2733_v16 = vadd.f32 %v6785_v61, %v2732_v10  ;;  %v2222_v17 = vpop.f32.mrb[35].mxu0  ;;  %v2734_v18 = vpop.f32.mrb[35].mxu1 }
 0x1bd   : > { %v6095_v17 = vld [vmem:[%s6611_s27 + $0x660] ss:$8 sps:$4 sm:$0xff]  }
 0x1be   : > { %v5523_v19 = vpack.c.bf16 %v3192_v13, %v3192_v13  ;;  %v5651_v20 = vpack.c.bf16 %v3320_v14, %v3320_v14  ;;  %v3193_v21 = vmax.f32 %v2221_v15, 0.0  ;;  %v3321_v22 = vmax.f32 %v2733_v16, 0.0  ;;  %2432 = vmatmul.mubr.bf16.gmra.mrb[140].mxu0 %v6076_v7  ;;  %2944 = vmatmul.mubr.bf16.gmra.mrb[140].mxu1 %v6077_v8  ;;  %v6094_v16 = vld [vmem:[%s6611_s27 + $0x260] ss:$8 sps:$4 sm:$0xff]  }
 0x1bf   : > { %5147 = vmatprep.mubr.msk.bf16.mxu0 %vm1727_vm0, %v6078_v11  ;;  %5211 = vmatprep.mubr.msk.bf16.mxu1 %vm1727_vm0, %v6080_v12 }
 0x1c0   : > { %4473 = vst.msk [vmem:[%s6800_s26 + $0x40] sm:$0xf] %vm4456_vm3, %v5523_v19  ;;  %4601 = vst.msk [vmem:[%s6800_s26 + $0x240] sm:$0xf] %vm4456_vm3, %v5651_v20  ;;  %v5524_v23 = vpack.c.bf16 %v3193_v21, %v3193_v21  ;;  %v5652_v24 = vpack.c.bf16 %v3321_v22, %v3321_v22  ;;  %v6096_v20 = vld [vmem:[%s6611_s27 + $0x274] ss:$8 sps:$4 sm:$0xff]  }
 0x1c1   : > { %v2225_v25 = vpop.f32.mrb[36].mxu0  ;;  %v2737_v26 = vpop.f32.mrb[36].mxu1  ;;  %v6098_v21 = vld [vmem:[%s6611_s27 + $0x674] ss:$8 sps:$4 sm:$0xff]  }
 0x1c2   : > { %4474 = vst.msk [vmem:[%s6800_s26 + $0x44] sm:$0xf] %vm4456_vm3, %v5524_v23  ;;  %4602 = vst.msk [vmem:[%s6800_s26 + $0x244] sm:$0xf] %vm4456_vm3, %v5652_v24  ;;  %v2226_v27 = vadd.f32 %v6785_v61, %v2225_v25  ;;  %v2738_v28 = vadd.f32 %v6785_v61, %v2737_v26  ;;  %v2227_v29 = vpop.f32.mrb[37].mxu0  ;;  %v2739_v30 = vpop.f32.mrb[37].mxu1 }
 0x1c3   : > { %v2228_v33 = vpop.f32.mrb[38].mxu0  ;;  %v2740_v34 = vpop.f32.mrb[38].mxu1 }
 0x1c4   : > { %v3194_v37 = vmax.f32 %v2226_v27, 0.0  ;;  %v3322_v38 = vmax.f32 %v2738_v28, 0.0  ;;  %v2229_v39 = vadd.f32 %v6785_v61, %v2228_v33  ;;  %v2741_v40 = vadd.f32 %v6785_v61, %v2740_v34  ;;  %v2230_v41 = vpop.f32.mrb[39].mxu0  ;;  %v2742_v42 = vpop.f32.mrb[39].mxu1 }
 0x1c5   : > { %v6101_v41 = vld [vmem:[%s6611_s27 + $0x670] ss:$8 sps:$4 sm:$0xff]  }
 0x1c6   : > { %v5525_v43 = vpack.c.bf16 %v3194_v37, %v3194_v37  ;;  %v5653_v44 = vpack.c.bf16 %v3322_v38, %v3322_v38  ;;  %v3195_v45 = vmax.f32 %v2229_v39, 0.0  ;;  %v3323_v46 = vmax.f32 %v2741_v40, 0.0  ;;  %2440 = vmatmul.mubr.bf16.gmra.mrb[144].mxu0 %v6082_v31  ;;  %2952 = vmatmul.mubr.bf16.gmra.mrb[144].mxu1 %v6083_v32  ;;  %v6100_v40 = vld [vmem:[%s6611_s27 + $0x270] ss:$8 sps:$4 sm:$0xff]  }
 0x1c7   : > { %5148 = vmatprep.mubr.msk.bf16.mxu0 %vm1727_vm0, %v6084_v35  ;;  %5212 = vmatprep.mubr.msk.bf16.mxu1 %vm1727_vm0, %v6086_v36 }
 0x1c8   : > { %4475 = vst.msk [vmem:[%s6800_s26 + $0x48] sm:$0xf] %vm4456_vm3, %v5525_v43  ;;  %4603 = vst.msk [vmem:[%s6800_s26 + $0x248] sm:$0xf] %vm4456_vm3, %v5653_v44  ;;  %v5526_v47 = vpack.c.bf16 %v3195_v45, %v3195_v45  ;;  %v5654_v48 = vpack.c.bf16 %v3323_v46, %v3323_v46  ;;  %v6102_v44 = vld [vmem:[%s6611_s27 + $0x284] ss:$8 sps:$4 sm:$0xff]  }
 0x1c9   : > { %v2233_v49 = vpop.f32.mrb[40].mxu0  ;;  %v2745_v50 = vpop.f32.mrb[40].mxu1  ;;  %v6104_v45 = vld [vmem:[%s6611_s27 + $0x684] ss:$8 sps:$4 sm:$0xff]  }
 0x1ca   : > { %4476 = vst.msk [vmem:[%s6800_s26 + $0x4c] sm:$0xf] %vm4456_vm3, %v5526_v47  ;;  %4604 = vst.msk [vmem:[%s6800_s26 + $0x24c] sm:$0xf] %vm4456_vm3, %v5654_v48  ;;  %v2234_v51 = vadd.f32 %v6785_v61, %v2233_v49  ;;  %v2746_v52 = vadd.f32 %v6785_v61, %v2745_v50  ;;  %v2235_v53 = vpop.f32.mrb[41].mxu0  ;;  %v2747_v54 = vpop.f32.mrb[41].mxu1 }
 0x1cb   : > { %v2236_v57 = vpop.f32.mrb[42].mxu0  ;;  %v2748_v58 = vpop.f32.mrb[42].mxu1 }
 0x1cc   : > { %v3196_v62 = vmax.f32 %v2234_v51, 0.0  ;;  %v3324_v63 = vmax.f32 %v2746_v52, 0.0  ;;  %v2237_v0 = vadd.f32 %v6785_v61, %v2236_v57  ;;  %v2749_v1 = vadd.f32 %v6785_v61, %v2748_v58  ;;  %v2238_v2 = vpop.f32.mrb[43].mxu0  ;;  %v2750_v3 = vpop.f32.mrb[43].mxu1 }
 0x1cd   : > { %v6107_v2 = vld [vmem:[%s6611_s27 + $0x680] ss:$8 sps:$4 sm:$0xff]  }
 0x1ce   : > { %v5527_v4 = vpack.c.bf16 %v3196_v62, %v3196_v62  ;;  %v5655_v5 = vpack.c.bf16 %v3324_v63, %v3324_v63  ;;  %v3197_v6 = vmax.f32 %v2237_v0, 0.0  ;;  %v3325_v7 = vmax.f32 %v2749_v1, 0.0  ;;  %2448 = vmatmul.mubr.bf16.gmra.mrb[148].mxu0 %v6088_v55  ;;  %2960 = vmatmul.mubr.bf16.gmra.mrb[148].mxu1 %v6089_v56  ;;  %v6106_v1 = vld [vmem:[%s6611_s27 + $0x280] ss:$8 sps:$4 sm:$0xff]  }
 0x1cf   : > { %5149 = vmatprep.mubr.msk.bf16.mxu0 %vm1727_vm0, %v6090_v59  ;;  %5213 = vmatprep.mubr.msk.bf16.mxu1 %vm1727_vm0, %v6092_v60 }
 0x1d0   : > { %4477 = vst.msk [vmem:[%s6800_s26 + $0x50] sm:$0xf] %vm4456_vm3, %v5527_v4  ;;  %4605 = vst.msk [vmem:[%s6800_s26 + $0x250] sm:$0xf] %vm4456_vm3, %v5655_v5  ;;  %v5528_v8 = vpack.c.bf16 %v3197_v6, %v3197_v6  ;;  %v5656_v9 = vpack.c.bf16 %v3325_v7, %v3325_v7  ;;  %v6108_v5 = vld [vmem:[%s6611_s27 + $0x294] ss:$8 sps:$4 sm:$0xff]  }
 0x1d1   : > { %v2241_v10 = vpop.f32.mrb[44].mxu0  ;;  %v2753_v11 = vpop.f32.mrb[44].mxu1  ;;  %v6110_v6 = vld [vmem:[%s6611_s27 + $0x694] ss:$8 sps:$4 sm:$0xff]  }
 0x1d2   : > { %4478 = vst.msk [vmem:[%s6800_s26 + $0x54] sm:$0xf] %vm4456_vm3, %v5528_v8  ;;  %4606 = vst.msk [vmem:[%s6800_s26 + $0x254] sm:$0xf] %vm4456_vm3, %v5656_v9  ;;  %v2242_v12 = vadd.f32 %v6785_v61, %v2241_v10  ;;  %v2754_v13 = vadd.f32 %v6785_v61, %v2753_v11  ;;  %v2243_v14 = vpop.f32.mrb[45].mxu0  ;;  %v2755_v15 = vpop.f32.mrb[45].mxu1 }
 0x1d3   : > { %v2244_v18 = vpop.f32.mrb[46].mxu0  ;;  %v2756_v19 = vpop.f32.mrb[46].mxu1 }
 0x1d4   : > { %v3198_v22 = vmax.f32 %v2242_v12, 0.0  ;;  %v3326_v23 = vmax.f32 %v2754_v13, 0.0  ;;  %v2245_v24 = vadd.f32 %v6785_v61, %v2244_v18  ;;  %v2757_v25 = vadd.f32 %v6785_v61, %v2756_v19  ;;  %v2246_v26 = vpop.f32.mrb[47].mxu0  ;;  %v2758_v27 = vpop.f32.mrb[47].mxu1 }
 0x1d5   : > { %v6113_v26 = vld [vmem:[%s6611_s27 + $0x690] ss:$8 sps:$4 sm:$0xff]  }
 0x1d6   : > { %v5529_v28 = vpack.c.bf16 %v3198_v22, %v3198_v22  ;;  %v5657_v29 = vpack.c.bf16 %v3326_v23, %v3326_v23  ;;  %v3199_v30 = vmax.f32 %v2245_v24, 0.0  ;;  %v3327_v31 = vmax.f32 %v2757_v25, 0.0  ;;  %2456 = vmatmul.mubr.bf16.gmra.mrb[152].mxu0 %v6094_v16  ;;  %2968 = vmatmul.mubr.bf16.gmra.mrb[152].mxu1 %v6095_v17  ;;  %v6112_v25 = vld [vmem:[%s6611_s27 + $0x290] ss:$8 sps:$4 sm:$0xff]  }
 0x1d7   : > { %5150 = vmatprep.mubr.msk.bf16.mxu0 %vm1727_vm0, %v6096_v20  ;;  %5214 = vmatprep.mubr.msk.bf16.mxu1 %vm1727_vm0, %v6098_v21 }
 0x1d8   : > { %4479 = vst.msk [vmem:[%s6800_s26 + $0x58] sm:$0xf] %vm4456_vm3, %v5529_v28  ;;  %4607 = vst.msk [vmem:[%s6800_s26 + $0x258] sm:$0xf] %vm4456_vm3, %v5657_v29  ;;  %v5530_v32 = vpack.c.bf16 %v3199_v30, %v3199_v30  ;;  %v5658_v33 = vpack.c.bf16 %v3327_v31, %v3327_v31  ;;  %v6114_v29 = vld [vmem:[%s6611_s27 + $0x2a4] ss:$8 sps:$4 sm:$0xff]  }
 0x1d9   : > { %v2249_v34 = vpop.f32.mrb[48].mxu0  ;;  %v2761_v35 = vpop.f32.mrb[48].mxu1  ;;  %v6116_v30 = vld [vmem:[%s6611_s27 + $0x6a4] ss:$8 sps:$4 sm:$0xff]  }
 0x1da   : > { %4480 = vst.msk [vmem:[%s6800_s26 + $0x5c] sm:$0xf] %vm4456_vm3, %v5530_v32  ;;  %4608 = vst.msk [vmem:[%s6800_s26 + $0x25c] sm:$0xf] %vm4456_vm3, %v5658_v33  ;;  %v2250_v36 = vadd.f32 %v6785_v61, %v2249_v34  ;;  %v2762_v37 = vadd.f32 %v6785_v61, %v2761_v35  ;;  %v2251_v38 = vpop.f32.mrb[49].mxu0  ;;  %v2763_v39 = vpop.f32.mrb[49].mxu1 }
 0x1db   : > { %v2252_v42 = vpop.f32.mrb[50].mxu0  ;;  %v2764_v43 = vpop.f32.mrb[50].mxu1 }
 0x1dc   : > { %v3200_v46 = vmax.f32 %v2250_v36, 0.0  ;;  %v3328_v47 = vmax.f32 %v2762_v37, 0.0  ;;  %v2253_v48 = vadd.f32 %v6785_v61, %v2252_v42  ;;  %v2765_v49 = vadd.f32 %v6785_v61, %v2764_v43  ;;  %v2254_v50 = vpop.f32.mrb[51].mxu0  ;;  %v2766_v51 = vpop.f32.mrb[51].mxu1 }
 0x1dd   : > { %v6119_v50 = vld [vmem:[%s6611_s27 + $0x6a0] ss:$8 sps:$4 sm:$0xff]  }
 0x1de   : > { %v5531_v52 = vpack.c.bf16 %v3200_v46, %v3200_v46  ;;  %v5659_v53 = vpack.c.bf16 %v3328_v47, %v3328_v47  ;;  %v3201_v54 = vmax.f32 %v2253_v48, 0.0  ;;  %v3329_v55 = vmax.f32 %v2765_v49, 0.0  ;;  %2464 = vmatmul.mubr.bf16.gmra.mrb[156].mxu0 %v6100_v40  ;;  %2976 = vmatmul.mubr.bf16.gmra.mrb[156].mxu1 %v6101_v41  ;;  %v6118_v49 = vld [vmem:[%s6611_s27 + $0x2a0] ss:$8 sps:$4 sm:$0xff]  }
 0x1df   : > { %5151 = vmatprep.mubr.msk.bf16.mxu0 %vm1727_vm0, %v6102_v44  ;;  %5215 = vmatprep.mubr.msk.bf16.mxu1 %vm1727_vm0, %v6104_v45 }
 0x1e0   : > { %4481 = vst.msk [vmem:[%s6800_s26 + $0x60] sm:$0xf] %vm4456_vm3, %v5531_v52  ;;  %4609 = vst.msk [vmem:[%s6800_s26 + $0x260] sm:$0xf] %vm4456_vm3, %v5659_v53  ;;  %v5532_v56 = vpack.c.bf16 %v3201_v54, %v3201_v54  ;;  %v5660_v57 = vpack.c.bf16 %v3329_v55, %v3329_v55  ;;  %v6120_v53 = vld [vmem:[%s6611_s27 + $0x2b4] ss:$8 sps:$4 sm:$0xff]  }
 0x1e1   : > { %v2257_v58 = vpop.f32.mrb[52].mxu0  ;;  %v2769_v59 = vpop.f32.mrb[52].mxu1  ;;  %v6122_v54 = vld [vmem:[%s6611_s27 + $0x6b4] ss:$8 sps:$4 sm:$0xff]  }
 0x1e2   : > { %4482 = vst.msk [vmem:[%s6800_s26 + $0x64] sm:$0xf] %vm4456_vm3, %v5532_v56  ;;  %4610 = vst.msk [vmem:[%s6800_s26 + $0x264] sm:$0xf] %vm4456_vm3, %v5660_v57  ;;  %v2258_v60 = vadd.f32 %v6785_v61, %v2257_v58  ;;  %v2770_v62 = vadd.f32 %v6785_v61, %v2769_v59  ;;  %v2259_v63 = vpop.f32.mrb[53].mxu0  ;;  %v2771_v0 = vpop.f32.mrb[53].mxu1 }
 0x1e3   : > { %v2260_v3 = vpop.f32.mrb[54].mxu0  ;;  %v2772_v4 = vpop.f32.mrb[54].mxu1 }
 0x1e4   : > { %v3202_v7 = vmax.f32 %v2258_v60, 0.0  ;;  %v3330_v8 = vmax.f32 %v2770_v62, 0.0  ;;  %v2261_v9 = vadd.f32 %v6785_v61, %v2260_v3  ;;  %v2773_v10 = vadd.f32 %v6785_v61, %v2772_v4  ;;  %v2262_v11 = vpop.f32.mrb[55].mxu0  ;;  %v2774_v12 = vpop.f32.mrb[55].mxu1 }
 0x1e5   : > { %v6125_v11 = vld [vmem:[%s6611_s27 + $0x6b0] ss:$8 sps:$4 sm:$0xff]  }
 0x1e6   : > { %v5533_v13 = vpack.c.bf16 %v3202_v7, %v3202_v7  ;;  %v5661_v14 = vpack.c.bf16 %v3330_v8, %v3330_v8  ;;  %v3203_v15 = vmax.f32 %v2261_v9, 0.0  ;;  %v3331_v16 = vmax.f32 %v2773_v10, 0.0  ;;  %2472 = vmatmul.mubr.bf16.gmra.mrb[160].mxu0 %v6106_v1  ;;  %2984 = vmatmul.mubr.bf16.gmra.mrb[160].mxu1 %v6107_v2  ;;  %v6124_v10 = vld [vmem:[%s6611_s27 + $0x2b0] ss:$8 sps:$4 sm:$0xff]  }
 0x1e7   : > { %5152 = vmatprep.mubr.msk.bf16.mxu0 %vm1727_vm0, %v6108_v5  ;;  %5216 = vmatprep.mubr.msk.bf16.mxu1 %vm1727_vm0, %v6110_v6  ;;  %v7080_v5 = vld [vmem:[#allocation7] ss:$0 sm:$0xff] }
 0x1e8   : > { %4483 = vst.msk [vmem:[%s6800_s26 + $0x68] sm:$0xf] %vm4456_vm3, %v5533_v13  ;;  %4611 = vst.msk [vmem:[%s6800_s26 + $0x268] sm:$0xf] %vm4456_vm3, %v5661_v14  ;;  %v5534_v17 = vpack.c.bf16 %v3203_v15, %v3203_v15  ;;  %v5662_v18 = vpack.c.bf16 %v3331_v16, %v3331_v16  ;;  %v6126_v14 = vld [vmem:[%s6611_s27 + $0x2c4] ss:$8 sps:$4 sm:$0xff]  }
 0x1e9   : > { %v2265_v19 = vpop.f32.mrb[56].mxu0  ;;  %v2777_v20 = vpop.f32.mrb[56].mxu1  ;;  %v6128_v15 = vld [vmem:[%s6611_s27 + $0x6c4] ss:$8 sps:$4 sm:$0xff]  }
 0x1ea   : > { %4484 = vst.msk [vmem:[%s6800_s26 + $0x6c] sm:$0xf] %vm4456_vm3, %v5534_v17  ;;  %4612 = vst.msk [vmem:[%s6800_s26 + $0x26c] sm:$0xf] %vm4456_vm3, %v5662_v18  ;;  %v2266_v21 = vadd.f32 %v6785_v61, %v2265_v19  ;;  %v2778_v22 = vadd.f32 %v6785_v61, %v2777_v20  ;;  %v2267_v23 = vpop.f32.mrb[57].mxu0  ;;  %v2779_v24 = vpop.f32.mrb[57].mxu1 }
 0x1eb   : > { %v2268_v27 = vpop.f32.mrb[58].mxu0  ;;  %v2780_v28 = vpop.f32.mrb[58].mxu1 }
 0x1ec   : > { %v3204_v31 = vmax.f32 %v2266_v21, 0.0  ;;  %v3332_v32 = vmax.f32 %v2778_v22, 0.0  ;;  %v2269_v33 = vadd.f32 %v6785_v61, %v2268_v27  ;;  %v2781_v34 = vadd.f32 %v6785_v61, %v2780_v28  ;;  %v2270_v35 = vpop.f32.mrb[59].mxu0  ;;  %v2782_v36 = vpop.f32.mrb[59].mxu1 }
 0x1ed   : > { %v6131_v35 = vld [vmem:[%s6611_s27 + $0x6c0] ss:$8 sps:$4 sm:$0xff]  }
 0x1ee   : > { %v5535_v37 = vpack.c.bf16 %v3204_v31, %v3204_v31  ;;  %v5663_v38 = vpack.c.bf16 %v3332_v32, %v3332_v32  ;;  %v3205_v39 = vmax.f32 %v2269_v33, 0.0  ;;  %v3333_v40 = vmax.f32 %v2781_v34, 0.0  ;;  %2480 = vmatmul.mubr.bf16.gmra.mrb[164].mxu0 %v6112_v25  ;;  %2992 = vmatmul.mubr.bf16.gmra.mrb[164].mxu1 %v6113_v26  ;;  %v6130_v34 = vld [vmem:[%s6611_s27 + $0x2c0] ss:$8 sps:$4 sm:$0xff]  }
 0x1ef   : > { %5153 = vmatprep.mubr.msk.bf16.mxu0 %vm1727_vm0, %v6114_v29  ;;  %5217 = vmatprep.mubr.msk.bf16.mxu1 %vm1727_vm0, %v6116_v30 }
 0x1f0   : > { %4485 = vst.msk [vmem:[%s6800_s26 + $0x70] sm:$0xf] %vm4456_vm3, %v5535_v37  ;;  %4613 = vst.msk [vmem:[%s6800_s26 + $0x270] sm:$0xf] %vm4456_vm3, %v5663_v38  ;;  %v5536_v41 = vpack.c.bf16 %v3205_v39, %v3205_v39  ;;  %v5664_v42 = vpack.c.bf16 %v3333_v40, %v3333_v40  ;;  %v6132_v38 = vld [vmem:[%s6611_s27 + $0x2d4] ss:$8 sps:$4 sm:$0xff]  }
 0x1f1   : > { %v2273_v43 = vpop.f32.mrb[60].mxu0  ;;  %v2785_v44 = vpop.f32.mrb[60].mxu1  ;;  %v6134_v39 = vld [vmem:[%s6611_s27 + $0x6d4] ss:$8 sps:$4 sm:$0xff]  }
 0x1f2   : > { %4486 = vst.msk [vmem:[%s6800_s26 + $0x74] sm:$0xf] %vm4456_vm3, %v5536_v41  ;;  %4614 = vst.msk [vmem:[%s6800_s26 + $0x274] sm:$0xf] %vm4456_vm3, %v5664_v42  ;;  %v2274_v45 = vadd.f32 %v6785_v61, %v2273_v43  ;;  %v2786_v46 = vadd.f32 %v6785_v61, %v2785_v44  ;;  %v2275_v47 = vpop.f32.mrb[61].mxu0  ;;  %v2787_v48 = vpop.f32.mrb[61].mxu1 }
 0x1f3   : > { %v2276_v51 = vpop.f32.mrb[62].mxu0  ;;  %v2788_v52 = vpop.f32.mrb[62].mxu1 }
 0x1f4   : > { %v3206_v55 = vmax.f32 %v2274_v45, 0.0  ;;  %v3334_v56 = vmax.f32 %v2786_v46, 0.0  ;;  %v2277_v57 = vadd.f32 %v6785_v61, %v2276_v51  ;;  %v2789_v58 = vadd.f32 %v6785_v61, %v2788_v52  ;;  %v2278_v59 = vpop.f32.mrb[63].mxu0  ;;  %v2790_v60 = vpop.f32.mrb[63].mxu1 }
 0x1f5   : > { %v6137_v59 = vld [vmem:[%s6611_s27 + $0x6d0] ss:$8 sps:$4 sm:$0xff]  }
 0x1f6   : > { %v5537_v62 = vpack.c.bf16 %v3206_v55, %v3206_v55  ;;  %v5665_v63 = vpack.c.bf16 %v3334_v56, %v3334_v56  ;;  %v3207_v0 = vmax.f32 %v2277_v57, 0.0  ;;  %v3335_v1 = vmax.f32 %v2789_v58, 0.0  ;;  %2488 = vmatmul.mubr.bf16.gmra.mrb[168].mxu0 %v6118_v49  ;;  %3000 = vmatmul.mubr.bf16.gmra.mrb[168].mxu1 %v6119_v50  ;;  %v6136_v58 = vld [vmem:[%s6611_s27 + $0x2d0] ss:$8 sps:$4 sm:$0xff]  }
 0x1f7   : > { %5154 = vmatprep.mubr.msk.bf16.mxu0 %vm1727_vm0, %v6120_v53  ;;  %5218 = vmatprep.mubr.msk.bf16.mxu1 %vm1727_vm0, %v6122_v54 }
 0x1f8   : > { %4487 = vst.msk [vmem:[%s6800_s26 + $0x78] sm:$0xf] %vm4456_vm3, %v5537_v62  ;;  %4615 = vst.msk [vmem:[%s6800_s26 + $0x278] sm:$0xf] %vm4456_vm3, %v5665_v63  ;;  %v5538_v61 = vpack.c.bf16 %v3207_v0, %v3207_v0  ;;  %v5666_v2 = vpack.c.bf16 %v3335_v1, %v3335_v1  ;;  %v6138_v63 = vld [vmem:[%s6611_s27 + $0x2e4] ss:$8 sps:$4 sm:$0xff]  }
 0x1f9   : > { %v2281_v3 = vpop.f32.mrb[64].mxu0  ;;  %v2793_v4 = vpop.f32.mrb[64].mxu1  ;;  %v6140_v0 = vld [vmem:[%s6611_s27 + $0x6e4] ss:$8 sps:$4 sm:$0xff]  }
 0x1fa   : > { %4488 = vst.msk [vmem:[%s6800_s26 + $0x7c] sm:$0xf] %vm4456_vm3, %v5538_v61  ;;  %4616 = vst.msk [vmem:[%s6800_s26 + $0x27c] sm:$0xf] %vm4456_vm3, %v5666_v2  ;;  %v2282_v6 = vadd.f32 %v7080_v5, %v2281_v3  ;;  %v2794_v7 = vadd.f32 %v7080_v5, %v2793_v4  ;;  %v2283_v8 = vpop.f32.mrb[65].mxu0  ;;  %v2795_v9 = vpop.f32.mrb[65].mxu1 }
 0x1fb   : > { %v2284_v12 = vpop.f32.mrb[66].mxu0  ;;  %v2796_v13 = vpop.f32.mrb[66].mxu1 }
 0x1fc   : > { %v3208_v16 = vmax.f32 %v2282_v6, 0.0  ;;  %v3336_v17 = vmax.f32 %v2794_v7, 0.0  ;;  %v2285_v18 = vadd.f32 %v7080_v5, %v2284_v12  ;;  %v2797_v19 = vadd.f32 %v7080_v5, %v2796_v13  ;;  %v2286_v20 = vpop.f32.mrb[67].mxu0  ;;  %v2798_v21 = vpop.f32.mrb[67].mxu1 }
 0x1fd   : > { %v6143_v20 = vld [vmem:[%s6611_s27 + $0x6e0] ss:$8 sps:$4 sm:$0xff]  }
 0x1fe   : > { %v5539_v22 = vpack.c.bf16 %v3208_v16, %v3208_v16  ;;  %v5667_v23 = vpack.c.bf16 %v3336_v17, %v3336_v17  ;;  %v3209_v24 = vmax.f32 %v2285_v18, 0.0  ;;  %v3337_v25 = vmax.f32 %v2797_v19, 0.0  ;;  %2496 = vmatmul.mubr.bf16.gmra.mrb[172].mxu0 %v6124_v10  ;;  %3008 = vmatmul.mubr.bf16.gmra.mrb[172].mxu1 %v6125_v11  ;;  %v6142_v19 = vld [vmem:[%s6611_s27 + $0x2e0] ss:$8 sps:$4 sm:$0xff]  }
 0x1ff   : > { %5155 = vmatprep.mubr.msk.bf16.mxu0 %vm1727_vm0, %v6126_v14  ;;  %5219 = vmatprep.mubr.msk.bf16.mxu1 %vm1727_vm0, %v6128_v15 }
 0x200   : > { %4489 = vst.msk [vmem:[%s6800_s26 + $0x80] sm:$0xf] %vm4456_vm3, %v5539_v22  ;;  %4617 = vst.msk [vmem:[%s6800_s26 + $0x280] sm:$0xf] %vm4456_vm3, %v5667_v23  ;;  %v5540_v26 = vpack.c.bf16 %v3209_v24, %v3209_v24  ;;  %v5668_v27 = vpack.c.bf16 %v3337_v25, %v3337_v25  ;;  %v6144_v23 = vld [vmem:[%s6611_s27 + $0x2f4] ss:$8 sps:$4 sm:$0xff]  }
 0x201   : > { %v2289_v28 = vpop.f32.mrb[68].mxu0  ;;  %v2801_v29 = vpop.f32.mrb[68].mxu1  ;;  %v6146_v24 = vld [vmem:[%s6611_s27 + $0x6f4] ss:$8 sps:$4 sm:$0xff]  }
 0x202   : > { %4490 = vst.msk [vmem:[%s6800_s26 + $0x84] sm:$0xf] %vm4456_vm3, %v5540_v26  ;;  %4618 = vst.msk [vmem:[%s6800_s26 + $0x284] sm:$0xf] %vm4456_vm3, %v5668_v27  ;;  %v2290_v30 = vadd.f32 %v7080_v5, %v2289_v28  ;;  %v2802_v31 = vadd.f32 %v7080_v5, %v2801_v29  ;;  %v2291_v32 = vpop.f32.mrb[69].mxu0  ;;  %v2803_v33 = vpop.f32.mrb[69].mxu1 }
 0x203   : > { %v2292_v36 = vpop.f32.mrb[70].mxu0  ;;  %v2804_v37 = vpop.f32.mrb[70].mxu1 }
 0x204   : > { %v3210_v40 = vmax.f32 %v2290_v30, 0.0  ;;  %v3338_v41 = vmax.f32 %v2802_v31, 0.0  ;;  %v2293_v42 = vadd.f32 %v7080_v5, %v2292_v36  ;;  %v2805_v43 = vadd.f32 %v7080_v5, %v2804_v37  ;;  %v2294_v44 = vpop.f32.mrb[71].mxu0  ;;  %v2806_v45 = vpop.f32.mrb[71].mxu1 }
 0x205   : > { %v6149_v44 = vld [vmem:[%s6611_s27 + $0x6f0] ss:$8 sps:$4 sm:$0xff]  }
 0x206   : > { %v5541_v46 = vpack.c.bf16 %v3210_v40, %v3210_v40  ;;  %v5669_v47 = vpack.c.bf16 %v3338_v41, %v3338_v41  ;;  %v3211_v48 = vmax.f32 %v2293_v42, 0.0  ;;  %v3339_v49 = vmax.f32 %v2805_v43, 0.0  ;;  %2504 = vmatmul.mubr.bf16.gmra.mrb[176].mxu0 %v6130_v34  ;;  %3016 = vmatmul.mubr.bf16.gmra.mrb[176].mxu1 %v6131_v35  ;;  %v6148_v43 = vld [vmem:[%s6611_s27 + $0x2f0] ss:$8 sps:$4 sm:$0xff]  }
 0x207   : > { %5156 = vmatprep.mubr.msk.bf16.mxu0 %vm1727_vm0, %v6132_v38  ;;  %5220 = vmatprep.mubr.msk.bf16.mxu1 %vm1727_vm0, %v6134_v39 }
 0x208   : > { %4491 = vst.msk [vmem:[%s6800_s26 + $0x88] sm:$0xf] %vm4456_vm3, %v5541_v46  ;;  %4619 = vst.msk [vmem:[%s6800_s26 + $0x288] sm:$0xf] %vm4456_vm3, %v5669_v47  ;;  %v5542_v50 = vpack.c.bf16 %v3211_v48, %v3211_v48  ;;  %v5670_v51 = vpack.c.bf16 %v3339_v49, %v3339_v49  ;;  %v6150_v47 = vld [vmem:[%s6611_s27 + $0x304] ss:$8 sps:$4 sm:$0xff]  }
 0x209   : > { %v2297_v52 = vpop.f32.mrb[72].mxu0  ;;  %v2809_v53 = vpop.f32.mrb[72].mxu1  ;;  %v6152_v48 = vld [vmem:[%s6611_s27 + $0x704] ss:$8 sps:$4 sm:$0xff]  }
 0x20a   : > { %4492 = vst.msk [vmem:[%s6800_s26 + $0x8c] sm:$0xf] %vm4456_vm3, %v5542_v50  ;;  %4620 = vst.msk [vmem:[%s6800_s26 + $0x28c] sm:$0xf] %vm4456_vm3, %v5670_v51  ;;  %v2298_v54 = vadd.f32 %v7080_v5, %v2297_v52  ;;  %v2810_v55 = vadd.f32 %v7080_v5, %v2809_v53  ;;  %v2299_v56 = vpop.f32.mrb[73].mxu0  ;;  %v2811_v57 = vpop.f32.mrb[73].mxu1 }
 0x20b   : > { %v2300_v60 = vpop.f32.mrb[74].mxu0  ;;  %v2812_v62 = vpop.f32.mrb[74].mxu1 }
 0x20c   : > { %v3212_v1 = vmax.f32 %v2298_v54, 0.0  ;;  %v3340_v61 = vmax.f32 %v2810_v55, 0.0  ;;  %v2301_v2 = vadd.f32 %v7080_v5, %v2300_v60  ;;  %v2813_v3 = vadd.f32 %v7080_v5, %v2812_v62  ;;  %v2302_v4 = vpop.f32.mrb[75].mxu0  ;;  %v2814_v6 = vpop.f32.mrb[75].mxu1 }
 0x20d   : > { %v6155_v4 = vld [vmem:[%s6611_s27 + $0x700] ss:$8 sps:$4 sm:$0xff]  }
 0x20e   : > { %v5543_v7 = vpack.c.bf16 %v3212_v1, %v3212_v1  ;;  %v5671_v8 = vpack.c.bf16 %v3340_v61, %v3340_v61  ;;  %v3213_v9 = vmax.f32 %v2301_v2, 0.0  ;;  %v3341_v10 = vmax.f32 %v2813_v3, 0.0  ;;  %2512 = vmatmul.mubr.bf16.gmra.mrb[180].mxu0 %v6136_v58  ;;  %3024 = vmatmul.mubr.bf16.gmra.mrb[180].mxu1 %v6137_v59  ;;  %v6154_v3 = vld [vmem:[%s6611_s27 + $0x300] ss:$8 sps:$4 sm:$0xff]  }
 0x20f   : > { %5157 = vmatprep.mubr.msk.bf16.mxu0 %vm1727_vm0, %v6138_v63  ;;  %5221 = vmatprep.mubr.msk.bf16.mxu1 %vm1727_vm0, %v6140_v0 }
 0x210   : > { %4493 = vst.msk [vmem:[%s6800_s26 + $0x90] sm:$0xf] %vm4456_vm3, %v5543_v7  ;;  %4621 = vst.msk [vmem:[%s6800_s26 + $0x290] sm:$0xf] %vm4456_vm3, %v5671_v8  ;;  %v5544_v11 = vpack.c.bf16 %v3213_v9, %v3213_v9  ;;  %v5672_v12 = vpack.c.bf16 %v3341_v10, %v3341_v10  ;;  %v6156_v8 = vld [vmem:[%s6611_s27 + $0x314] ss:$8 sps:$4 sm:$0xff]  }
 0x211   : > { %v2305_v13 = vpop.f32.mrb[76].mxu0  ;;  %v2817_v14 = vpop.f32.mrb[76].mxu1  ;;  %v6158_v9 = vld [vmem:[%s6611_s27 + $0x714] ss:$8 sps:$4 sm:$0xff]  }
 0x212   : > { %4494 = vst.msk [vmem:[%s6800_s26 + $0x94] sm:$0xf] %vm4456_vm3, %v5544_v11  ;;  %4622 = vst.msk [vmem:[%s6800_s26 + $0x294] sm:$0xf] %vm4456_vm3, %v5672_v12  ;;  %v2306_v15 = vadd.f32 %v7080_v5, %v2305_v13  ;;  %v2818_v16 = vadd.f32 %v7080_v5, %v2817_v14  ;;  %v2307_v17 = vpop.f32.mrb[77].mxu0  ;;  %v2819_v18 = vpop.f32.mrb[77].mxu1 }
 0x213   : > { %v2308_v21 = vpop.f32.mrb[78].mxu0  ;;  %v2820_v22 = vpop.f32.mrb[78].mxu1 }
 0x214   : > { %v3214_v25 = vmax.f32 %v2306_v15, 0.0  ;;  %v3342_v26 = vmax.f32 %v2818_v16, 0.0  ;;  %v2309_v27 = vadd.f32 %v7080_v5, %v2308_v21  ;;  %v2821_v28 = vadd.f32 %v7080_v5, %v2820_v22  ;;  %v2310_v29 = vpop.f32.mrb[79].mxu0  ;;  %v2822_v30 = vpop.f32.mrb[79].mxu1 }
 0x215   : > { %v6161_v29 = vld [vmem:[%s6611_s27 + $0x710] ss:$8 sps:$4 sm:$0xff]  }
 0x216   : > { %v5545_v31 = vpack.c.bf16 %v3214_v25, %v3214_v25  ;;  %v5673_v32 = vpack.c.bf16 %v3342_v26, %v3342_v26  ;;  %v3215_v33 = vmax.f32 %v2309_v27, 0.0  ;;  %v3343_v34 = vmax.f32 %v2821_v28, 0.0  ;;  %2520 = vmatmul.mubr.bf16.gmra.mrb[184].mxu0 %v6142_v19  ;;  %3032 = vmatmul.mubr.bf16.gmra.mrb[184].mxu1 %v6143_v20  ;;  %v6160_v28 = vld [vmem:[%s6611_s27 + $0x310] ss:$8 sps:$4 sm:$0xff]  }
 0x217   : > { %5158 = vmatprep.mubr.msk.bf16.mxu0 %vm1727_vm0, %v6144_v23  ;;  %5222 = vmatprep.mubr.msk.bf16.mxu1 %vm1727_vm0, %v6146_v24 }
 0x218   : > { %4495 = vst.msk [vmem:[%s6800_s26 + $0x98] sm:$0xf] %vm4456_vm3, %v5545_v31  ;;  %4623 = vst.msk [vmem:[%s6800_s26 + $0x298] sm:$0xf] %vm4456_vm3, %v5673_v32  ;;  %v5546_v35 = vpack.c.bf16 %v3215_v33, %v3215_v33  ;;  %v5674_v36 = vpack.c.bf16 %v3343_v34, %v3343_v34  ;;  %v6162_v32 = vld [vmem:[%s6611_s27 + $0x324] ss:$8 sps:$4 sm:$0xff]  }
 0x219   : > { %v2313_v37 = vpop.f32.mrb[80].mxu0  ;;  %v2825_v38 = vpop.f32.mrb[80].mxu1  ;;  %v6164_v33 = vld [vmem:[%s6611_s27 + $0x724] ss:$8 sps:$4 sm:$0xff]  }
 0x21a   : > { %4496 = vst.msk [vmem:[%s6800_s26 + $0x9c] sm:$0xf] %vm4456_vm3, %v5546_v35  ;;  %4624 = vst.msk [vmem:[%s6800_s26 + $0x29c] sm:$0xf] %vm4456_vm3, %v5674_v36  ;;  %v2314_v39 = vadd.f32 %v7080_v5, %v2313_v37  ;;  %v2826_v40 = vadd.f32 %v7080_v5, %v2825_v38  ;;  %v2315_v41 = vpop.f32.mrb[81].mxu0  ;;  %v2827_v42 = vpop.f32.mrb[81].mxu1 }
 0x21b   : > { %v2316_v45 = vpop.f32.mrb[82].mxu0  ;;  %v2828_v46 = vpop.f32.mrb[82].mxu1 }
 0x21c   : > { %v3216_v49 = vmax.f32 %v2314_v39, 0.0  ;;  %v3344_v50 = vmax.f32 %v2826_v40, 0.0  ;;  %v2317_v51 = vadd.f32 %v7080_v5, %v2316_v45  ;;  %v2829_v52 = vadd.f32 %v7080_v5, %v2828_v46  ;;  %v2318_v53 = vpop.f32.mrb[83].mxu0  ;;  %v2830_v54 = vpop.f32.mrb[83].mxu1 }
 0x21d   : > { %v6167_v53 = vld [vmem:[%s6611_s27 + $0x720] ss:$8 sps:$4 sm:$0xff]  }
 0x21e   : > { %v5547_v55 = vpack.c.bf16 %v3216_v49, %v3216_v49  ;;  %v5675_v56 = vpack.c.bf16 %v3344_v50, %v3344_v50  ;;  %v3217_v57 = vmax.f32 %v2317_v51, 0.0  ;;  %v3345_v58 = vmax.f32 %v2829_v52, 0.0  ;;  %2528 = vmatmul.mubr.bf16.gmra.mrb[188].mxu0 %v6148_v43  ;;  %3040 = vmatmul.mubr.bf16.gmra.mrb[188].mxu1 %v6149_v44  ;;  %v6166_v52 = vld [vmem:[%s6611_s27 + $0x320] ss:$8 sps:$4 sm:$0xff]  }
 0x21f   : > { %5159 = vmatprep.mubr.msk.bf16.mxu0 %vm1727_vm0, %v6150_v47  ;;  %5223 = vmatprep.mubr.msk.bf16.mxu1 %vm1727_vm0, %v6152_v48 }
 0x220   : > { %4497 = vst.msk [vmem:[%s6800_s26 + $0xa0] sm:$0xf] %vm4456_vm3, %v5547_v55  ;;  %4625 = vst.msk [vmem:[%s6800_s26 + $0x2a0] sm:$0xf] %vm4456_vm3, %v5675_v56  ;;  %v5548_v59 = vpack.c.bf16 %v3217_v57, %v3217_v57  ;;  %v5676_v60 = vpack.c.bf16 %v3345_v58, %v3345_v58  ;;  %v6168_v56 = vld [vmem:[%s6611_s27 + $0x334] ss:$8 sps:$4 sm:$0xff]  }
 0x221   : > { %v2321_v62 = vpop.f32.mrb[84].mxu0  ;;  %v2833_v63 = vpop.f32.mrb[84].mxu1  ;;  %v6170_v57 = vld [vmem:[%s6611_s27 + $0x734] ss:$8 sps:$4 sm:$0xff]  }
 0x222   : > { %4498 = vst.msk [vmem:[%s6800_s26 + $0xa4] sm:$0xf] %vm4456_vm3, %v5548_v59  ;;  %4626 = vst.msk [vmem:[%s6800_s26 + $0x2a4] sm:$0xf] %vm4456_vm3, %v5676_v60  ;;  %v2322_v0 = vadd.f32 %v7080_v5, %v2321_v62  ;;  %v2834_v1 = vadd.f32 %v7080_v5, %v2833_v63  ;;  %v2323_v61 = vpop.f32.mrb[85].mxu0  ;;  %v2835_v2 = vpop.f32.mrb[85].mxu1 }
 0x223   : > { %v2324_v6 = vpop.f32.mrb[86].mxu0  ;;  %v2836_v7 = vpop.f32.mrb[86].mxu1 }
 0x224   : > { %v3218_v10 = vmax.f32 %v2322_v0, 0.0  ;;  %v3346_v11 = vmax.f32 %v2834_v1, 0.0  ;;  %v2325_v12 = vadd.f32 %v7080_v5, %v2324_v6  ;;  %v2837_v13 = vadd.f32 %v7080_v5, %v2836_v7  ;;  %v2326_v14 = vpop.f32.mrb[87].mxu0  ;;  %v2838_v15 = vpop.f32.mrb[87].mxu1 }
 0x225   : > { %v6173_v14 = vld [vmem:[%s6611_s27 + $0x730] ss:$8 sps:$4 sm:$0xff]  }
 0x226   : > { %v5549_v16 = vpack.c.bf16 %v3218_v10, %v3218_v10  ;;  %v5677_v17 = vpack.c.bf16 %v3346_v11, %v3346_v11  ;;  %v3219_v18 = vmax.f32 %v2325_v12, 0.0  ;;  %v3347_v19 = vmax.f32 %v2837_v13, 0.0  ;;  %2536 = vmatmul.mubr.bf16.gmra.mrb[192].mxu0 %v6154_v3  ;;  %3048 = vmatmul.mubr.bf16.gmra.mrb[192].mxu1 %v6155_v4  ;;  %v6172_v13 = vld [vmem:[%s6611_s27 + $0x330] ss:$8 sps:$4 sm:$0xff]  }
 0x227   : > { %5160 = vmatprep.mubr.msk.bf16.mxu0 %vm1727_vm0, %v6156_v8  ;;  %5224 = vmatprep.mubr.msk.bf16.mxu1 %vm1727_vm0, %v6158_v9 }
 0x228   : > { %4499 = vst.msk [vmem:[%s6800_s26 + $0xa8] sm:$0xf] %vm4456_vm3, %v5549_v16  ;;  %4627 = vst.msk [vmem:[%s6800_s26 + $0x2a8] sm:$0xf] %vm4456_vm3, %v5677_v17  ;;  %v5550_v20 = vpack.c.bf16 %v3219_v18, %v3219_v18  ;;  %v5678_v21 = vpack.c.bf16 %v3347_v19, %v3347_v19  ;;  %v6174_v17 = vld [vmem:[%s6611_s27 + $0x344] ss:$8 sps:$4 sm:$0xff]  }
 0x229   : > { %v2329_v22 = vpop.f32.mrb[88].mxu0  ;;  %v2841_v23 = vpop.f32.mrb[88].mxu1  ;;  %v6176_v18 = vld [vmem:[%s6611_s27 + $0x744] ss:$8 sps:$4 sm:$0xff]  }
 0x22a   : > { %4500 = vst.msk [vmem:[%s6800_s26 + $0xac] sm:$0xf] %vm4456_vm3, %v5550_v20  ;;  %4628 = vst.msk [vmem:[%s6800_s26 + $0x2ac] sm:$0xf] %vm4456_vm3, %v5678_v21  ;;  %v2330_v24 = vadd.f32 %v7080_v5, %v2329_v22  ;;  %v2842_v25 = vadd.f32 %v7080_v5, %v2841_v23  ;;  %v2331_v26 = vpop.f32.mrb[89].mxu0  ;;  %v2843_v27 = vpop.f32.mrb[89].mxu1 }
 0x22b   : > { %v2332_v30 = vpop.f32.mrb[90].mxu0  ;;  %v2844_v31 = vpop.f32.mrb[90].mxu1 }
 0x22c   : > { %v3220_v34 = vmax.f32 %v2330_v24, 0.0  ;;  %v3348_v35 = vmax.f32 %v2842_v25, 0.0  ;;  %v2333_v36 = vadd.f32 %v7080_v5, %v2332_v30  ;;  %v2845_v37 = vadd.f32 %v7080_v5, %v2844_v31  ;;  %v2334_v38 = vpop.f32.mrb[91].mxu0  ;;  %v2846_v39 = vpop.f32.mrb[91].mxu1 }
 0x22d   : > { %v6179_v38 = vld [vmem:[%s6611_s27 + $0x740] ss:$8 sps:$4 sm:$0xff]  }
 0x22e   : > { %v5551_v40 = vpack.c.bf16 %v3220_v34, %v3220_v34  ;;  %v5679_v41 = vpack.c.bf16 %v3348_v35, %v3348_v35  ;;  %v3221_v42 = vmax.f32 %v2333_v36, 0.0  ;;  %v3349_v43 = vmax.f32 %v2845_v37, 0.0  ;;  %2544 = vmatmul.mubr.bf16.gmra.mrb[196].mxu0 %v6160_v28  ;;  %3056 = vmatmul.mubr.bf16.gmra.mrb[196].mxu1 %v6161_v29  ;;  %v6178_v37 = vld [vmem:[%s6611_s27 + $0x340] ss:$8 sps:$4 sm:$0xff]  }
 0x22f   : > { %5161 = vmatprep.mubr.msk.bf16.mxu0 %vm1727_vm0, %v6162_v32  ;;  %5225 = vmatprep.mubr.msk.bf16.mxu1 %vm1727_vm0, %v6164_v33 }
 0x230   : > { %4501 = vst.msk [vmem:[%s6800_s26 + $0xb0] sm:$0xf] %vm4456_vm3, %v5551_v40  ;;  %4629 = vst.msk [vmem:[%s6800_s26 + $0x2b0] sm:$0xf] %vm4456_vm3, %v5679_v41  ;;  %v5552_v44 = vpack.c.bf16 %v3221_v42, %v3221_v42  ;;  %v5680_v45 = vpack.c.bf16 %v3349_v43, %v3349_v43  ;;  %v6180_v41 = vld [vmem:[%s6611_s27 + $0x354] ss:$8 sps:$4 sm:$0xff]  }
 0x231   : > { %v2337_v46 = vpop.f32.mrb[92].mxu0  ;;  %v2849_v47 = vpop.f32.mrb[92].mxu1  ;;  %v6182_v42 = vld [vmem:[%s6611_s27 + $0x754] ss:$8 sps:$4 sm:$0xff]  }
 0x232   : > { %4502 = vst.msk [vmem:[%s6800_s26 + $0xb4] sm:$0xf] %vm4456_vm3, %v5552_v44  ;;  %4630 = vst.msk [vmem:[%s6800_s26 + $0x2b4] sm:$0xf] %vm4456_vm3, %v5680_v45  ;;  %v2338_v48 = vadd.f32 %v7080_v5, %v2337_v46  ;;  %v2850_v49 = vadd.f32 %v7080_v5, %v2849_v47  ;;  %v2339_v50 = vpop.f32.mrb[93].mxu0  ;;  %v2851_v51 = vpop.f32.mrb[93].mxu1 }
 0x233   : > { %v2340_v54 = vpop.f32.mrb[94].mxu0  ;;  %v2852_v55 = vpop.f32.mrb[94].mxu1 }
 0x234   : > { %v3222_v58 = vmax.f32 %v2338_v48, 0.0  ;;  %v3350_v59 = vmax.f32 %v2850_v49, 0.0  ;;  %v2341_v60 = vadd.f32 %v7080_v5, %v2340_v54  ;;  %v2853_v62 = vadd.f32 %v7080_v5, %v2852_v55  ;;  %v2342_v63 = vpop.f32.mrb[95].mxu0  ;;  %v2854_v0 = vpop.f32.mrb[95].mxu1 }
 0x235   : > { %v6185_v63 = vld [vmem:[%s6611_s27 + $0x750] ss:$8 sps:$4 sm:$0xff]  }
 0x236   : > { %v5553_v1 = vpack.c.bf16 %v3222_v58, %v3222_v58  ;;  %v5681_v61 = vpack.c.bf16 %v3350_v59, %v3350_v59  ;;  %v3223_v2 = vmax.f32 %v2341_v60, 0.0  ;;  %v3351_v3 = vmax.f32 %v2853_v62, 0.0  ;;  %2552 = vmatmul.mubr.bf16.gmra.mrb[200].mxu0 %v6166_v52  ;;  %3064 = vmatmul.mubr.bf16.gmra.mrb[200].mxu1 %v6167_v53  ;;  %v6184_v62 = vld [vmem:[%s6611_s27 + $0x350] ss:$8 sps:$4 sm:$0xff]  }
 0x237   : > { %5162 = vmatprep.mubr.msk.bf16.mxu0 %vm1727_vm0, %v6168_v56  ;;  %5226 = vmatprep.mubr.msk.bf16.mxu1 %vm1727_vm0, %v6170_v57 }
 0x238   : > { %4503 = vst.msk [vmem:[%s6800_s26 + $0xb8] sm:$0xf] %vm4456_vm3, %v5553_v1  ;;  %4631 = vst.msk [vmem:[%s6800_s26 + $0x2b8] sm:$0xf] %vm4456_vm3, %v5681_v61  ;;  %v5554_v4 = vpack.c.bf16 %v3223_v2, %v3223_v2  ;;  %v5682_v6 = vpack.c.bf16 %v3351_v3, %v3351_v3  ;;  %v6186_v61 = vld [vmem:[%s6611_s27 + $0x364] ss:$8 sps:$4 sm:$0xff]  }
 0x239   : > { %v2345_v7 = vpop.f32.mrb[96].mxu0  ;;  %v2857_v8 = vpop.f32.mrb[96].mxu1  ;;  %v6188_v2 = vld [vmem:[%s6611_s27 + $0x764] ss:$8 sps:$4 sm:$0xff]  }
 0x23a   : > { %4504 = vst.msk [vmem:[%s6800_s26 + $0xbc] sm:$0xf] %vm4456_vm3, %v5554_v4  ;;  %4632 = vst.msk [vmem:[%s6800_s26 + $0x2bc] sm:$0xf] %vm4456_vm3, %v5682_v6  ;;  %v2346_v9 = vadd.f32 %v7080_v5, %v2345_v7  ;;  %v2858_v10 = vadd.f32 %v7080_v5, %v2857_v8  ;;  %v2347_v11 = vpop.f32.mrb[97].mxu0  ;;  %v2859_v12 = vpop.f32.mrb[97].mxu1 }
 0x23b   : > { %v2348_v15 = vpop.f32.mrb[98].mxu0  ;;  %v2860_v16 = vpop.f32.mrb[98].mxu1 }
 0x23c   : > { %v3224_v19 = vmax.f32 %v2346_v9, 0.0  ;;  %v3352_v20 = vmax.f32 %v2858_v10, 0.0  ;;  %v2349_v21 = vadd.f32 %v7080_v5, %v2348_v15  ;;  %v2861_v22 = vadd.f32 %v7080_v5, %v2860_v16  ;;  %v2350_v23 = vpop.f32.mrb[99].mxu0  ;;  %v2862_v24 = vpop.f32.mrb[99].mxu1 }
 0x23d   : > { %v6191_v23 = vld [vmem:[%s6611_s27 + $0x760] ss:$8 sps:$4 sm:$0xff]  }
 0x23e   : > { %v5555_v25 = vpack.c.bf16 %v3224_v19, %v3224_v19  ;;  %v5683_v26 = vpack.c.bf16 %v3352_v20, %v3352_v20  ;;  %v3225_v27 = vmax.f32 %v2349_v21, 0.0  ;;  %v3353_v28 = vmax.f32 %v2861_v22, 0.0  ;;  %2560 = vmatmul.mubr.bf16.gmra.mrb[204].mxu0 %v6172_v13  ;;  %3072 = vmatmul.mubr.bf16.gmra.mrb[204].mxu1 %v6173_v14  ;;  %v6190_v22 = vld [vmem:[%s6611_s27 + $0x360] ss:$8 sps:$4 sm:$0xff]  }
 0x23f   : > { %5163 = vmatprep.mubr.msk.bf16.mxu0 %vm1727_vm0, %v6174_v17  ;;  %5227 = vmatprep.mubr.msk.bf16.mxu1 %vm1727_vm0, %v6176_v18 }
 0x240   : > { %4505 = vst.msk [vmem:[%s6800_s26 + $0xc0] sm:$0xf] %vm4456_vm3, %v5555_v25  ;;  %4633 = vst.msk [vmem:[%s6800_s26 + $0x2c0] sm:$0xf] %vm4456_vm3, %v5683_v26  ;;  %v5556_v29 = vpack.c.bf16 %v3225_v27, %v3225_v27  ;;  %v5684_v30 = vpack.c.bf16 %v3353_v28, %v3353_v28  ;;  %v6192_v26 = vld [vmem:[%s6611_s27 + $0x374] ss:$8 sps:$4 sm:$0xff]  }
 0x241   : > { %v2353_v31 = vpop.f32.mrb[100].mxu0  ;;  %v2865_v32 = vpop.f32.mrb[100].mxu1  ;;  %v6194_v27 = vld [vmem:[%s6611_s27 + $0x774] ss:$8 sps:$4 sm:$0xff]  }
 0x242   : > { %4506 = vst.msk [vmem:[%s6800_s26 + $0xc4] sm:$0xf] %vm4456_vm3, %v5556_v29  ;;  %4634 = vst.msk [vmem:[%s6800_s26 + $0x2c4] sm:$0xf] %vm4456_vm3, %v5684_v30  ;;  %v2354_v33 = vadd.f32 %v7080_v5, %v2353_v31  ;;  %v2866_v34 = vadd.f32 %v7080_v5, %v2865_v32  ;;  %v2355_v35 = vpop.f32.mrb[101].mxu0  ;;  %v2867_v36 = vpop.f32.mrb[101].mxu1 }
 0x243   : > { %v2356_v39 = vpop.f32.mrb[102].mxu0  ;;  %v2868_v40 = vpop.f32.mrb[102].mxu1 }
 0x244   : > { %v3226_v43 = vmax.f32 %v2354_v33, 0.0  ;;  %v3354_v44 = vmax.f32 %v2866_v34, 0.0  ;;  %v2357_v45 = vadd.f32 %v7080_v5, %v2356_v39  ;;  %v2869_v46 = vadd.f32 %v7080_v5, %v2868_v40  ;;  %v2358_v47 = vpop.f32.mrb[103].mxu0  ;;  %v2870_v48 = vpop.f32.mrb[103].mxu1 }
 0x245   : > { %v6197_v47 = vld [vmem:[%s6611_s27 + $0x770] ss:$8 sps:$4 sm:$0xff]  }
 0x246   : > { %v5557_v49 = vpack.c.bf16 %v3226_v43, %v3226_v43  ;;  %v5685_v50 = vpack.c.bf16 %v3354_v44, %v3354_v44  ;;  %v3227_v51 = vmax.f32 %v2357_v45, 0.0  ;;  %v3355_v52 = vmax.f32 %v2869_v46, 0.0  ;;  %2568 = vmatmul.mubr.bf16.gmra.mrb[208].mxu0 %v6178_v37  ;;  %3080 = vmatmul.mubr.bf16.gmra.mrb[208].mxu1 %v6179_v38  ;;  %v6196_v46 = vld [vmem:[%s6611_s27 + $0x370] ss:$8 sps:$4 sm:$0xff]  }
 0x247   : > { %5164 = vmatprep.mubr.msk.bf16.mxu0 %vm1727_vm0, %v6180_v41  ;;  %5228 = vmatprep.mubr.msk.bf16.mxu1 %vm1727_vm0, %v6182_v42 }
 0x248   : > { %4507 = vst.msk [vmem:[%s6800_s26 + $0xc8] sm:$0xf] %vm4456_vm3, %v5557_v49  ;;  %4635 = vst.msk [vmem:[%s6800_s26 + $0x2c8] sm:$0xf] %vm4456_vm3, %v5685_v50  ;;  %v5558_v53 = vpack.c.bf16 %v3227_v51, %v3227_v51  ;;  %v5686_v54 = vpack.c.bf16 %v3355_v52, %v3355_v52  ;;  %v6198_v50 = vld [vmem:[%s6611_s27 + $0x384] ss:$8 sps:$4 sm:$0xff]  }
 0x249   : > { %v2361_v55 = vpop.f32.mrb[104].mxu0  ;;  %v2873_v56 = vpop.f32.mrb[104].mxu1  ;;  %v6200_v51 = vld [vmem:[%s6611_s27 + $0x784] ss:$8 sps:$4 sm:$0xff]  }
 0x24a   : > { %4508 = vst.msk [vmem:[%s6800_s26 + $0xcc] sm:$0xf] %vm4456_vm3, %v5558_v53  ;;  %4636 = vst.msk [vmem:[%s6800_s26 + $0x2cc] sm:$0xf] %vm4456_vm3, %v5686_v54  ;;  %v2362_v57 = vadd.f32 %v7080_v5, %v2361_v55  ;;  %v2874_v58 = vadd.f32 %v7080_v5, %v2873_v56  ;;  %v2363_v59 = vpop.f32.mrb[105].mxu0  ;;  %v2875_v60 = vpop.f32.mrb[105].mxu1 }
 0x24b   : > { %v2364_v0 = vpop.f32.mrb[106].mxu0  ;;  %v2876_v1 = vpop.f32.mrb[106].mxu1 }
 0x24c   : > { %v3228_v3 = vmax.f32 %v2362_v57, 0.0  ;;  %v3356_v4 = vmax.f32 %v2874_v58, 0.0  ;;  %v2365_v6 = vadd.f32 %v7080_v5, %v2364_v0  ;;  %v2877_v7 = vadd.f32 %v7080_v5, %v2876_v1  ;;  %v2366_v8 = vpop.f32.mrb[107].mxu0  ;;  %v2878_v9 = vpop.f32.mrb[107].mxu1 }
 0x24d   : > { %v6203_v8 = vld [vmem:[%s6611_s27 + $0x780] ss:$8 sps:$4 sm:$0xff]  }
 0x24e   : > { %v5559_v10 = vpack.c.bf16 %v3228_v3, %v3228_v3  ;;  %v5687_v11 = vpack.c.bf16 %v3356_v4, %v3356_v4  ;;  %v3229_v12 = vmax.f32 %v2365_v6, 0.0  ;;  %v3357_v13 = vmax.f32 %v2877_v7, 0.0  ;;  %2576 = vmatmul.mubr.bf16.gmra.mrb[212].mxu0 %v6184_v62  ;;  %3088 = vmatmul.mubr.bf16.gmra.mrb[212].mxu1 %v6185_v63  ;;  %v6202_v7 = vld [vmem:[%s6611_s27 + $0x380] ss:$8 sps:$4 sm:$0xff]  }
 0x24f   : > { %5165 = vmatprep.mubr.msk.bf16.mxu0 %vm1727_vm0, %v6186_v61  ;;  %5229 = vmatprep.mubr.msk.bf16.mxu1 %vm1727_vm0, %v6188_v2 }
 0x250   : > { %4509 = vst.msk [vmem:[%s6800_s26 + $0xd0] sm:$0xf] %vm4456_vm3, %v5559_v10  ;;  %4637 = vst.msk [vmem:[%s6800_s26 + $0x2d0] sm:$0xf] %vm4456_vm3, %v5687_v11  ;;  %v5560_v14 = vpack.c.bf16 %v3229_v12, %v3229_v12  ;;  %v5688_v15 = vpack.c.bf16 %v3357_v13, %v3357_v13  ;;  %v6204_v11 = vld [vmem:[%s6611_s27 + $0x394] ss:$8 sps:$4 sm:$0xff]  }
 0x251   : > { %v2369_v16 = vpop.f32.mrb[108].mxu0  ;;  %v2881_v17 = vpop.f32.mrb[108].mxu1  ;;  %v6206_v12 = vld [vmem:[%s6611_s27 + $0x794] ss:$8 sps:$4 sm:$0xff]  }
 0x252   : > { %4510 = vst.msk [vmem:[%s6800_s26 + $0xd4] sm:$0xf] %vm4456_vm3, %v5560_v14  ;;  %4638 = vst.msk [vmem:[%s6800_s26 + $0x2d4] sm:$0xf] %vm4456_vm3, %v5688_v15  ;;  %v2370_v18 = vadd.f32 %v7080_v5, %v2369_v16  ;;  %v2882_v19 = vadd.f32 %v7080_v5, %v2881_v17  ;;  %v2371_v20 = vpop.f32.mrb[109].mxu0  ;;  %v2883_v21 = vpop.f32.mrb[109].mxu1 }
 0x253   : > { %v2372_v24 = vpop.f32.mrb[110].mxu0  ;;  %v2884_v25 = vpop.f32.mrb[110].mxu1 }
 0x254   : > { %v3230_v28 = vmax.f32 %v2370_v18, 0.0  ;;  %v3358_v29 = vmax.f32 %v2882_v19, 0.0  ;;  %v2373_v30 = vadd.f32 %v7080_v5, %v2372_v24  ;;  %v2885_v31 = vadd.f32 %v7080_v5, %v2884_v25  ;;  %v2374_v32 = vpop.f32.mrb[111].mxu0  ;;  %v2886_v33 = vpop.f32.mrb[111].mxu1 }
 0x255   : > { %v6209_v32 = vld [vmem:[%s6611_s27 + $0x790] ss:$8 sps:$4 sm:$0xff]  }
 0x256   : > { %v5561_v34 = vpack.c.bf16 %v3230_v28, %v3230_v28  ;;  %v5689_v35 = vpack.c.bf16 %v3358_v29, %v3358_v29  ;;  %v3231_v36 = vmax.f32 %v2373_v30, 0.0  ;;  %v3359_v37 = vmax.f32 %v2885_v31, 0.0  ;;  %2584 = vmatmul.mubr.bf16.gmra.mrb[216].mxu0 %v6190_v22  ;;  %3096 = vmatmul.mubr.bf16.gmra.mrb[216].mxu1 %v6191_v23  ;;  %v6208_v31 = vld [vmem:[%s6611_s27 + $0x390] ss:$8 sps:$4 sm:$0xff]  }
 0x257   : > { %5166 = vmatprep.mubr.msk.bf16.mxu0 %vm1727_vm0, %v6192_v26  ;;  %5230 = vmatprep.mubr.msk.bf16.mxu1 %vm1727_vm0, %v6194_v27 }
 0x258   : > { %4511 = vst.msk [vmem:[%s6800_s26 + $0xd8] sm:$0xf] %vm4456_vm3, %v5561_v34  ;;  %4639 = vst.msk [vmem:[%s6800_s26 + $0x2d8] sm:$0xf] %vm4456_vm3, %v5689_v35  ;;  %v5562_v38 = vpack.c.bf16 %v3231_v36, %v3231_v36  ;;  %v5690_v39 = vpack.c.bf16 %v3359_v37, %v3359_v37  ;;  %v6210_v35 = vld [vmem:[%s6611_s27 + $0x3a4] ss:$8 sps:$4 sm:$0xff]  }
 0x259   : > { %v2377_v40 = vpop.f32.mrb[112].mxu0  ;;  %v2889_v41 = vpop.f32.mrb[112].mxu1  ;;  %v6212_v36 = vld [vmem:[%s6611_s27 + $0x7a4] ss:$8 sps:$4 sm:$0xff]  }
 0x25a   : > { %4512 = vst.msk [vmem:[%s6800_s26 + $0xdc] sm:$0xf] %vm4456_vm3, %v5562_v38  ;;  %4640 = vst.msk [vmem:[%s6800_s26 + $0x2dc] sm:$0xf] %vm4456_vm3, %v5690_v39  ;;  %v2378_v42 = vadd.f32 %v7080_v5, %v2377_v40  ;;  %v2890_v43 = vadd.f32 %v7080_v5, %v2889_v41  ;;  %v2379_v44 = vpop.f32.mrb[113].mxu0  ;;  %v2891_v45 = vpop.f32.mrb[113].mxu1 }
 0x25b   : > { %v2380_v48 = vpop.f32.mrb[114].mxu0  ;;  %v2892_v49 = vpop.f32.mrb[114].mxu1 }
 0x25c   : > { %v3232_v52 = vmax.f32 %v2378_v42, 0.0  ;;  %v3360_v53 = vmax.f32 %v2890_v43, 0.0  ;;  %v2381_v54 = vadd.f32 %v7080_v5, %v2380_v48  ;;  %v2893_v55 = vadd.f32 %v7080_v5, %v2892_v49  ;;  %v2382_v56 = vpop.f32.mrb[115].mxu0  ;;  %v2894_v57 = vpop.f32.mrb[115].mxu1 }
 0x25d   : > { %v6215_v56 = vld [vmem:[%s6611_s27 + $0x7a0] ss:$8 sps:$4 sm:$0xff]  }
 0x25e   : > { %v5563_v58 = vpack.c.bf16 %v3232_v52, %v3232_v52  ;;  %v5691_v59 = vpack.c.bf16 %v3360_v53, %v3360_v53  ;;  %v3233_v60 = vmax.f32 %v2381_v54, 0.0  ;;  %v3361_v62 = vmax.f32 %v2893_v55, 0.0  ;;  %2592 = vmatmul.mubr.bf16.gmra.mrb[220].mxu0 %v6196_v46  ;;  %3104 = vmatmul.mubr.bf16.gmra.mrb[220].mxu1 %v6197_v47  ;;  %v6214_v55 = vld [vmem:[%s6611_s27 + $0x3a0] ss:$8 sps:$4 sm:$0xff]  }
 0x25f   : > { %5167 = vmatprep.mubr.msk.bf16.mxu0 %vm1727_vm0, %v6198_v50  ;;  %5231 = vmatprep.mubr.msk.bf16.mxu1 %vm1727_vm0, %v6200_v51 }
 0x260   : > { %4513 = vst.msk [vmem:[%s6800_s26 + $0xe0] sm:$0xf] %vm4456_vm3, %v5563_v58  ;;  %4641 = vst.msk [vmem:[%s6800_s26 + $0x2e0] sm:$0xf] %vm4456_vm3, %v5691_v59  ;;  %v5564_v63 = vpack.c.bf16 %v3233_v60, %v3233_v60  ;;  %v5692_v0 = vpack.c.bf16 %v3361_v62, %v3361_v62  ;;  %v6216_v59 = vld [vmem:[%s6611_s27 + $0x3b4] ss:$8 sps:$4 sm:$0xff]  }
 0x261   : > { %v2385_v1 = vpop.f32.mrb[116].mxu0  ;;  %v2897_v61 = vpop.f32.mrb[116].mxu1  ;;  %v6218_v60 = vld [vmem:[%s6611_s27 + $0x7b4] ss:$8 sps:$4 sm:$0xff]  }
 0x262   : > { %4514 = vst.msk [vmem:[%s6800_s26 + $0xe4] sm:$0xf] %vm4456_vm3, %v5564_v63  ;;  %4642 = vst.msk [vmem:[%s6800_s26 + $0x2e4] sm:$0xf] %vm4456_vm3, %v5692_v0  ;;  %v2386_v2 = vadd.f32 %v7080_v5, %v2385_v1  ;;  %v2898_v3 = vadd.f32 %v7080_v5, %v2897_v61  ;;  %v2387_v4 = vpop.f32.mrb[117].mxu0  ;;  %v2899_v6 = vpop.f32.mrb[117].mxu1 }
 0x263   : > { %v2388_v9 = vpop.f32.mrb[118].mxu0  ;;  %v2900_v10 = vpop.f32.mrb[118].mxu1 }
 0x264   : > { %v3234_v13 = vmax.f32 %v2386_v2, 0.0  ;;  %v3362_v14 = vmax.f32 %v2898_v3, 0.0  ;;  %v2389_v15 = vadd.f32 %v7080_v5, %v2388_v9  ;;  %v2901_v16 = vadd.f32 %v7080_v5, %v2900_v10  ;;  %v2390_v17 = vpop.f32.mrb[119].mxu0  ;;  %v2902_v18 = vpop.f32.mrb[119].mxu1 }
 0x265   : > { %v6221_v17 = vld [vmem:[%s6611_s27 + $0x7b0] ss:$8 sps:$4 sm:$0xff]  }
 0x266   : > { %v5565_v19 = vpack.c.bf16 %v3234_v13, %v3234_v13  ;;  %v5693_v20 = vpack.c.bf16 %v3362_v14, %v3362_v14  ;;  %v3235_v21 = vmax.f32 %v2389_v15, 0.0  ;;  %v3363_v22 = vmax.f32 %v2901_v16, 0.0  ;;  %2600 = vmatmul.mubr.bf16.gmra.mrb[224].mxu0 %v6202_v7  ;;  %3112 = vmatmul.mubr.bf16.gmra.mrb[224].mxu1 %v6203_v8  ;;  %v6220_v16 = vld [vmem:[%s6611_s27 + $0x3b0] ss:$8 sps:$4 sm:$0xff]  }
 0x267   : > { %5168 = vmatprep.mubr.msk.bf16.mxu0 %vm1727_vm0, %v6204_v11  ;;  %5232 = vmatprep.mubr.msk.bf16.mxu1 %vm1727_vm0, %v6206_v12  ;;  %v7370_v11 = vld [vmem:[#allocation7] ss:$0 sm:$0xff] }
 0x268   : > { %4515 = vst.msk [vmem:[%s6800_s26 + $0xe8] sm:$0xf] %vm4456_vm3, %v5565_v19  ;;  %4643 = vst.msk [vmem:[%s6800_s26 + $0x2e8] sm:$0xf] %vm4456_vm3, %v5693_v20  ;;  %v5566_v23 = vpack.c.bf16 %v3235_v21, %v3235_v21  ;;  %v5694_v24 = vpack.c.bf16 %v3363_v22, %v3363_v22  ;;  %v6222_v20 = vld [vmem:[%s6611_s27 + $0x3c4] ss:$8 sps:$4 sm:$0xff]  }
 0x269   : > { %v2393_v25 = vpop.f32.mrb[120].mxu0  ;;  %v2905_v26 = vpop.f32.mrb[120].mxu1  ;;  %v6224_v21 = vld [vmem:[%s6611_s27 + $0x7c4] ss:$8 sps:$4 sm:$0xff]  }
 0x26a   : > { %4516 = vst.msk [vmem:[%s6800_s26 + $0xec] sm:$0xf] %vm4456_vm3, %v5566_v23  ;;  %4644 = vst.msk [vmem:[%s6800_s26 + $0x2ec] sm:$0xf] %vm4456_vm3, %v5694_v24  ;;  %v2394_v27 = vadd.f32 %v7080_v5, %v2393_v25  ;;  %v2906_v28 = vadd.f32 %v7080_v5, %v2905_v26  ;;  %v2395_v29 = vpop.f32.mrb[121].mxu0  ;;  %v2907_v30 = vpop.f32.mrb[121].mxu1 }
 0x26b   : > { %v2396_v33 = vpop.f32.mrb[122].mxu0  ;;  %v2908_v34 = vpop.f32.mrb[122].mxu1 }
 0x26c   : > { %v3236_v37 = vmax.f32 %v2394_v27, 0.0  ;;  %v3364_v38 = vmax.f32 %v2906_v28, 0.0  ;;  %v2397_v39 = vadd.f32 %v7080_v5, %v2396_v33  ;;  %v2909_v40 = vadd.f32 %v7080_v5, %v2908_v34  ;;  %v2398_v41 = vpop.f32.mrb[123].mxu0  ;;  %v2910_v42 = vpop.f32.mrb[123].mxu1 }
 0x26d   : > { %v6227_v41 = vld [vmem:[%s6611_s27 + $0x7c0] ss:$8 sps:$4 sm:$0xff]  }
 0x26e   : > { %v5567_v43 = vpack.c.bf16 %v3236_v37, %v3236_v37  ;;  %v5695_v44 = vpack.c.bf16 %v3364_v38, %v3364_v38  ;;  %v3237_v45 = vmax.f32 %v2397_v39, 0.0  ;;  %v3365_v46 = vmax.f32 %v2909_v40, 0.0  ;;  %2608 = vmatmul.mubr.bf16.gmra.mrb[228].mxu0 %v6208_v31  ;;  %3120 = vmatmul.mubr.bf16.gmra.mrb[228].mxu1 %v6209_v32  ;;  %v6226_v40 = vld [vmem:[%s6611_s27 + $0x3c0] ss:$8 sps:$4 sm:$0xff]  }
 0x26f   : > { %5169 = vmatprep.mubr.msk.bf16.mxu0 %vm1727_vm0, %v6210_v35  ;;  %5233 = vmatprep.mubr.msk.bf16.mxu1 %vm1727_vm0, %v6212_v36 }
 0x270   : > { %4517 = vst.msk [vmem:[%s6800_s26 + $0xf0] sm:$0xf] %vm4456_vm3, %v5567_v43  ;;  %4645 = vst.msk [vmem:[%s6800_s26 + $0x2f0] sm:$0xf] %vm4456_vm3, %v5695_v44  ;;  %v5568_v47 = vpack.c.bf16 %v3237_v45, %v3237_v45  ;;  %v5696_v48 = vpack.c.bf16 %v3365_v46, %v3365_v46  ;;  %v6228_v44 = vld [vmem:[%s6611_s27 + $0x3d4] ss:$8 sps:$4 sm:$0xff]  }
 0x271   : > { %v2401_v49 = vpop.f32.mrb[124].mxu0  ;;  %v2913_v50 = vpop.f32.mrb[124].mxu1  ;;  %v6230_v45 = vld [vmem:[%s6611_s27 + $0x7d4] ss:$8 sps:$4 sm:$0xff]  }
 0x272   : > { %4518 = vst.msk [vmem:[%s6800_s26 + $0xf4] sm:$0xf] %vm4456_vm3, %v5568_v47  ;;  %4646 = vst.msk [vmem:[%s6800_s26 + $0x2f4] sm:$0xf] %vm4456_vm3, %v5696_v48  ;;  %v2402_v51 = vadd.f32 %v7080_v5, %v2401_v49  ;;  %v2914_v52 = vadd.f32 %v7080_v5, %v2913_v50  ;;  %v2403_v53 = vpop.f32.mrb[125].mxu0  ;;  %v2915_v54 = vpop.f32.mrb[125].mxu1 }
 0x273   : > { %v2404_v57 = vpop.f32.mrb[126].mxu0  ;;  %v2916_v58 = vpop.f32.mrb[126].mxu1 }
 0x274   : > { %v3238_v62 = vmax.f32 %v2402_v51, 0.0  ;;  %v3366_v63 = vmax.f32 %v2914_v52, 0.0  ;;  %v2405_v0 = vadd.f32 %v7080_v5, %v2404_v57  ;;  %v2917_v1 = vadd.f32 %v7080_v5, %v2916_v58  ;;  %v2406_v61 = vpop.f32.mrb[127].mxu0  ;;  %v2918_v2 = vpop.f32.mrb[127].mxu1 }
 0x275   : > { %v6233_v61 = vld [vmem:[%s6611_s27 + $0x7d0] ss:$8 sps:$4 sm:$0xff]  }
 0x276   : > { %v5569_v3 = vpack.c.bf16 %v3238_v62, %v3238_v62  ;;  %v5697_v4 = vpack.c.bf16 %v3366_v63, %v3366_v63  ;;  %v3239_v6 = vmax.f32 %v2405_v0, 0.0  ;;  %v3367_v7 = vmax.f32 %v2917_v1, 0.0  ;;  %2616 = vmatmul.mubr.bf16.gmra.mrb[232].mxu0 %v6214_v55  ;;  %3128 = vmatmul.mubr.bf16.gmra.mrb[232].mxu1 %v6215_v56  ;;  %v6232_v1 = vld [vmem:[%s6611_s27 + $0x3d0] ss:$8 sps:$4 sm:$0xff]  }
 0x277   : > { %5170 = vmatprep.mubr.msk.bf16.mxu0 %vm1727_vm0, %v6216_v59  ;;  %5234 = vmatprep.mubr.msk.bf16.mxu1 %vm1727_vm0, %v6218_v60 }
 0x278   : > { %4519 = vst.msk [vmem:[%s6800_s26 + $0xf8] sm:$0xf] %vm4456_vm3, %v5569_v3  ;;  %4647 = vst.msk [vmem:[%s6800_s26 + $0x2f8] sm:$0xf] %vm4456_vm3, %v5697_v4  ;;  %v5570_v5 = vpack.c.bf16 %v3239_v6, %v3239_v6  ;;  %v5698_v8 = vpack.c.bf16 %v3367_v7, %v3367_v7  ;;  %v6234_v4 = vld [vmem:[%s6611_s27 + $0x3e4] ss:$8 sps:$4 sm:$0xff]  }
 0x279   : > { %v2409_v9 = vpop.f32.mrb[128].mxu0  ;;  %v2921_v10 = vpop.f32.mrb[128].mxu1  ;;  %v6236_v6 = vld [vmem:[%s6611_s27 + $0x7e4] ss:$8 sps:$4 sm:$0xff]  }
 0x27a   : > { %4520 = vst.msk [vmem:[%s6800_s26 + $0xfc] sm:$0xf] %vm4456_vm3, %v5570_v5  ;;  %4648 = vst.msk [vmem:[%s6800_s26 + $0x2fc] sm:$0xf] %vm4456_vm3, %v5698_v8  ;;  %v2410_v12 = vadd.f32 %v7370_v11, %v2409_v9  ;;  %v2922_v13 = vadd.f32 %v7370_v11, %v2921_v10  ;;  %v2411_v14 = vpop.f32.mrb[129].mxu0  ;;  %v2923_v15 = vpop.f32.mrb[129].mxu1 }
 0x27b   : > { %v2412_v18 = vpop.f32.mrb[130].mxu0  ;;  %v2924_v19 = vpop.f32.mrb[130].mxu1 }
 0x27c   : > { %v3240_v22 = vmax.f32 %v2410_v12, 0.0  ;;  %v3368_v23 = vmax.f32 %v2922_v13, 0.0  ;;  %v2413_v24 = vadd.f32 %v7370_v11, %v2412_v18  ;;  %v2925_v25 = vadd.f32 %v7370_v11, %v2924_v19  ;;  %v2414_v26 = vpop.f32.mrb[131].mxu0  ;;  %v2926_v27 = vpop.f32.mrb[131].mxu1 }
 0x27d   : > { %v6239_v26 = vld [vmem:[%s6611_s27 + $0x7e0] ss:$8 sps:$4 sm:$0xff]  }
 0x27e   : > { %v5571_v28 = vpack.c.bf16 %v3240_v22, %v3240_v22  ;;  %v5699_v29 = vpack.c.bf16 %v3368_v23, %v3368_v23  ;;  %v3241_v30 = vmax.f32 %v2413_v24, 0.0  ;;  %v3369_v31 = vmax.f32 %v2925_v25, 0.0  ;;  %2624 = vmatmul.mubr.bf16.gmra.mrb[236].mxu0 %v6220_v16  ;;  %3136 = vmatmul.mubr.bf16.gmra.mrb[236].mxu1 %v6221_v17  ;;  %v6238_v25 = vld [vmem:[%s6611_s27 + $0x3e0] ss:$8 sps:$4 sm:$0xff]  }
 0x27f   : > { %5171 = vmatprep.mubr.msk.bf16.mxu0 %vm1727_vm0, %v6222_v20  ;;  %5235 = vmatprep.mubr.msk.bf16.mxu1 %vm1727_vm0, %v6224_v21 }
 0x280   : > { %4521 = vst.msk [vmem:[%s6800_s26 + $0x100] sm:$0xf] %vm4456_vm3, %v5571_v28  ;;  %4649 = vst.msk [vmem:[%s6800_s26 + $0x300] sm:$0xf] %vm4456_vm3, %v5699_v29  ;;  %v5572_v32 = vpack.c.bf16 %v3241_v30, %v3241_v30  ;;  %v5700_v33 = vpack.c.bf16 %v3369_v31, %v3369_v31  ;;  %v6240_v29 = vld [vmem:[%s6611_s27 + $0x3f4] ss:$8 sps:$4 sm:$0xff]  }
 0x281   : > { %v2417_v34 = vpop.f32.mrb[132].mxu0  ;;  %v2929_v35 = vpop.f32.mrb[132].mxu1  ;;  %v6242_v30 = vld [vmem:[%s6611_s27 + $0x7f4] ss:$8 sps:$4 sm:$0xff]  }
 0x282   : > { %4522 = vst.msk [vmem:[%s6800_s26 + $0x104] sm:$0xf] %vm4456_vm3, %v5572_v32  ;;  %4650 = vst.msk [vmem:[%s6800_s26 + $0x304] sm:$0xf] %vm4456_vm3, %v5700_v33  ;;  %v2418_v36 = vadd.f32 %v7370_v11, %v2417_v34  ;;  %v2930_v37 = vadd.f32 %v7370_v11, %v2929_v35  ;;  %v2419_v38 = vpop.f32.mrb[133].mxu0  ;;  %v2931_v39 = vpop.f32.mrb[133].mxu1 }
 0x283   : > { %v2420_v42 = vpop.f32.mrb[134].mxu0  ;;  %v2932_v43 = vpop.f32.mrb[134].mxu1 }
 0x284   : > { %v3242_v46 = vmax.f32 %v2418_v36, 0.0  ;;  %v3370_v47 = vmax.f32 %v2930_v37, 0.0  ;;  %v2421_v48 = vadd.f32 %v7370_v11, %v2420_v42  ;;  %v2933_v49 = vadd.f32 %v7370_v11, %v2932_v43  ;;  %v2422_v50 = vpop.f32.mrb[135].mxu0  ;;  %v2934_v51 = vpop.f32.mrb[135].mxu1 }
 0x285   : > { %v6245_v50 = vld [vmem:[%s6611_s27 + $0x7f0] ss:$8 sps:$4 sm:$0xff]  }
 0x286   : > { %v5573_v52 = vpack.c.bf16 %v3242_v46, %v3242_v46  ;;  %v5701_v53 = vpack.c.bf16 %v3370_v47, %v3370_v47  ;;  %v3243_v54 = vmax.f32 %v2421_v48, 0.0  ;;  %v3371_v55 = vmax.f32 %v2933_v49, 0.0  ;;  %2632 = vmatmul.mubr.bf16.gmra.mrb[240].mxu0 %v6226_v40  ;;  %3144 = vmatmul.mubr.bf16.gmra.mrb[240].mxu1 %v6227_v41  ;;  %v6244_v49 = vld [vmem:[%s6611_s27 + $0x3f0] ss:$8 sps:$4 sm:$0xff]  }
 0x287   : > { %5172 = vmatprep.mubr.msk.bf16.mxu0 %vm1727_vm0, %v6228_v44  ;;  %5236 = vmatprep.mubr.msk.bf16.mxu1 %vm1727_vm0, %v6230_v45 }
 0x288   : > { %4523 = vst.msk [vmem:[%s6800_s26 + $0x108] sm:$0xf] %vm4456_vm3, %v5573_v52  ;;  %4651 = vst.msk [vmem:[%s6800_s26 + $0x308] sm:$0xf] %vm4456_vm3, %v5701_v53  ;;  %v5574_v56 = vpack.c.bf16 %v3243_v54, %v3243_v54  ;;  %v5702_v57 = vpack.c.bf16 %v3371_v55, %v3371_v55 }
 0x289   : > { %v2425_v58 = vpop.f32.mrb[136].mxu0  ;;  %v2937_v59 = vpop.f32.mrb[136].mxu1 }
 0x28a   : > { %4524 = vst.msk [vmem:[%s6800_s26 + $0x10c] sm:$0xf] %vm4456_vm3, %v5574_v56  ;;  %4652 = vst.msk [vmem:[%s6800_s26 + $0x30c] sm:$0xf] %vm4456_vm3, %v5702_v57  ;;  %v2426_v60 = vadd.f32 %v7370_v11, %v2425_v58  ;;  %v2938_v62 = vadd.f32 %v7370_v11, %v2937_v59  ;;  %v2427_v63 = vpop.f32.mrb[137].mxu0  ;;  %v2939_v0 = vpop.f32.mrb[137].mxu1 }
 0x28b   : > { %v2428_v2 = vpop.f32.mrb[138].mxu0  ;;  %v2940_v3 = vpop.f32.mrb[138].mxu1 }
 0x28c   : > { %v3244_v7 = vmax.f32 %v2426_v60, 0.0  ;;  %v3372_v5 = vmax.f32 %v2938_v62, 0.0  ;;  %v2429_v8 = vadd.f32 %v7370_v11, %v2428_v2  ;;  %v2941_v9 = vadd.f32 %v7370_v11, %v2940_v3  ;;  %v2430_v10 = vpop.f32.mrb[139].mxu0  ;;  %v2942_v12 = vpop.f32.mrb[139].mxu1 }
 0x28e   : > { %v5575_v13 = vpack.c.bf16 %v3244_v7, %v3244_v7  ;;  %v5703_v14 = vpack.c.bf16 %v3372_v5, %v3372_v5  ;;  %v3245_v15 = vmax.f32 %v2429_v8, 0.0  ;;  %v3373_v16 = vmax.f32 %v2941_v9, 0.0  ;;  %2640 = vmatmul.mubr.bf16.gmra.mrb[244].mxu0 %v6232_v1  ;;  %3152 = vmatmul.mubr.bf16.gmra.mrb[244].mxu1 %v6233_v61 }
 0x28f   : > { %5173 = vmatprep.mubr.msk.bf16.mxu0 %vm1727_vm0, %v6234_v4  ;;  %5237 = vmatprep.mubr.msk.bf16.mxu1 %vm1727_vm0, %v6236_v6 }
 0x290   : > { %4525 = vst.msk [vmem:[%s6800_s26 + $0x110] sm:$0xf] %vm4456_vm3, %v5575_v13  ;;  %4653 = vst.msk [vmem:[%s6800_s26 + $0x310] sm:$0xf] %vm4456_vm3, %v5703_v14  ;;  %v5576_v17 = vpack.c.bf16 %v3245_v15, %v3245_v15  ;;  %v5704_v18 = vpack.c.bf16 %v3373_v16, %v3373_v16 }
 0x291   : > { %v2433_v19 = vpop.f32.mrb[140].mxu0  ;;  %v2945_v20 = vpop.f32.mrb[140].mxu1 }
 0x292   : > { %4526 = vst.msk [vmem:[%s6800_s26 + $0x114] sm:$0xf] %vm4456_vm3, %v5576_v17  ;;  %4654 = vst.msk [vmem:[%s6800_s26 + $0x314] sm:$0xf] %vm4456_vm3, %v5704_v18  ;;  %v2434_v21 = vadd.f32 %v7370_v11, %v2433_v19  ;;  %v2946_v22 = vadd.f32 %v7370_v11, %v2945_v20  ;;  %v2435_v23 = vpop.f32.mrb[141].mxu0  ;;  %v2947_v24 = vpop.f32.mrb[141].mxu1 }
 0x293   : > { %v2436_v27 = vpop.f32.mrb[142].mxu0  ;;  %v2948_v28 = vpop.f32.mrb[142].mxu1 }
 0x294   : > { %v3246_v31 = vmax.f32 %v2434_v21, 0.0  ;;  %v3374_v32 = vmax.f32 %v2946_v22, 0.0  ;;  %v2437_v33 = vadd.f32 %v7370_v11, %v2436_v27  ;;  %v2949_v34 = vadd.f32 %v7370_v11, %v2948_v28  ;;  %v2438_v35 = vpop.f32.mrb[143].mxu0  ;;  %v2950_v36 = vpop.f32.mrb[143].mxu1 }
 0x296   : > { %v5577_v37 = vpack.c.bf16 %v3246_v31, %v3246_v31  ;;  %v5705_v38 = vpack.c.bf16 %v3374_v32, %v3374_v32  ;;  %v3247_v39 = vmax.f32 %v2437_v33, 0.0  ;;  %v3375_v40 = vmax.f32 %v2949_v34, 0.0  ;;  %2648 = vmatmul.mubr.bf16.gmra.mrb[248].mxu0 %v6238_v25  ;;  %3160 = vmatmul.mubr.bf16.gmra.mrb[248].mxu1 %v6239_v26 }
 0x297   : > { %5174 = vmatprep.mubr.msk.bf16.mxu0 %vm1727_vm0, %v6240_v29  ;;  %5238 = vmatprep.mubr.msk.bf16.mxu1 %vm1727_vm0, %v6242_v30 }
 0x298   : > { %4527 = vst.msk [vmem:[%s6800_s26 + $0x118] sm:$0xf] %vm4456_vm3, %v5577_v37  ;;  %4655 = vst.msk [vmem:[%s6800_s26 + $0x318] sm:$0xf] %vm4456_vm3, %v5705_v38  ;;  %v5578_v41 = vpack.c.bf16 %v3247_v39, %v3247_v39  ;;  %v5706_v42 = vpack.c.bf16 %v3375_v40, %v3375_v40 }
 0x299   : > { %v2441_v43 = vpop.f32.mrb[144].mxu0  ;;  %v2953_v44 = vpop.f32.mrb[144].mxu1 }
 0x29a   : > { %4528 = vst.msk [vmem:[%s6800_s26 + $0x11c] sm:$0xf] %vm4456_vm3, %v5578_v41  ;;  %4656 = vst.msk [vmem:[%s6800_s26 + $0x31c] sm:$0xf] %vm4456_vm3, %v5706_v42  ;;  %v2442_v45 = vadd.f32 %v7370_v11, %v2441_v43  ;;  %v2954_v46 = vadd.f32 %v7370_v11, %v2953_v44  ;;  %v2443_v47 = vpop.f32.mrb[145].mxu0  ;;  %v2955_v48 = vpop.f32.mrb[145].mxu1 }
 0x29b   : > { %v2444_v51 = vpop.f32.mrb[146].mxu0  ;;  %v2956_v52 = vpop.f32.mrb[146].mxu1 }
 0x29c   : > { %v3248_v53 = vmax.f32 %v2442_v45, 0.0  ;;  %v3376_v54 = vmax.f32 %v2954_v46, 0.0  ;;  %v2445_v55 = vadd.f32 %v7370_v11, %v2444_v51  ;;  %v2957_v56 = vadd.f32 %v7370_v11, %v2956_v52  ;;  %v2446_v57 = vpop.f32.mrb[147].mxu0  ;;  %v2958_v58 = vpop.f32.mrb[147].mxu1 }
 0x29e   : > { %v5579_v59 = vpack.c.bf16 %v3248_v53, %v3248_v53  ;;  %v5707_v60 = vpack.c.bf16 %v3376_v54, %v3376_v54  ;;  %v3249_v62 = vmax.f32 %v2445_v55, 0.0  ;;  %v3377_v63 = vmax.f32 %v2957_v56, 0.0  ;;  %2656 = vmatmul.mubr.bf16.gmra.mrb[252].mxu0 %v6244_v49  ;;  %3168 = vmatmul.mubr.bf16.gmra.mrb[252].mxu1 %v6245_v50 }
 0x2a0   : > { %4529 = vst.msk [vmem:[%s6800_s26 + $0x120] sm:$0xf] %vm4456_vm3, %v5579_v59  ;;  %4657 = vst.msk [vmem:[%s6800_s26 + $0x320] sm:$0xf] %vm4456_vm3, %v5707_v60  ;;  %v5580_v0 = vpack.c.bf16 %v3249_v62, %v3249_v62  ;;  %v5708_v1 = vpack.c.bf16 %v3377_v63, %v3377_v63 }
 0x2a1   : > { %v2449_v61 = vpop.f32.mrb[148].mxu0  ;;  %v2961_v2 = vpop.f32.mrb[148].mxu1 }
 0x2a2   : > { %4530 = vst.msk [vmem:[%s6800_s26 + $0x124] sm:$0xf] %vm4456_vm3, %v5580_v0  ;;  %4658 = vst.msk [vmem:[%s6800_s26 + $0x324] sm:$0xf] %vm4456_vm3, %v5708_v1  ;;  %v2450_v3 = vadd.f32 %v7370_v11, %v2449_v61  ;;  %v2962_v4 = vadd.f32 %v7370_v11, %v2961_v2  ;;  %v2451_v6 = vpop.f32.mrb[149].mxu0  ;;  %v2963_v7 = vpop.f32.mrb[149].mxu1 }
 0x2a3   : > { %v2452_v5 = vpop.f32.mrb[150].mxu0  ;;  %v2964_v8 = vpop.f32.mrb[150].mxu1 }
 0x2a4   : > { %v3250_v9 = vmax.f32 %v2450_v3, 0.0  ;;  %v3378_v10 = vmax.f32 %v2962_v4, 0.0  ;;  %v2453_v12 = vadd.f32 %v7370_v11, %v2452_v5  ;;  %v2965_v13 = vadd.f32 %v7370_v11, %v2964_v8  ;;  %v2454_v14 = vpop.f32.mrb[151].mxu0  ;;  %v2966_v15 = vpop.f32.mrb[151].mxu1 }
 0x2a6   : > { %v5581_v16 = vpack.c.bf16 %v3250_v9, %v3250_v9  ;;  %v5709_v17 = vpack.c.bf16 %v3378_v10, %v3378_v10  ;;  %v3251_v18 = vmax.f32 %v2453_v12, 0.0  ;;  %v3379_v19 = vmax.f32 %v2965_v13, 0.0 }
 0x2a8   : > { %4531 = vst.msk [vmem:[%s6800_s26 + $0x128] sm:$0xf] %vm4456_vm3, %v5581_v16  ;;  %4659 = vst.msk [vmem:[%s6800_s26 + $0x328] sm:$0xf] %vm4456_vm3, %v5709_v17  ;;  %v5582_v20 = vpack.c.bf16 %v3251_v18, %v3251_v18  ;;  %v5710_v21 = vpack.c.bf16 %v3379_v19, %v3379_v19 }
 0x2a9   : > { %v2457_v22 = vpop.f32.mrb[152].mxu0  ;;  %v2969_v23 = vpop.f32.mrb[152].mxu1 }
 0x2aa   : > { %4532 = vst.msk [vmem:[%s6800_s26 + $0x12c] sm:$0xf] %vm4456_vm3, %v5582_v20  ;;  %4660 = vst.msk [vmem:[%s6800_s26 + $0x32c] sm:$0xf] %vm4456_vm3, %v5710_v21  ;;  %v2458_v24 = vadd.f32 %v7370_v11, %v2457_v22  ;;  %v2970_v25 = vadd.f32 %v7370_v11, %v2969_v23  ;;  %v2459_v26 = vpop.f32.mrb[153].mxu0  ;;  %v2971_v27 = vpop.f32.mrb[153].mxu1 }
 0x2ab   : > { %v2460_v28 = vpop.f32.mrb[154].mxu0  ;;  %v2972_v29 = vpop.f32.mrb[154].mxu1 }
 0x2ac   : > { %v3252_v30 = vmax.f32 %v2458_v24, 0.0  ;;  %v3380_v31 = vmax.f32 %v2970_v25, 0.0  ;;  %v2461_v32 = vadd.f32 %v7370_v11, %v2460_v28  ;;  %v2973_v33 = vadd.f32 %v7370_v11, %v2972_v29  ;;  %v2462_v34 = vpop.f32.mrb[155].mxu0  ;;  %v2974_v35 = vpop.f32.mrb[155].mxu1 }
 0x2ae   : > { %v5583_v36 = vpack.c.bf16 %v3252_v30, %v3252_v30  ;;  %v5711_v37 = vpack.c.bf16 %v3380_v31, %v3380_v31  ;;  %v3253_v38 = vmax.f32 %v2461_v32, 0.0  ;;  %v3381_v39 = vmax.f32 %v2973_v33, 0.0 }
 0x2b0   : > { %4533 = vst.msk [vmem:[%s6800_s26 + $0x130] sm:$0xf] %vm4456_vm3, %v5583_v36  ;;  %4661 = vst.msk [vmem:[%s6800_s26 + $0x330] sm:$0xf] %vm4456_vm3, %v5711_v37  ;;  %v5584_v40 = vpack.c.bf16 %v3253_v38, %v3253_v38  ;;  %v5712_v41 = vpack.c.bf16 %v3381_v39, %v3381_v39 }
 0x2b1   : > { %v2465_v42 = vpop.f32.mrb[156].mxu0  ;;  %v2977_v43 = vpop.f32.mrb[156].mxu1 }
 0x2b2   : > { %4534 = vst.msk [vmem:[%s6800_s26 + $0x134] sm:$0xf] %vm4456_vm3, %v5584_v40  ;;  %4662 = vst.msk [vmem:[%s6800_s26 + $0x334] sm:$0xf] %vm4456_vm3, %v5712_v41  ;;  %v2466_v44 = vadd.f32 %v7370_v11, %v2465_v42  ;;  %v2978_v45 = vadd.f32 %v7370_v11, %v2977_v43  ;;  %v2467_v46 = vpop.f32.mrb[157].mxu0  ;;  %v2979_v47 = vpop.f32.mrb[157].mxu1 }
 0x2b3   : > { %v2468_v48 = vpop.f32.mrb[158].mxu0  ;;  %v2980_v49 = vpop.f32.mrb[158].mxu1 }
 0x2b4   : > { %v3254_v50 = vmax.f32 %v2466_v44, 0.0  ;;  %v3382_v51 = vmax.f32 %v2978_v45, 0.0  ;;  %v2469_v52 = vadd.f32 %v7370_v11, %v2468_v48  ;;  %v2981_v53 = vadd.f32 %v7370_v11, %v2980_v49  ;;  %v2470_v54 = vpop.f32.mrb[159].mxu0  ;;  %v2982_v55 = vpop.f32.mrb[159].mxu1 }
 0x2b6   : > { %v5585_v56 = vpack.c.bf16 %v3254_v50, %v3254_v50  ;;  %v5713_v57 = vpack.c.bf16 %v3382_v51, %v3382_v51  ;;  %v3255_v58 = vmax.f32 %v2469_v52, 0.0  ;;  %v3383_v59 = vmax.f32 %v2981_v53, 0.0 }
 0x2b8   : > { %4535 = vst.msk [vmem:[%s6800_s26 + $0x138] sm:$0xf] %vm4456_vm3, %v5585_v56  ;;  %4663 = vst.msk [vmem:[%s6800_s26 + $0x338] sm:$0xf] %vm4456_vm3, %v5713_v57  ;;  %v5586_v60 = vpack.c.bf16 %v3255_v58, %v3255_v58  ;;  %v5714_v62 = vpack.c.bf16 %v3383_v59, %v3383_v59 }
 0x2b9   : > { %v2473_v63 = vpop.f32.mrb[160].mxu0  ;;  %v2985_v0 = vpop.f32.mrb[160].mxu1 }
 0x2ba   : > { %4536 = vst.msk [vmem:[%s6800_s26 + $0x13c] sm:$0xf] %vm4456_vm3, %v5586_v60  ;;  %4664 = vst.msk [vmem:[%s6800_s26 + $0x33c] sm:$0xf] %vm4456_vm3, %v5714_v62  ;;  %v2474_v1 = vadd.f32 %v7370_v11, %v2473_v63  ;;  %v2986_v61 = vadd.f32 %v7370_v11, %v2985_v0  ;;  %v2475_v2 = vpop.f32.mrb[161].mxu0  ;;  %v2987_v3 = vpop.f32.mrb[161].mxu1 }
 0x2bb   : > { %v2476_v4 = vpop.f32.mrb[162].mxu0  ;;  %v2988_v6 = vpop.f32.mrb[162].mxu1 }
 0x2bc   : > { %v3256_v7 = vmax.f32 %v2474_v1, 0.0  ;;  %v3384_v5 = vmax.f32 %v2986_v61, 0.0  ;;  %v2477_v8 = vadd.f32 %v7370_v11, %v2476_v4  ;;  %v2989_v9 = vadd.f32 %v7370_v11, %v2988_v6  ;;  %v2478_v10 = vpop.f32.mrb[163].mxu0  ;;  %v2990_v12 = vpop.f32.mrb[163].mxu1 }
 0x2be   : > { %v5587_v13 = vpack.c.bf16 %v3256_v7, %v3256_v7  ;;  %v5715_v14 = vpack.c.bf16 %v3384_v5, %v3384_v5  ;;  %v3257_v15 = vmax.f32 %v2477_v8, 0.0  ;;  %v3385_v16 = vmax.f32 %v2989_v9, 0.0 }
 0x2c0   : > { %4537 = vst.msk [vmem:[%s6800_s26 + $0x140] sm:$0xf] %vm4456_vm3, %v5587_v13  ;;  %4665 = vst.msk [vmem:[%s6800_s26 + $0x340] sm:$0xf] %vm4456_vm3, %v5715_v14  ;;  %v5588_v17 = vpack.c.bf16 %v3257_v15, %v3257_v15  ;;  %v5716_v18 = vpack.c.bf16 %v3385_v16, %v3385_v16 }
 0x2c1   : > { %v2481_v19 = vpop.f32.mrb[164].mxu0  ;;  %v2993_v20 = vpop.f32.mrb[164].mxu1 }
 0x2c2   : > { %4538 = vst.msk [vmem:[%s6800_s26 + $0x144] sm:$0xf] %vm4456_vm3, %v5588_v17  ;;  %4666 = vst.msk [vmem:[%s6800_s26 + $0x344] sm:$0xf] %vm4456_vm3, %v5716_v18  ;;  %v2482_v21 = vadd.f32 %v7370_v11, %v2481_v19  ;;  %v2994_v22 = vadd.f32 %v7370_v11, %v2993_v20  ;;  %v2483_v23 = vpop.f32.mrb[165].mxu0  ;;  %v2995_v24 = vpop.f32.mrb[165].mxu1 }
 0x2c3   : > { %v2484_v25 = vpop.f32.mrb[166].mxu0  ;;  %v2996_v26 = vpop.f32.mrb[166].mxu1 }
 0x2c4   : > { %v3258_v27 = vmax.f32 %v2482_v21, 0.0  ;;  %v3386_v28 = vmax.f32 %v2994_v22, 0.0  ;;  %v2485_v29 = vadd.f32 %v7370_v11, %v2484_v25  ;;  %v2997_v30 = vadd.f32 %v7370_v11, %v2996_v26  ;;  %v2486_v31 = vpop.f32.mrb[167].mxu0  ;;  %v2998_v32 = vpop.f32.mrb[167].mxu1 }
 0x2c6   : > { %v5589_v33 = vpack.c.bf16 %v3258_v27, %v3258_v27  ;;  %v5717_v34 = vpack.c.bf16 %v3386_v28, %v3386_v28  ;;  %v3259_v35 = vmax.f32 %v2485_v29, 0.0  ;;  %v3387_v36 = vmax.f32 %v2997_v30, 0.0 }
 0x2c8   : > { %4539 = vst.msk [vmem:[%s6800_s26 + $0x148] sm:$0xf] %vm4456_vm3, %v5589_v33  ;;  %4667 = vst.msk [vmem:[%s6800_s26 + $0x348] sm:$0xf] %vm4456_vm3, %v5717_v34  ;;  %v5590_v37 = vpack.c.bf16 %v3259_v35, %v3259_v35  ;;  %v5718_v38 = vpack.c.bf16 %v3387_v36, %v3387_v36 }
 0x2c9   : > { %v2489_v39 = vpop.f32.mrb[168].mxu0  ;;  %v3001_v40 = vpop.f32.mrb[168].mxu1 }
 0x2ca   : > { %4540 = vst.msk [vmem:[%s6800_s26 + $0x14c] sm:$0xf] %vm4456_vm3, %v5590_v37  ;;  %4668 = vst.msk [vmem:[%s6800_s26 + $0x34c] sm:$0xf] %vm4456_vm3, %v5718_v38  ;;  %v2490_v41 = vadd.f32 %v7370_v11, %v2489_v39  ;;  %v3002_v42 = vadd.f32 %v7370_v11, %v3001_v40  ;;  %v2491_v43 = vpop.f32.mrb[169].mxu0  ;;  %v3003_v44 = vpop.f32.mrb[169].mxu1 }
 0x2cb   : > { %v2492_v45 = vpop.f32.mrb[170].mxu0  ;;  %v3004_v46 = vpop.f32.mrb[170].mxu1 }
 0x2cc   : > { %v3260_v47 = vmax.f32 %v2490_v41, 0.0  ;;  %v3388_v48 = vmax.f32 %v3002_v42, 0.0  ;;  %v2493_v49 = vadd.f32 %v7370_v11, %v2492_v45  ;;  %v3005_v50 = vadd.f32 %v7370_v11, %v3004_v46  ;;  %v2494_v51 = vpop.f32.mrb[171].mxu0  ;;  %v3006_v52 = vpop.f32.mrb[171].mxu1 }
 0x2ce   : > { %v5591_v53 = vpack.c.bf16 %v3260_v47, %v3260_v47  ;;  %v5719_v54 = vpack.c.bf16 %v3388_v48, %v3388_v48  ;;  %v3261_v55 = vmax.f32 %v2493_v49, 0.0  ;;  %v3389_v56 = vmax.f32 %v3005_v50, 0.0 }
 0x2d0   : > { %4541 = vst.msk [vmem:[%s6800_s26 + $0x150] sm:$0xf] %vm4456_vm3, %v5591_v53  ;;  %4669 = vst.msk [vmem:[%s6800_s26 + $0x350] sm:$0xf] %vm4456_vm3, %v5719_v54  ;;  %v5592_v57 = vpack.c.bf16 %v3261_v55, %v3261_v55  ;;  %v5720_v58 = vpack.c.bf16 %v3389_v56, %v3389_v56 }
 0x2d1   : > { %v2497_v59 = vpop.f32.mrb[172].mxu0  ;;  %v3009_v60 = vpop.f32.mrb[172].mxu1 }
 0x2d2   : > { %4542 = vst.msk [vmem:[%s6800_s26 + $0x154] sm:$0xf] %vm4456_vm3, %v5592_v57  ;;  %4670 = vst.msk [vmem:[%s6800_s26 + $0x354] sm:$0xf] %vm4456_vm3, %v5720_v58  ;;  %v2498_v62 = vadd.f32 %v7370_v11, %v2497_v59  ;;  %v3010_v63 = vadd.f32 %v7370_v11, %v3009_v60  ;;  %v2499_v0 = vpop.f32.mrb[173].mxu0  ;;  %v3011_v1 = vpop.f32.mrb[173].mxu1 }
 0x2d3   : > { %v2500_v61 = vpop.f32.mrb[174].mxu0  ;;  %v3012_v2 = vpop.f32.mrb[174].mxu1 }
 0x2d4   : > { %v3262_v3 = vmax.f32 %v2498_v62, 0.0  ;;  %v3390_v4 = vmax.f32 %v3010_v63, 0.0  ;;  %v2501_v6 = vadd.f32 %v7370_v11, %v2500_v61  ;;  %v3013_v7 = vadd.f32 %v7370_v11, %v3012_v2  ;;  %v2502_v5 = vpop.f32.mrb[175].mxu0  ;;  %v3014_v8 = vpop.f32.mrb[175].mxu1 }
 0x2d6   : > { %v5593_v9 = vpack.c.bf16 %v3262_v3, %v3262_v3  ;;  %v5721_v10 = vpack.c.bf16 %v3390_v4, %v3390_v4  ;;  %v3263_v12 = vmax.f32 %v2501_v6, 0.0  ;;  %v3391_v13 = vmax.f32 %v3013_v7, 0.0 }
 0x2d8   : > { %4543 = vst.msk [vmem:[%s6800_s26 + $0x158] sm:$0xf] %vm4456_vm3, %v5593_v9  ;;  %4671 = vst.msk [vmem:[%s6800_s26 + $0x358] sm:$0xf] %vm4456_vm3, %v5721_v10  ;;  %v5594_v14 = vpack.c.bf16 %v3263_v12, %v3263_v12  ;;  %v5722_v15 = vpack.c.bf16 %v3391_v13, %v3391_v13 }
 0x2d9   : > { %v2505_v16 = vpop.f32.mrb[176].mxu0  ;;  %v3017_v17 = vpop.f32.mrb[176].mxu1 }
 0x2da   : > { %4544 = vst.msk [vmem:[%s6800_s26 + $0x15c] sm:$0xf] %vm4456_vm3, %v5594_v14  ;;  %4672 = vst.msk [vmem:[%s6800_s26 + $0x35c] sm:$0xf] %vm4456_vm3, %v5722_v15  ;;  %v2506_v18 = vadd.f32 %v7370_v11, %v2505_v16  ;;  %v3018_v19 = vadd.f32 %v7370_v11, %v3017_v17  ;;  %v2507_v20 = vpop.f32.mrb[177].mxu0  ;;  %v3019_v21 = vpop.f32.mrb[177].mxu1 }
 0x2db   : > { %v2508_v22 = vpop.f32.mrb[178].mxu0  ;;  %v3020_v23 = vpop.f32.mrb[178].mxu1 }
 0x2dc   : > { %v3264_v24 = vmax.f32 %v2506_v18, 0.0  ;;  %v3392_v25 = vmax.f32 %v3018_v19, 0.0  ;;  %v2509_v26 = vadd.f32 %v7370_v11, %v2508_v22  ;;  %v3021_v27 = vadd.f32 %v7370_v11, %v3020_v23  ;;  %v2510_v28 = vpop.f32.mrb[179].mxu0  ;;  %v3022_v29 = vpop.f32.mrb[179].mxu1 }
 0x2de   : > { %v5595_v30 = vpack.c.bf16 %v3264_v24, %v3264_v24  ;;  %v5723_v31 = vpack.c.bf16 %v3392_v25, %v3392_v25  ;;  %v3265_v32 = vmax.f32 %v2509_v26, 0.0  ;;  %v3393_v33 = vmax.f32 %v3021_v27, 0.0 }
 0x2e0   : > { %4545 = vst.msk [vmem:[%s6800_s26 + $0x160] sm:$0xf] %vm4456_vm3, %v5595_v30  ;;  %4673 = vst.msk [vmem:[%s6800_s26 + $0x360] sm:$0xf] %vm4456_vm3, %v5723_v31  ;;  %v5596_v34 = vpack.c.bf16 %v3265_v32, %v3265_v32  ;;  %v5724_v35 = vpack.c.bf16 %v3393_v33, %v3393_v33 }
 0x2e1   : > { %v2513_v36 = vpop.f32.mrb[180].mxu0  ;;  %v3025_v37 = vpop.f32.mrb[180].mxu1 }
 0x2e2   : > { %4546 = vst.msk [vmem:[%s6800_s26 + $0x164] sm:$0xf] %vm4456_vm3, %v5596_v34  ;;  %4674 = vst.msk [vmem:[%s6800_s26 + $0x364] sm:$0xf] %vm4456_vm3, %v5724_v35  ;;  %v2514_v38 = vadd.f32 %v7370_v11, %v2513_v36  ;;  %v3026_v39 = vadd.f32 %v7370_v11, %v3025_v37  ;;  %v2515_v40 = vpop.f32.mrb[181].mxu0  ;;  %v3027_v41 = vpop.f32.mrb[181].mxu1 }
 0x2e3   : > { %v2516_v42 = vpop.f32.mrb[182].mxu0  ;;  %v3028_v43 = vpop.f32.mrb[182].mxu1 }
 0x2e4   : > { %v3266_v44 = vmax.f32 %v2514_v38, 0.0  ;;  %v3394_v45 = vmax.f32 %v3026_v39, 0.0  ;;  %v2517_v46 = vadd.f32 %v7370_v11, %v2516_v42  ;;  %v3029_v47 = vadd.f32 %v7370_v11, %v3028_v43  ;;  %v2518_v48 = vpop.f32.mrb[183].mxu0  ;;  %v3030_v49 = vpop.f32.mrb[183].mxu1 }
 0x2e6   : > { %v5597_v50 = vpack.c.bf16 %v3266_v44, %v3266_v44  ;;  %v5725_v51 = vpack.c.bf16 %v3394_v45, %v3394_v45  ;;  %v3267_v52 = vmax.f32 %v2517_v46, 0.0  ;;  %v3395_v53 = vmax.f32 %v3029_v47, 0.0 }
 0x2e8   : > { %4547 = vst.msk [vmem:[%s6800_s26 + $0x168] sm:$0xf] %vm4456_vm3, %v5597_v50  ;;  %4675 = vst.msk [vmem:[%s6800_s26 + $0x368] sm:$0xf] %vm4456_vm3, %v5725_v51  ;;  %v5598_v54 = vpack.c.bf16 %v3267_v52, %v3267_v52  ;;  %v5726_v55 = vpack.c.bf16 %v3395_v53, %v3395_v53 }
 0x2e9   : > { %v2521_v56 = vpop.f32.mrb[184].mxu0  ;;  %v3033_v57 = vpop.f32.mrb[184].mxu1 }
 0x2ea   : > { %4548 = vst.msk [vmem:[%s6800_s26 + $0x16c] sm:$0xf] %vm4456_vm3, %v5598_v54  ;;  %4676 = vst.msk [vmem:[%s6800_s26 + $0x36c] sm:$0xf] %vm4456_vm3, %v5726_v55  ;;  %v2522_v58 = vadd.f32 %v7370_v11, %v2521_v56  ;;  %v3034_v59 = vadd.f32 %v7370_v11, %v3033_v57  ;;  %v2523_v60 = vpop.f32.mrb[185].mxu0  ;;  %v3035_v62 = vpop.f32.mrb[185].mxu1 }
 0x2eb   : > { %v2524_v63 = vpop.f32.mrb[186].mxu0  ;;  %v3036_v0 = vpop.f32.mrb[186].mxu1 }
 0x2ec   : > { %v3268_v1 = vmax.f32 %v2522_v58, 0.0  ;;  %v3396_v61 = vmax.f32 %v3034_v59, 0.0  ;;  %v2525_v2 = vadd.f32 %v7370_v11, %v2524_v63  ;;  %v3037_v3 = vadd.f32 %v7370_v11, %v3036_v0  ;;  %v2526_v4 = vpop.f32.mrb[187].mxu0  ;;  %v3038_v6 = vpop.f32.mrb[187].mxu1 }
 0x2ee   : > { %v5599_v7 = vpack.c.bf16 %v3268_v1, %v3268_v1  ;;  %v5727_v5 = vpack.c.bf16 %v3396_v61, %v3396_v61  ;;  %v3269_v8 = vmax.f32 %v2525_v2, 0.0  ;;  %v3397_v9 = vmax.f32 %v3037_v3, 0.0 }
 0x2f0   : > { %4549 = vst.msk [vmem:[%s6800_s26 + $0x170] sm:$0xf] %vm4456_vm3, %v5599_v7  ;;  %4677 = vst.msk [vmem:[%s6800_s26 + $0x370] sm:$0xf] %vm4456_vm3, %v5727_v5  ;;  %v5600_v10 = vpack.c.bf16 %v3269_v8, %v3269_v8  ;;  %v5728_v12 = vpack.c.bf16 %v3397_v9, %v3397_v9 }
 0x2f1   : > { %v2529_v13 = vpop.f32.mrb[188].mxu0  ;;  %v3041_v14 = vpop.f32.mrb[188].mxu1 }
 0x2f2   : > { %4550 = vst.msk [vmem:[%s6800_s26 + $0x174] sm:$0xf] %vm4456_vm3, %v5600_v10  ;;  %4678 = vst.msk [vmem:[%s6800_s26 + $0x374] sm:$0xf] %vm4456_vm3, %v5728_v12  ;;  %v2530_v15 = vadd.f32 %v7370_v11, %v2529_v13  ;;  %v3042_v16 = vadd.f32 %v7370_v11, %v3041_v14  ;;  %v2531_v17 = vpop.f32.mrb[189].mxu0  ;;  %v3043_v18 = vpop.f32.mrb[189].mxu1 }
 0x2f3   : > { %v2532_v19 = vpop.f32.mrb[190].mxu0  ;;  %v3044_v20 = vpop.f32.mrb[190].mxu1 }
 0x2f4   : > { %v3270_v21 = vmax.f32 %v2530_v15, 0.0  ;;  %v3398_v22 = vmax.f32 %v3042_v16, 0.0  ;;  %v2533_v23 = vadd.f32 %v7370_v11, %v2532_v19  ;;  %v3045_v24 = vadd.f32 %v7370_v11, %v3044_v20  ;;  %v2534_v25 = vpop.f32.mrb[191].mxu0  ;;  %v3046_v26 = vpop.f32.mrb[191].mxu1 }
 0x2f6   : > { %v5601_v27 = vpack.c.bf16 %v3270_v21, %v3270_v21  ;;  %v5729_v28 = vpack.c.bf16 %v3398_v22, %v3398_v22  ;;  %v3271_v29 = vmax.f32 %v2533_v23, 0.0  ;;  %v3399_v30 = vmax.f32 %v3045_v24, 0.0 }
 0x2f8   : > { %4551 = vst.msk [vmem:[%s6800_s26 + $0x178] sm:$0xf] %vm4456_vm3, %v5601_v27  ;;  %4679 = vst.msk [vmem:[%s6800_s26 + $0x378] sm:$0xf] %vm4456_vm3, %v5729_v28  ;;  %v5602_v31 = vpack.c.bf16 %v3271_v29, %v3271_v29  ;;  %v5730_v32 = vpack.c.bf16 %v3399_v30, %v3399_v30 }
 0x2f9   : > { %v2537_v33 = vpop.f32.mrb[192].mxu0  ;;  %v3049_v34 = vpop.f32.mrb[192].mxu1 }
 0x2fa   : > { %4552 = vst.msk [vmem:[%s6800_s26 + $0x17c] sm:$0xf] %vm4456_vm3, %v5602_v31  ;;  %4680 = vst.msk [vmem:[%s6800_s26 + $0x37c] sm:$0xf] %vm4456_vm3, %v5730_v32  ;;  %v2538_v35 = vadd.f32 %v7370_v11, %v2537_v33  ;;  %v3050_v36 = vadd.f32 %v7370_v11, %v3049_v34  ;;  %v2539_v37 = vpop.f32.mrb[193].mxu0  ;;  %v3051_v38 = vpop.f32.mrb[193].mxu1 }
 0x2fb   : > { %v2540_v39 = vpop.f32.mrb[194].mxu0  ;;  %v3052_v40 = vpop.f32.mrb[194].mxu1 }
 0x2fc   : > { %v3272_v41 = vmax.f32 %v2538_v35, 0.0  ;;  %v3400_v42 = vmax.f32 %v3050_v36, 0.0  ;;  %v2541_v43 = vadd.f32 %v7370_v11, %v2540_v39  ;;  %v3053_v44 = vadd.f32 %v7370_v11, %v3052_v40  ;;  %v2542_v45 = vpop.f32.mrb[195].mxu0  ;;  %v3054_v46 = vpop.f32.mrb[195].mxu1 }
 0x2fe   : > { %v5603_v47 = vpack.c.bf16 %v3272_v41, %v3272_v41  ;;  %v5731_v48 = vpack.c.bf16 %v3400_v42, %v3400_v42  ;;  %v3273_v49 = vmax.f32 %v2541_v43, 0.0  ;;  %v3401_v50 = vmax.f32 %v3053_v44, 0.0 }
 0x300   : > { %4553 = vst.msk [vmem:[%s6800_s26 + $0x180] sm:$0xf] %vm4456_vm3, %v5603_v47  ;;  %4681 = vst.msk [vmem:[%s6800_s26 + $0x380] sm:$0xf] %vm4456_vm3, %v5731_v48  ;;  %v5604_v51 = vpack.c.bf16 %v3273_v49, %v3273_v49  ;;  %v5732_v52 = vpack.c.bf16 %v3401_v50, %v3401_v50 }
 0x301   : > { %v2545_v53 = vpop.f32.mrb[196].mxu0  ;;  %v3057_v54 = vpop.f32.mrb[196].mxu1 }
 0x302   : > { %4554 = vst.msk [vmem:[%s6800_s26 + $0x184] sm:$0xf] %vm4456_vm3, %v5604_v51  ;;  %4682 = vst.msk [vmem:[%s6800_s26 + $0x384] sm:$0xf] %vm4456_vm3, %v5732_v52  ;;  %v2546_v55 = vadd.f32 %v7370_v11, %v2545_v53  ;;  %v3058_v56 = vadd.f32 %v7370_v11, %v3057_v54  ;;  %v2547_v57 = vpop.f32.mrb[197].mxu0  ;;  %v3059_v58 = vpop.f32.mrb[197].mxu1 }
 0x303   : > { %v2548_v59 = vpop.f32.mrb[198].mxu0  ;;  %v3060_v60 = vpop.f32.mrb[198].mxu1  ;;  %v7638_v52 = vld [vmem:[#allocation7] ss:$0 sm:$0xff] }
 0x304   : > { %v3274_v62 = vmax.f32 %v2546_v55, 0.0  ;;  %v3402_v63 = vmax.f32 %v3058_v56, 0.0  ;;  %v2549_v0 = vadd.f32 %v7370_v11, %v2548_v59  ;;  %v3061_v1 = vadd.f32 %v7370_v11, %v3060_v60  ;;  %v2550_v61 = vpop.f32.mrb[199].mxu0  ;;  %v3062_v2 = vpop.f32.mrb[199].mxu1 }
 0x306   : > { %v5605_v3 = vpack.c.bf16 %v3274_v62, %v3274_v62  ;;  %v5733_v4 = vpack.c.bf16 %v3402_v63, %v3402_v63  ;;  %v3275_v6 = vmax.f32 %v2549_v0, 0.0  ;;  %v3403_v7 = vmax.f32 %v3061_v1, 0.0 }
 0x308   : > { %4555 = vst.msk [vmem:[%s6800_s26 + $0x188] sm:$0xf] %vm4456_vm3, %v5605_v3  ;;  %4683 = vst.msk [vmem:[%s6800_s26 + $0x388] sm:$0xf] %vm4456_vm3, %v5733_v4  ;;  %v5606_v5 = vpack.c.bf16 %v3275_v6, %v3275_v6  ;;  %v5734_v8 = vpack.c.bf16 %v3403_v7, %v3403_v7 }
 0x309   : > { %v2553_v9 = vpop.f32.mrb[200].mxu0  ;;  %v3065_v10 = vpop.f32.mrb[200].mxu1 }
 0x30a   : > { %4556 = vst.msk [vmem:[%s6800_s26 + $0x18c] sm:$0xf] %vm4456_vm3, %v5606_v5  ;;  %4684 = vst.msk [vmem:[%s6800_s26 + $0x38c] sm:$0xf] %vm4456_vm3, %v5734_v8  ;;  %v2554_v12 = vadd.f32 %v7370_v11, %v2553_v9  ;;  %v3066_v13 = vadd.f32 %v7370_v11, %v3065_v10  ;;  %v2555_v14 = vpop.f32.mrb[201].mxu0  ;;  %v3067_v15 = vpop.f32.mrb[201].mxu1 }
 0x30b   : > { %v2556_v16 = vpop.f32.mrb[202].mxu0  ;;  %v3068_v17 = vpop.f32.mrb[202].mxu1 }
 0x30c   : > { %v3276_v18 = vmax.f32 %v2554_v12, 0.0  ;;  %v3404_v19 = vmax.f32 %v3066_v13, 0.0  ;;  %v2557_v20 = vadd.f32 %v7370_v11, %v2556_v16  ;;  %v3069_v21 = vadd.f32 %v7370_v11, %v3068_v17  ;;  %v2558_v22 = vpop.f32.mrb[203].mxu0  ;;  %v3070_v23 = vpop.f32.mrb[203].mxu1 }
 0x30e   : > { %v5607_v24 = vpack.c.bf16 %v3276_v18, %v3276_v18  ;;  %v5735_v25 = vpack.c.bf16 %v3404_v19, %v3404_v19  ;;  %v3277_v26 = vmax.f32 %v2557_v20, 0.0  ;;  %v3405_v27 = vmax.f32 %v3069_v21, 0.0 }
 0x310   : > { %4557 = vst.msk [vmem:[%s6800_s26 + $0x190] sm:$0xf] %vm4456_vm3, %v5607_v24  ;;  %4685 = vst.msk [vmem:[%s6800_s26 + $0x390] sm:$0xf] %vm4456_vm3, %v5735_v25  ;;  %v5608_v28 = vpack.c.bf16 %v3277_v26, %v3277_v26  ;;  %v5736_v29 = vpack.c.bf16 %v3405_v27, %v3405_v27 }
 0x311   : > { %v2561_v30 = vpop.f32.mrb[204].mxu0  ;;  %v3073_v31 = vpop.f32.mrb[204].mxu1 }
 0x312   : > { %4558 = vst.msk [vmem:[%s6800_s26 + $0x194] sm:$0xf] %vm4456_vm3, %v5608_v28  ;;  %4686 = vst.msk [vmem:[%s6800_s26 + $0x394] sm:$0xf] %vm4456_vm3, %v5736_v29  ;;  %v2562_v32 = vadd.f32 %v7370_v11, %v2561_v30  ;;  %v3074_v33 = vadd.f32 %v7370_v11, %v3073_v31  ;;  %v2563_v34 = vpop.f32.mrb[205].mxu0  ;;  %v3075_v35 = vpop.f32.mrb[205].mxu1 }
 0x313   : > { %v2564_v36 = vpop.f32.mrb[206].mxu0  ;;  %v3076_v37 = vpop.f32.mrb[206].mxu1 }
 0x314   : > { %v3278_v38 = vmax.f32 %v2562_v32, 0.0  ;;  %v3406_v39 = vmax.f32 %v3074_v33, 0.0  ;;  %v2565_v40 = vadd.f32 %v7370_v11, %v2564_v36  ;;  %v3077_v41 = vadd.f32 %v7370_v11, %v3076_v37  ;;  %v2566_v42 = vpop.f32.mrb[207].mxu0  ;;  %v3078_v43 = vpop.f32.mrb[207].mxu1 }
 0x316   : > { %v5609_v44 = vpack.c.bf16 %v3278_v38, %v3278_v38  ;;  %v5737_v45 = vpack.c.bf16 %v3406_v39, %v3406_v39  ;;  %v3279_v46 = vmax.f32 %v2565_v40, 0.0  ;;  %v3407_v47 = vmax.f32 %v3077_v41, 0.0 }
 0x318   : > { %4559 = vst.msk [vmem:[%s6800_s26 + $0x198] sm:$0xf] %vm4456_vm3, %v5609_v44  ;;  %4687 = vst.msk [vmem:[%s6800_s26 + $0x398] sm:$0xf] %vm4456_vm3, %v5737_v45  ;;  %v5610_v48 = vpack.c.bf16 %v3279_v46, %v3279_v46  ;;  %v5738_v49 = vpack.c.bf16 %v3407_v47, %v3407_v47 }
 0x319   : > { %v2569_v50 = vpop.f32.mrb[208].mxu0  ;;  %v3081_v51 = vpop.f32.mrb[208].mxu1 }
 0x31a   : > { %4560 = vst.msk [vmem:[%s6800_s26 + $0x19c] sm:$0xf] %vm4456_vm3, %v5610_v48  ;;  %4688 = vst.msk [vmem:[%s6800_s26 + $0x39c] sm:$0xf] %vm4456_vm3, %v5738_v49  ;;  %v2570_v11 = vadd.f32 %v7638_v52, %v2569_v50  ;;  %v3082_v53 = vadd.f32 %v7638_v52, %v3081_v51  ;;  %v2571_v54 = vpop.f32.mrb[209].mxu0  ;;  %v3083_v55 = vpop.f32.mrb[209].mxu1 }
 0x31b   : > { %v2572_v56 = vpop.f32.mrb[210].mxu0  ;;  %v3084_v57 = vpop.f32.mrb[210].mxu1 }
 0x31c   : > { %v3280_v58 = vmax.f32 %v2570_v11, 0.0  ;;  %v3408_v59 = vmax.f32 %v3082_v53, 0.0  ;;  %v2573_v60 = vadd.f32 %v7638_v52, %v2572_v56  ;;  %v3085_v62 = vadd.f32 %v7638_v52, %v3084_v57  ;;  %v2574_v63 = vpop.f32.mrb[211].mxu0  ;;  %v3086_v0 = vpop.f32.mrb[211].mxu1 }
 0x31e   : > { %v5611_v1 = vpack.c.bf16 %v3280_v58, %v3280_v58  ;;  %v5739_v61 = vpack.c.bf16 %v3408_v59, %v3408_v59  ;;  %v3281_v2 = vmax.f32 %v2573_v60, 0.0  ;;  %v3409_v3 = vmax.f32 %v3085_v62, 0.0 }
 0x320   : > { %4561 = vst.msk [vmem:[%s6800_s26 + $0x1a0] sm:$0xf] %vm4456_vm3, %v5611_v1  ;;  %4689 = vst.msk [vmem:[%s6800_s26 + $0x3a0] sm:$0xf] %vm4456_vm3, %v5739_v61  ;;  %v5612_v4 = vpack.c.bf16 %v3281_v2, %v3281_v2  ;;  %v5740_v6 = vpack.c.bf16 %v3409_v3, %v3409_v3 }
 0x321   : > { %v2577_v7 = vpop.f32.mrb[212].mxu0  ;;  %v3089_v5 = vpop.f32.mrb[212].mxu1 }
 0x322   : > { %4562 = vst.msk [vmem:[%s6800_s26 + $0x1a4] sm:$0xf] %vm4456_vm3, %v5612_v4  ;;  %4690 = vst.msk [vmem:[%s6800_s26 + $0x3a4] sm:$0xf] %vm4456_vm3, %v5740_v6  ;;  %v2578_v8 = vadd.f32 %v7638_v52, %v2577_v7  ;;  %v3090_v9 = vadd.f32 %v7638_v52, %v3089_v5  ;;  %v2579_v10 = vpop.f32.mrb[213].mxu0  ;;  %v3091_v12 = vpop.f32.mrb[213].mxu1 }
 0x323   : > { %v2580_v13 = vpop.f32.mrb[214].mxu0  ;;  %v3092_v14 = vpop.f32.mrb[214].mxu1 }
 0x324   : > { %v3282_v15 = vmax.f32 %v2578_v8, 0.0  ;;  %v3410_v16 = vmax.f32 %v3090_v9, 0.0  ;;  %v2581_v17 = vadd.f32 %v7638_v52, %v2580_v13  ;;  %v3093_v18 = vadd.f32 %v7638_v52, %v3092_v14  ;;  %v2582_v19 = vpop.f32.mrb[215].mxu0  ;;  %v3094_v20 = vpop.f32.mrb[215].mxu1 }
 0x326   : > { %v5613_v21 = vpack.c.bf16 %v3282_v15, %v3282_v15  ;;  %v5741_v22 = vpack.c.bf16 %v3410_v16, %v3410_v16  ;;  %v3283_v23 = vmax.f32 %v2581_v17, 0.0  ;;  %v3411_v24 = vmax.f32 %v3093_v18, 0.0 }
 0x328   : > { %4563 = vst.msk [vmem:[%s6800_s26 + $0x1a8] sm:$0xf] %vm4456_vm3, %v5613_v21  ;;  %4691 = vst.msk [vmem:[%s6800_s26 + $0x3a8] sm:$0xf] %vm4456_vm3, %v5741_v22  ;;  %v5614_v25 = vpack.c.bf16 %v3283_v23, %v3283_v23  ;;  %v5742_v26 = vpack.c.bf16 %v3411_v24, %v3411_v24 }
 0x329   : > { %v2585_v27 = vpop.f32.mrb[216].mxu0  ;;  %v3097_v28 = vpop.f32.mrb[216].mxu1 }
 0x32a   : > { %4564 = vst.msk [vmem:[%s6800_s26 + $0x1ac] sm:$0xf] %vm4456_vm3, %v5614_v25  ;;  %4692 = vst.msk [vmem:[%s6800_s26 + $0x3ac] sm:$0xf] %vm4456_vm3, %v5742_v26  ;;  %v2586_v29 = vadd.f32 %v7638_v52, %v2585_v27  ;;  %v3098_v30 = vadd.f32 %v7638_v52, %v3097_v28  ;;  %v2587_v31 = vpop.f32.mrb[217].mxu0  ;;  %v3099_v32 = vpop.f32.mrb[217].mxu1 }
 0x32b   : > { %v2588_v33 = vpop.f32.mrb[218].mxu0  ;;  %v3100_v34 = vpop.f32.mrb[218].mxu1 }
 0x32c   : > { %v3284_v35 = vmax.f32 %v2586_v29, 0.0  ;;  %v3412_v36 = vmax.f32 %v3098_v30, 0.0  ;;  %v2589_v37 = vadd.f32 %v7638_v52, %v2588_v33  ;;  %v3101_v38 = vadd.f32 %v7638_v52, %v3100_v34  ;;  %v2590_v39 = vpop.f32.mrb[219].mxu0  ;;  %v3102_v40 = vpop.f32.mrb[219].mxu1 }
 0x32e   : > { %v5615_v41 = vpack.c.bf16 %v3284_v35, %v3284_v35  ;;  %v5743_v42 = vpack.c.bf16 %v3412_v36, %v3412_v36  ;;  %v3285_v43 = vmax.f32 %v2589_v37, 0.0  ;;  %v3413_v44 = vmax.f32 %v3101_v38, 0.0 }
 0x330   : > { %4565 = vst.msk [vmem:[%s6800_s26 + $0x1b0] sm:$0xf] %vm4456_vm3, %v5615_v41  ;;  %4693 = vst.msk [vmem:[%s6800_s26 + $0x3b0] sm:$0xf] %vm4456_vm3, %v5743_v42  ;;  %v5616_v45 = vpack.c.bf16 %v3285_v43, %v3285_v43  ;;  %v5744_v46 = vpack.c.bf16 %v3413_v44, %v3413_v44 }
 0x331   : > { %v2593_v47 = vpop.f32.mrb[220].mxu0  ;;  %v3105_v48 = vpop.f32.mrb[220].mxu1 }
 0x332   : > { %4566 = vst.msk [vmem:[%s6800_s26 + $0x1b4] sm:$0xf] %vm4456_vm3, %v5616_v45  ;;  %4694 = vst.msk [vmem:[%s6800_s26 + $0x3b4] sm:$0xf] %vm4456_vm3, %v5744_v46  ;;  %v2594_v49 = vadd.f32 %v7638_v52, %v2593_v47  ;;  %v3106_v50 = vadd.f32 %v7638_v52, %v3105_v48  ;;  %v2595_v51 = vpop.f32.mrb[221].mxu0  ;;  %v3107_v11 = vpop.f32.mrb[221].mxu1 }
 0x333   : > { %v2596_v53 = vpop.f32.mrb[222].mxu0  ;;  %v3108_v54 = vpop.f32.mrb[222].mxu1 }
 0x334   : > { %v3286_v55 = vmax.f32 %v2594_v49, 0.0  ;;  %v3414_v56 = vmax.f32 %v3106_v50, 0.0  ;;  %v2597_v57 = vadd.f32 %v7638_v52, %v2596_v53  ;;  %v3109_v58 = vadd.f32 %v7638_v52, %v3108_v54  ;;  %v2598_v59 = vpop.f32.mrb[223].mxu0  ;;  %v3110_v60 = vpop.f32.mrb[223].mxu1 }
 0x336   : > { %v5617_v62 = vpack.c.bf16 %v3286_v55, %v3286_v55  ;;  %v5745_v63 = vpack.c.bf16 %v3414_v56, %v3414_v56  ;;  %v3287_v0 = vmax.f32 %v2597_v57, 0.0  ;;  %v3415_v1 = vmax.f32 %v3109_v58, 0.0 }
 0x338   : > { %4567 = vst.msk [vmem:[%s6800_s26 + $0x1b8] sm:$0xf] %vm4456_vm3, %v5617_v62  ;;  %4695 = vst.msk [vmem:[%s6800_s26 + $0x3b8] sm:$0xf] %vm4456_vm3, %v5745_v63  ;;  %v5618_v61 = vpack.c.bf16 %v3287_v0, %v3287_v0  ;;  %v5746_v2 = vpack.c.bf16 %v3415_v1, %v3415_v1 }
 0x339   : > { %v2601_v3 = vpop.f32.mrb[224].mxu0  ;;  %v3113_v4 = vpop.f32.mrb[224].mxu1 }
 0x33a   : > { %4568 = vst.msk [vmem:[%s6800_s26 + $0x1bc] sm:$0xf] %vm4456_vm3, %v5618_v61  ;;  %4696 = vst.msk [vmem:[%s6800_s26 + $0x3bc] sm:$0xf] %vm4456_vm3, %v5746_v2  ;;  %v2602_v6 = vadd.f32 %v7638_v52, %v2601_v3  ;;  %v3114_v7 = vadd.f32 %v7638_v52, %v3113_v4  ;;  %v2603_v5 = vpop.f32.mrb[225].mxu0  ;;  %v3115_v8 = vpop.f32.mrb[225].mxu1 }
 0x33b   : > { %v2604_v9 = vpop.f32.mrb[226].mxu0  ;;  %v3116_v10 = vpop.f32.mrb[226].mxu1 }
 0x33c   : > { %v3288_v12 = vmax.f32 %v2602_v6, 0.0  ;;  %v3416_v13 = vmax.f32 %v3114_v7, 0.0  ;;  %v2605_v14 = vadd.f32 %v7638_v52, %v2604_v9  ;;  %v3117_v15 = vadd.f32 %v7638_v52, %v3116_v10  ;;  %v2606_v16 = vpop.f32.mrb[227].mxu0  ;;  %v3118_v17 = vpop.f32.mrb[227].mxu1 }
 0x33e   : > { %v5619_v18 = vpack.c.bf16 %v3288_v12, %v3288_v12  ;;  %v5747_v19 = vpack.c.bf16 %v3416_v13, %v3416_v13  ;;  %v3289_v20 = vmax.f32 %v2605_v14, 0.0  ;;  %v3417_v21 = vmax.f32 %v3117_v15, 0.0 }
 0x340   : > { %4569 = vst.msk [vmem:[%s6800_s26 + $0x1c0] sm:$0xf] %vm4456_vm3, %v5619_v18  ;;  %4697 = vst.msk [vmem:[%s6800_s26 + $0x3c0] sm:$0xf] %vm4456_vm3, %v5747_v19  ;;  %v5620_v22 = vpack.c.bf16 %v3289_v20, %v3289_v20  ;;  %v5748_v23 = vpack.c.bf16 %v3417_v21, %v3417_v21 }
 0x341   : > { %v2609_v24 = vpop.f32.mrb[228].mxu0  ;;  %v3121_v25 = vpop.f32.mrb[228].mxu1 }
 0x342   : > { %4570 = vst.msk [vmem:[%s6800_s26 + $0x1c4] sm:$0xf] %vm4456_vm3, %v5620_v22  ;;  %4698 = vst.msk [vmem:[%s6800_s26 + $0x3c4] sm:$0xf] %vm4456_vm3, %v5748_v23  ;;  %v2610_v26 = vadd.f32 %v7638_v52, %v2609_v24  ;;  %v3122_v27 = vadd.f32 %v7638_v52, %v3121_v25  ;;  %v2611_v28 = vpop.f32.mrb[229].mxu0  ;;  %v3123_v29 = vpop.f32.mrb[229].mxu1 }
 0x343   : > { %v2612_v30 = vpop.f32.mrb[230].mxu0  ;;  %v3124_v31 = vpop.f32.mrb[230].mxu1 }
 0x344   : > { %v3290_v32 = vmax.f32 %v2610_v26, 0.0  ;;  %v3418_v33 = vmax.f32 %v3122_v27, 0.0  ;;  %v2613_v34 = vadd.f32 %v7638_v52, %v2612_v30  ;;  %v3125_v35 = vadd.f32 %v7638_v52, %v3124_v31  ;;  %v2614_v36 = vpop.f32.mrb[231].mxu0  ;;  %v3126_v37 = vpop.f32.mrb[231].mxu1 }
 0x346   : > { %v5621_v38 = vpack.c.bf16 %v3290_v32, %v3290_v32  ;;  %v5749_v39 = vpack.c.bf16 %v3418_v33, %v3418_v33  ;;  %v3291_v40 = vmax.f32 %v2613_v34, 0.0  ;;  %v3419_v41 = vmax.f32 %v3125_v35, 0.0 }
 0x348   : > { %4571 = vst.msk [vmem:[%s6800_s26 + $0x1c8] sm:$0xf] %vm4456_vm3, %v5621_v38  ;;  %4699 = vst.msk [vmem:[%s6800_s26 + $0x3c8] sm:$0xf] %vm4456_vm3, %v5749_v39  ;;  %v5622_v42 = vpack.c.bf16 %v3291_v40, %v3291_v40  ;;  %v5750_v43 = vpack.c.bf16 %v3419_v41, %v3419_v41 }
 0x349   : > { %v2617_v44 = vpop.f32.mrb[232].mxu0  ;;  %v3129_v45 = vpop.f32.mrb[232].mxu1 }
 0x34a   : > { %4572 = vst.msk [vmem:[%s6800_s26 + $0x1cc] sm:$0xf] %vm4456_vm3, %v5622_v42  ;;  %4700 = vst.msk [vmem:[%s6800_s26 + $0x3cc] sm:$0xf] %vm4456_vm3, %v5750_v43  ;;  %v2618_v46 = vadd.f32 %v7638_v52, %v2617_v44  ;;  %v3130_v47 = vadd.f32 %v7638_v52, %v3129_v45  ;;  %v2619_v48 = vpop.f32.mrb[233].mxu0  ;;  %v3131_v49 = vpop.f32.mrb[233].mxu1 }
 0x34b   : > { %v2620_v50 = vpop.f32.mrb[234].mxu0  ;;  %v3132_v51 = vpop.f32.mrb[234].mxu1 }
 0x34c   : > { %v3292_v11 = vmax.f32 %v2618_v46, 0.0  ;;  %v3420_v53 = vmax.f32 %v3130_v47, 0.0  ;;  %v2621_v54 = vadd.f32 %v7638_v52, %v2620_v50  ;;  %v3133_v55 = vadd.f32 %v7638_v52, %v3132_v51  ;;  %v2622_v56 = vpop.f32.mrb[235].mxu0  ;;  %v3134_v57 = vpop.f32.mrb[235].mxu1 }
 0x34e   : > { %v5623_v58 = vpack.c.bf16 %v3292_v11, %v3292_v11  ;;  %v5751_v59 = vpack.c.bf16 %v3420_v53, %v3420_v53  ;;  %v3293_v60 = vmax.f32 %v2621_v54, 0.0  ;;  %v3421_v62 = vmax.f32 %v3133_v55, 0.0 }
 0x350   : > { %4573 = vst.msk [vmem:[%s6800_s26 + $0x1d0] sm:$0xf] %vm4456_vm3, %v5623_v58  ;;  %4701 = vst.msk [vmem:[%s6800_s26 + $0x3d0] sm:$0xf] %vm4456_vm3, %v5751_v59  ;;  %v5624_v63 = vpack.c.bf16 %v3293_v60, %v3293_v60  ;;  %v5752_v0 = vpack.c.bf16 %v3421_v62, %v3421_v62 }
 0x351   : > { %v2625_v1 = vpop.f32.mrb[236].mxu0  ;;  %v3137_v61 = vpop.f32.mrb[236].mxu1 }
 0x352   : > { %4574 = vst.msk [vmem:[%s6800_s26 + $0x1d4] sm:$0xf] %vm4456_vm3, %v5624_v63  ;;  %4702 = vst.msk [vmem:[%s6800_s26 + $0x3d4] sm:$0xf] %vm4456_vm3, %v5752_v0  ;;  %v2626_v2 = vadd.f32 %v7638_v52, %v2625_v1  ;;  %v3138_v3 = vadd.f32 %v7638_v52, %v3137_v61  ;;  %v2627_v4 = vpop.f32.mrb[237].mxu0  ;;  %v3139_v6 = vpop.f32.mrb[237].mxu1 }
 0x353   : > { %v2628_v7 = vpop.f32.mrb[238].mxu0  ;;  %v3140_v5 = vpop.f32.mrb[238].mxu1 }
 0x354   : > { %v3294_v8 = vmax.f32 %v2626_v2, 0.0  ;;  %v3422_v9 = vmax.f32 %v3138_v3, 0.0  ;;  %v2629_v10 = vadd.f32 %v7638_v52, %v2628_v7  ;;  %v3141_v12 = vadd.f32 %v7638_v52, %v3140_v5  ;;  %v2630_v13 = vpop.f32.mrb[239].mxu0  ;;  %v3142_v14 = vpop.f32.mrb[239].mxu1 }
 0x356   : > { %v5625_v15 = vpack.c.bf16 %v3294_v8, %v3294_v8  ;;  %v5753_v16 = vpack.c.bf16 %v3422_v9, %v3422_v9  ;;  %v3295_v17 = vmax.f32 %v2629_v10, 0.0  ;;  %v3423_v18 = vmax.f32 %v3141_v12, 0.0 }
 0x358   : > { %4575 = vst.msk [vmem:[%s6800_s26 + $0x1d8] sm:$0xf] %vm4456_vm3, %v5625_v15  ;;  %4703 = vst.msk [vmem:[%s6800_s26 + $0x3d8] sm:$0xf] %vm4456_vm3, %v5753_v16  ;;  %v5626_v19 = vpack.c.bf16 %v3295_v17, %v3295_v17  ;;  %v5754_v20 = vpack.c.bf16 %v3423_v18, %v3423_v18 }
 0x359   : > { %v2633_v21 = vpop.f32.mrb[240].mxu0  ;;  %v3145_v22 = vpop.f32.mrb[240].mxu1 }
 0x35a   : > { %4576 = vst.msk [vmem:[%s6800_s26 + $0x1dc] sm:$0xf] %vm4456_vm3, %v5626_v19  ;;  %4704 = vst.msk [vmem:[%s6800_s26 + $0x3dc] sm:$0xf] %vm4456_vm3, %v5754_v20  ;;  %v2634_v23 = vadd.f32 %v7638_v52, %v2633_v21  ;;  %v3146_v24 = vadd.f32 %v7638_v52, %v3145_v22  ;;  %v2635_v25 = vpop.f32.mrb[241].mxu0  ;;  %v3147_v26 = vpop.f32.mrb[241].mxu1 }
 0x35b   : > { %v2636_v27 = vpop.f32.mrb[242].mxu0  ;;  %v3148_v28 = vpop.f32.mrb[242].mxu1 }
 0x35c   : > { %v3296_v29 = vmax.f32 %v2634_v23, 0.0  ;;  %v3424_v30 = vmax.f32 %v3146_v24, 0.0  ;;  %v2637_v31 = vadd.f32 %v7638_v52, %v2636_v27  ;;  %v3149_v32 = vadd.f32 %v7638_v52, %v3148_v28  ;;  %v2638_v33 = vpop.f32.mrb[243].mxu0  ;;  %v3150_v34 = vpop.f32.mrb[243].mxu1 }
 0x35e   : > { %v5627_v35 = vpack.c.bf16 %v3296_v29, %v3296_v29  ;;  %v5755_v36 = vpack.c.bf16 %v3424_v30, %v3424_v30  ;;  %v3297_v37 = vmax.f32 %v2637_v31, 0.0  ;;  %v3425_v38 = vmax.f32 %v3149_v32, 0.0 }
 0x360   : > { %4577 = vst.msk [vmem:[%s6800_s26 + $0x1e0] sm:$0xf] %vm4456_vm3, %v5627_v35  ;;  %4705 = vst.msk [vmem:[%s6800_s26 + $0x3e0] sm:$0xf] %vm4456_vm3, %v5755_v36  ;;  %v5628_v39 = vpack.c.bf16 %v3297_v37, %v3297_v37  ;;  %v5756_v40 = vpack.c.bf16 %v3425_v38, %v3425_v38 }
 0x361   : > { %v2641_v41 = vpop.f32.mrb[244].mxu0  ;;  %v3153_v42 = vpop.f32.mrb[244].mxu1 }
 0x362   : > { %4578 = vst.msk [vmem:[%s6800_s26 + $0x1e4] sm:$0xf] %vm4456_vm3, %v5628_v39  ;;  %4706 = vst.msk [vmem:[%s6800_s26 + $0x3e4] sm:$0xf] %vm4456_vm3, %v5756_v40  ;;  %v2642_v43 = vadd.f32 %v7638_v52, %v2641_v41  ;;  %v3154_v44 = vadd.f32 %v7638_v52, %v3153_v42  ;;  %v2643_v45 = vpop.f32.mrb[245].mxu0  ;;  %v3155_v46 = vpop.f32.mrb[245].mxu1 }
 0x363   : > { %v2644_v47 = vpop.f32.mrb[246].mxu0  ;;  %v3156_v48 = vpop.f32.mrb[246].mxu1 }
 0x364   : > { %v3298_v49 = vmax.f32 %v2642_v43, 0.0  ;;  %v3426_v50 = vmax.f32 %v3154_v44, 0.0  ;;  %v2645_v51 = vadd.f32 %v7638_v52, %v2644_v47  ;;  %v3157_v11 = vadd.f32 %v7638_v52, %v3156_v48  ;;  %v2646_v53 = vpop.f32.mrb[247].mxu0  ;;  %v3158_v54 = vpop.f32.mrb[247].mxu1 }
 0x366   : > { %v5629_v55 = vpack.c.bf16 %v3298_v49, %v3298_v49  ;;  %v5757_v56 = vpack.c.bf16 %v3426_v50, %v3426_v50  ;;  %v3299_v57 = vmax.f32 %v2645_v51, 0.0  ;;  %v3427_v58 = vmax.f32 %v3157_v11, 0.0 }
 0x368   : > { %4579 = vst.msk [vmem:[%s6800_s26 + $0x1e8] sm:$0xf] %vm4456_vm3, %v5629_v55  ;;  %4707 = vst.msk [vmem:[%s6800_s26 + $0x3e8] sm:$0xf] %vm4456_vm3, %v5757_v56  ;;  %v5630_v59 = vpack.c.bf16 %v3299_v57, %v3299_v57  ;;  %v5758_v60 = vpack.c.bf16 %v3427_v58, %v3427_v58 }
 0x369   : > { %v2649_v62 = vpop.f32.mrb[248].mxu0  ;;  %v3161_v63 = vpop.f32.mrb[248].mxu1 }
 0x36a   : > { %4580 = vst.msk [vmem:[%s6800_s26 + $0x1ec] sm:$0xf] %vm4456_vm3, %v5630_v59  ;;  %4708 = vst.msk [vmem:[%s6800_s26 + $0x3ec] sm:$0xf] %vm4456_vm3, %v5758_v60  ;;  %v2650_v0 = vadd.f32 %v7638_v52, %v2649_v62  ;;  %v3162_v1 = vadd.f32 %v7638_v52, %v3161_v63  ;;  %v2651_v61 = vpop.f32.mrb[249].mxu0  ;;  %v3163_v2 = vpop.f32.mrb[249].mxu1 }
 0x36b   : > { %v2652_v3 = vpop.f32.mrb[250].mxu0  ;;  %v3164_v4 = vpop.f32.mrb[250].mxu1 }
 0x36c   : > { %v3300_v6 = vmax.f32 %v2650_v0, 0.0  ;;  %v3428_v7 = vmax.f32 %v3162_v1, 0.0  ;;  %v2653_v5 = vadd.f32 %v7638_v52, %v2652_v3  ;;  %v3165_v8 = vadd.f32 %v7638_v52, %v3164_v4  ;;  %v2654_v9 = vpop.f32.mrb[251].mxu0  ;;  %v3166_v10 = vpop.f32.mrb[251].mxu1 }
 0x36e   : > { %v5631_v12 = vpack.c.bf16 %v3300_v6, %v3300_v6  ;;  %v5759_v13 = vpack.c.bf16 %v3428_v7, %v3428_v7  ;;  %v3301_v14 = vmax.f32 %v2653_v5, 0.0  ;;  %v3429_v15 = vmax.f32 %v3165_v8, 0.0 }
 0x370   : > { %4581 = vst.msk [vmem:[%s6800_s26 + $0x1f0] sm:$0xf] %vm4456_vm3, %v5631_v12  ;;  %4709 = vst.msk [vmem:[%s6800_s26 + $0x3f0] sm:$0xf] %vm4456_vm3, %v5759_v13  ;;  %v5632_v16 = vpack.c.bf16 %v3301_v14, %v3301_v14  ;;  %v5760_v17 = vpack.c.bf16 %v3429_v15, %v3429_v15 }
 0x371   : > { %v2657_v18 = vpop.f32.mrb[252].mxu0  ;;  %v3169_v19 = vpop.f32.mrb[252].mxu1 }
 0x372   : > { %4582 = vst.msk [vmem:[%s6800_s26 + $0x1f4] sm:$0xf] %vm4456_vm3, %v5632_v16  ;;  %4710 = vst.msk [vmem:[%s6800_s26 + $0x3f4] sm:$0xf] %vm4456_vm3, %v5760_v17  ;;  %v2658_v20 = vadd.f32 %v7638_v52, %v2657_v18  ;;  %v3170_v21 = vadd.f32 %v7638_v52, %v3169_v19  ;;  %v2659_v22 = vpop.f32.mrb[253].mxu0  ;;  %v3171_v23 = vpop.f32.mrb[253].mxu1 }
 0x373   : > { %v2660_v24 = vpop.f32.mrb[254].mxu0  ;;  %v3172_v25 = vpop.f32.mrb[254].mxu1 }
 0x374   : > { %v3302_v26 = vmax.f32 %v2658_v20, 0.0  ;;  %v3430_v27 = vmax.f32 %v3170_v21, 0.0  ;;  %v2661_v28 = vadd.f32 %v7638_v52, %v2660_v24  ;;  %v3173_v29 = vadd.f32 %v7638_v52, %v3172_v25  ;;  %v2662_v30 = vpop.f32.mrb[255].mxu0  ;;  %v3174_v31 = vpop.f32.mrb[255].mxu1  ;;  %4720 = sbr.rel (!%p7864_p8) target bundleno = 919 (0x397), region = 48 }
 0x376   : > { %v5633_v32 = vpack.c.bf16 %v3302_v26, %v3302_v26  ;;  %v5761_v33 = vpack.c.bf16 %v3430_v27, %v3430_v27  ;;  %v3303_v34 = vmax.f32 %v2661_v28, 0.0  ;;  %v3431_v35 = vmax.f32 %v3173_v29, 0.0 }
 0x378   : > { %4583 = vst.msk [vmem:[%s6800_s26 + $0x1f8] sm:$0xf] %vm4456_vm3, %v5633_v32  ;;  %4711 = vst.msk [vmem:[%s6800_s26 + $0x3f8] sm:$0xf] %vm4456_vm3, %v5761_v33  ;;  %v5634_v36 = vpack.c.bf16 %v3303_v34, %v3303_v34  ;;  %v5762_v37 = vpack.c.bf16 %v3431_v35, %v3431_v35 }
 0x37a   : > { %4584 = vst.msk [vmem:[%s6800_s26 + $0x1fc] sm:$0xf] %vm4456_vm3, %v5634_v36  ;;  %4712 = vst.msk [vmem:[%s6800_s26 + $0x3fc] sm:$0xf] %vm4456_vm3, %v5762_v37 }
 0x37b   : > { %s7873_s11 = smov (!%p4723_p9, %s4722_s11), 256 }
 0x37c   : > { %s7788_s28 = sshll.u32 %s7873_s11, 6 }
 0x37d   : > { %s4727_s30 = ssub.s32 16384, %s7788_s28 }
 0x37e   : > { %4728 = vsyncadd %s4714_s29, %s4727_s30  ;;  %p5498_p10 = scmp.ne.s32.totalorder %s7788_s28, 0  ;;  %s5763_s24 = sshll.u32 %s6458_s16, 14 }
 0x37f   : > { %s7798_s7 = scalar_lea.hbm %s7849_s3, %s5763_s24  ;;  %s4733_s4 = sshll.u32 %s6800_s26, 4  ;;  %s7801_s4 = int_to_ptr.vmem [resolvable:$true] %s4733_s4 }
 0x380   : > { %s6333_s22 = scalar_lea.vmem %s7801_s4, %s7788_s28  ;;  %s6414_s9 = smov [#allocation8]  }
 0x381   : > { %p6334_p1 = scmp.ne.s32.totalorder %s7801_s4, %s6333_s22  ;;  %s6337_s10 = sshll.u32 %s6414_s9, 4  ;;  %s6338_s10 = int_to_ptr.vmem [resolvable:$false] %s6337_s10 }
 0x382   : > { %s6339_s16 = scalar_lea.vmem %s6338_s10, 32768  ;;  %p6340_p5 = scmp.lt.s32.totalorder %s7801_s4, %s6338_s10 }
 0x383   : > { %p6335_p4 = pnand %p6334_p1, %p5498_p10  ;;  %p6341_p6 = scmp.lt.s32.totalorder %s6339_s16, %s6333_s22 }
 0x385   : > { %p6336_p3 = pneg %p6335_p4  ;;  %p6342_p11 = por %p6341_p6, %p6340_p5 }
 0x387   : > { %p6343_p13 = pnand %p6342_p11, %p6336_p3 }
 0x389   : > { %6346 = shalt.err (!%p6343_p13)
}
 0x38a   : > { %s6347_s19 = scalar_lea.hbm %s7798_s7, %s7788_s28  ;;  %s6351_s23 = scalar_lea.hbm %s7849_s3, 200704 }
 0x38b   : > { %p6348_p12 = scmp.ne.s32.totalorder %s7798_s7, %s6347_s19  ;;  %p6352_p7 = scmp.lt.u32.totalorder %s7798_s7, %s7849_s3 }
 0x38c   : > { %p6353_p8 = scmp.lt.u32.totalorder %s6351_s23, %s6347_s19  ;;  %p6355_p1 = scmp.lt.u32.totalorder %s6347_s19, %s7798_s7 }
 0x38d   : > { %p6349_p0 = pnand %p6348_p12, %p5498_p10 }
 0x38e   : > { %p6354_p9 = por %p6353_p8, %p6352_p7 }
 0x38f   : > { %p6350_p2 = pneg %p6349_p0 }
 0x390   : > { %p6356_p4 = por %p6355_p1, %p6354_p9 }
 0x392   : > { %p6357_p3 = pnand %p6356_p4, %p6350_p2 }
 0x394   : > { %6360 = shalt.err (!%p6357_p3)
}
 0x395   : > { %s6415_s11 = smov 64   ;;  %s6416_s30 = smov 4  }
 0x396   : > { %4739 = dma.vmem_to_hbm [thread:$0]  (%p5498_p10), %s7801_s4, %s7788_s28, %s7798_s7, %s4714_s29, %s6415_s11, %s6415_s11, %s6416_s30  }
 0x397 PF: > { %p5809_p5 = scmp.ge.s32.totalorder %s6403_s15, 2  ;;  %s4748_s24 = sand.u32 1, %s6391_s12  }
 0x398   : > { %p7865_p6 = scmp.ne.s32.totalorder %s7856_s25, 0  ;;  %s4749_s5 = scalar_lea.sflag [#allocation4], %s4748_s24 }
 0x39a   : > { %p5802_p11 = pnand %p5809_p5, %p7865_p6 }
 0x39c   : > { %6386 = dma.done.wait (!%p5802_p11), %s4749_s5, 16384  }
 0x39d   : > { %6388 = vsyncadd (!%p5802_p11), %s4749_s5, 4294950912  ;;  %p17_p13 = scmp.ge.s32.totalorder %s6462_s18, 15   ;;  %s7866_s12 = smov %s6395_s13 }
 0x39e   : > { %s7867_s13 = smov %s6399_s14  ;;  %s7868_s14 = smov %s6474_s21 }
 0x39f   : > { %s7869_s15 = smov %s6462_s18  ;;  %19 = sbr.rel (!%p17_p13) target bundleno = 6 (0x6), region = 85 }
 0x3a6   :  { %4754 = vsyncpa [#allocation3], 1 }
 0x3a7   :  { %4756 = vsyncpa [#allocation3 + $0x1], 1 }
 0x3a8   :  { %4757 = vsyncpa [#allocation6], 1 }
 0x3a9   :  { %4758 = vsyncpa [#allocation4], 1 }
 0x3aa   :  { %4760 = vsyncpa [#allocation4 + $0x1], 1 }

</bundles_post_ra>
